<compile_context>
chip_gen: v5e
topology: v5e:2x2
jax: 0.10.0
libtpu: 0.0.40
codegen_flags: <defaults>
</compile_context>

<pallas_src>
import math

import jax
import jax.numpy as jnp
from jax.experimental import pallas as pl
from jax.experimental.pallas import tpu as pltpu

NHEAD = 4
LN_EPS = 1e-5
NEG_INF = -1e30


def _trans_encoder_kernel(
    x_ref,        # (T, b_blk, C) f32   native seq-major input tile
    bias_ref,     # (N, N)  f32         additive same-batch mask (0 / -1e30)
    w_lin_ref,    # (C, D)  bf16
    w_qkv_ref,    # (D, 3D) bf16
    b_qkv_ref,    # (1, 3D) f32
    w_out_ref,    # (D, D)  bf16
    w1_ref,       # (D, F)  bf16
    b1_ref,       # (1, F)  f32
    w2_ref,       # (F, D)  bf16
    vec_ref,      # (8, D)  f32  rows: b_lin, b_out, g1, beta1, b2, g2, beta2, 0
    o_ref,        # (T, b_blk, D) f32   native seq-major output tile
    acc_ref,      # (N, D)  f32 scratch: summed (= concatenated) head outputs
):
    T, b_blk, C = x_ref.shape
    D = w_lin_ref.shape[1]
    N = T * b_blk
    dh = D // NHEAD
    scale = 1.0 / math.sqrt(dh)
    bf = jnp.bfloat16

    b_lin = vec_ref[0:1, :]
    b_out = vec_ref[1:2, :]
    g1, beta1 = vec_ref[2:3, :], vec_ref[3:4, :]
    b2 = vec_ref[4:5, :]
    g2, beta2 = vec_ref[5:6, :], vec_ref[6:7, :]

    # ---- input projection on native token-major rows (zero layout churn) ----
    x_rows = x_ref[...].reshape(N, C).astype(bf)
    h = jnp.dot(x_rows, w_lin_ref[...], preferred_element_type=jnp.float32) + b_lin

    # ---- fused QKV projection: one (N, D) @ (D, 3D) full-width matmul ----
    qkv = jnp.dot(h.astype(bf), w_qkv_ref[...],
                  preferred_element_type=jnp.float32) + b_qkv_ref[...]
    qkv = qkv.astype(bf)
    q_all = qkv[:, :D]            # 128-lane aligned slices only
    k_all = qkv[:, D:2 * D]
    v_all = qkv[:, 2 * D:]

    # ---- multi-head self-attention: full (N, N) masked scores per head ----
    lane = jax.lax.broadcasted_iota(jnp.int32, (1, D), 1)
    for hh in range(NHEAD):                       # static 4-iteration loop
        lo = hh * dh
        head = jnp.logical_and(lane >= lo, lane < lo + dh)
        k_h = jnp.where(head, k_all, jnp.zeros_like(k_all))
        v_h = jnp.where(head, v_all, jnp.zeros_like(v_all))
        # q (unmasked) . k_h^T contracts only this head's lanes (others are 0)
        s = jnp.einsum("nd,md->nm", q_all, k_h,
                       preferred_element_type=jnp.float32)
        s = s * scale + bias_ref[...]             # mask BEFORE max / exp
        s = s - jnp.max(s, axis=-1, keepdims=True)
        p = jnp.exp(s)
        p = p * pl.reciprocal(jnp.sum(p, axis=-1, keepdims=True), approx=True)
        o = jnp.dot(p.astype(bf), v_h, preferred_element_type=jnp.float32)
        if hh == 0:                               # heads occupy disjoint lanes,
            acc_ref[...] = o                      # so the sum IS the concat
        else:
            acc_ref[...] = acc_ref[...] + o

    # ---- single full-width out-projection over concatenated heads ----
    attn = jnp.dot(acc_ref[...].astype(bf), w_out_ref[...],
                   preferred_element_type=jnp.float32) + b_out

    # ---- residual + LayerNorm 1 (post-norm, dropout = 0) ----
    x1 = h + attn
    mu = jnp.mean(x1, axis=-1, keepdims=True)
    var = jnp.mean((x1 - mu) ** 2, axis=-1, keepdims=True)
    x1 = (x1 - mu) * jax.lax.rsqrt(var + LN_EPS) * g1 + beta1

    # ---- feed-forward: linear2(relu(linear1(x))) ----
    ff = jnp.dot(x1.astype(bf), w1_ref[...],
                 preferred_element_type=jnp.float32) + b1_ref[...]
    ff = jnp.maximum(ff, 0.0).astype(bf)          # bf16 hidden: halves vreg use
    ff = jnp.dot(ff, w2_ref[...], preferred_element_type=jnp.float32) + b2

    # ---- residual + LayerNorm 2 ----
    x2 = x1 + ff
    mu = jnp.mean(x2, axis=-1, keepdims=True)
    var = jnp.mean((x2 - mu) ** 2, axis=-1, keepdims=True)
    x2 = (x2 - mu) * jax.lax.rsqrt(var + LN_EPS) * g2 + beta2

    # rows are already token-major: free re-view into the (T, b_blk, D) tile
    o_ref[...] = x2.reshape(T, b_blk, D)


def _choose_b_blk(B, T):
    """Largest divisor of B with b_blk*T <= 128 rows (128-row score tile)."""
    best = 1
    for d in range(1, B + 1):
        if B % d == 0 and d * T <= 128:
            best = d
    return best


def trans_encoder_forward(x_tbc, params, b_blk=None):
    """x_tbc: (T, B, in_channels) f32 -> (T, B, latent_dim) f32 (matches PyTorch)."""
    T, B, C = x_tbc.shape
    D = params["w_lin"].shape[0]
    assert D % NHEAD == 0
    F = params["w1"].shape[0]
    if b_blk is None:
        b_blk = _choose_b_blk(B, T)
    assert B % b_blk == 0, (B, b_blk)
    nb = B // b_blk
    N = T * b_blk

    # additive same-batch mask: token-major row r belongs to local batch r % b_blk
    r = jnp.arange(N)
    same = (r[:, None] % b_blk) == (r[None, :] % b_blk)
    attn_bias = jnp.where(same, 0.0, NEG_INF).astype(jnp.float32)

    bf = jnp.bfloat16
    vec = jnp.stack([
        params["b_lin"], params["b_out"],
        params["g1"], params["beta1"],
        params["b2"], params["g2"], params["beta2"],
        jnp.zeros((D,), jnp.float32),
    ]).astype(jnp.float32)                                     # (8, D)

    weights = (
        attn_bias,                                             # keep f32 (mask!)
        params["w_lin"].T.astype(bf),                          # (C, D)
        params["w_qkv"].T.astype(bf),                          # (D, 3D)
        params["b_qkv"].reshape(1, 3 * D).astype(jnp.float32),
        params["w_out"].T.astype(bf),                          # (D, D)
        params["w1"].T.astype(bf),                             # (D, F)
        params["b1"].reshape(1, F).astype(jnp.float32),
        params["w2"].T.astype(bf),                             # (F, D)
        vec,
    )

    def full_spec(a):
        nd = a.ndim
        return pl.BlockSpec(a.shape, lambda i, _nd=nd: (0,) * _nd)

    return pl.pallas_call(
        _trans_encoder_kernel,
        out_shape=jax.ShapeDtypeStruct((T, B, D), jnp.float32),
        grid=(nb,),
        in_specs=[pl.BlockSpec((T, b_blk, C), lambda i: (0, i, 0))]
                 + [full_spec(w) for w in weights],
        out_specs=pl.BlockSpec((T, b_blk, D), lambda i: (0, i, 0)),
        scratch_shapes=[pltpu.VMEM((N, D), jnp.float32)],
        compiler_params=pltpu.CompilerParams(dimension_semantics=("parallel",)),
    )(x_tbc, *weights)


def init_params(key, in_channels, latent_dim):
    D, F = latent_dim, 2 * latent_dim
    ks = jax.random.split(key, 12)
    s = 0.05
    return {
        "w_lin": jax.random.normal(ks[0], (D, in_channels), jnp.float32) * s,
        "b_lin": jax.random.normal(ks[1], (D,), jnp.float32) * s,
        "w_qkv": jax.random.normal(ks[2], (3 * D, D), jnp.float32) * s,
        "b_qkv": jax.random.normal(ks[3], (3 * D,), jnp.float32) * s,
        "w_out": jax.random.normal(ks[4], (D, D), jnp.float32) * s,
        "b_out": jax.random.normal(ks[5], (D,), jnp.float32) * s,
        "g1": jnp.ones((D,), jnp.float32),
        "beta1": jnp.zeros((D,), jnp.float32),
        "w1": jax.random.normal(ks[6], (F, D), jnp.float32) * s,
        "b1": jax.random.normal(ks[7], (F,), jnp.float32) * s,
        "w2": jax.random.normal(ks[8], (D, F), jnp.float32) * s,
        "b2": jax.random.normal(ks[9], (D,), jnp.float32) * s,
        "g2": jnp.ones((D,), jnp.float32),
        "beta2": jnp.zeros((D,), jnp.float32),
        # Present in the module but unused in forward (token_mask is (B, 0)).
        "mu_token": jax.random.normal(ks[10], (D,), jnp.float32),
        "logvar_token": jax.random.normal(ks[11], (D,), jnp.float32),
    }


def reference_forward(x_tbc, p):
    """Pure-JAX reference of the same math (for sanity checking)."""
    T, B, C = x_tbc.shape
    D = p["w_lin"].shape[0]
    dh = D // NHEAD
    x = jnp.transpose(x_tbc, (1, 0, 2))                            # (B, T, C)
    h = x @ p["w_lin"].T + p["b_lin"]                              # (B, T, D)
    qkv = h @ p["w_qkv"].T + p["b_qkv"]                            # (B, T, 3D)
    q, k, v = qkv[..., :D], qkv[..., D:2 * D], qkv[..., 2 * D:]
    qh = q.reshape(B, T, NHEAD, dh)
    kh = k.reshape(B, T, NHEAD, dh)
    vh = v.reshape(B, T, NHEAD, dh)
    s = jnp.einsum("bthd,bshd->bhts", qh, kh) / math.sqrt(dh)
    pa = jax.nn.softmax(s, axis=-1)
    o = jnp.einsum("bhts,bshd->bthd", pa, vh).reshape(B, T, D)
    attn = o @ p["w_out"].T + p["b_out"]
    x1 = h + attn
    mu = jnp.mean(x1, -1, keepdims=True)
    var = jnp.mean((x1 - mu) ** 2, -1, keepdims=True)
    x1 = (x1 - mu) * jax.lax.rsqrt(var + LN_EPS) * p["g1"] + p["beta1"]
    ff = jnp.maximum(x1 @ p["w1"].T + p["b1"], 0.0) @ p["w2"].T + p["b2"]
    x2 = x1 + ff
    mu = jnp.mean(x2, -1, keepdims=True)
    var = jnp.mean((x2 - mu) ** 2, -1, keepdims=True)
    x2 = (x2 - mu) * jax.lax.rsqrt(var + LN_EPS) * p["g2"] + p["beta2"]
    return jnp.transpose(x2, (1, 0, 2))                            # (T, B, D)


if __name__ == "__main__":
    T, B, C_IN, LATENT = 8, 32, 16, 128     # b_blk=16 -> N=128 rows/step, grid=(2,)
    key = jax.random.PRNGKey(0)
    k_x, k_p = jax.random.split(key)
    x = jax.random.normal(k_x, (T, B, C_IN), jnp.float32)          # (T, B, C)
    params = init_params(k_p, C_IN, LATENT)

    fwd = jax.jit(trans_encoder_forward)
    out = jax.block_until_ready(fwd(x, params))                    # (T, B, D)

    ref = jax.block_until_ready(reference_forward(x, params))
    assert out.shape == (T, B, LATENT)
    # bf16 MXU operands (f32 accumulation) + approx reciprocal -> not bit-exact.
    max_err = float(jnp.max(jnp.abs(out - ref)))
    assert max_err < 2e-2, f"mismatch vs reference: {max_err}"

    print("KERNEL_OK")
</pallas_src>

<mosaic_0001>
module attributes {stable_mosaic.version = 11 : i64} {
  func.func @_trans_encoder_kernel(%arg0: i32, %arg1: memref<8x16x16xf32, #tpu.memory_space<vmem>>, %arg2: memref<128x128xf32, #tpu.memory_space<vmem>>, %arg3: memref<16x128xbf16, #tpu.memory_space<vmem>>, %arg4: memref<128x384xbf16, #tpu.memory_space<vmem>>, %arg5: memref<1x384xf32, #tpu.memory_space<vmem>>, %arg6: memref<128x128xbf16, #tpu.memory_space<vmem>>, %arg7: memref<128x256xbf16, #tpu.memory_space<vmem>>, %arg8: memref<1x256xf32, #tpu.memory_space<vmem>>, %arg9: memref<256x128xbf16, #tpu.memory_space<vmem>>, %arg10: memref<8x128xf32, #tpu.memory_space<vmem>>, %arg11: memref<8x16x128xf32, #tpu.memory_space<vmem>>, %arg12: memref<128x128xf32, #tpu.memory_space<vmem>>) attributes {dimension_semantics = [#tpu.dimension_semantics<parallel>], iteration_bounds = array<i64: 2>, scalar_prefetch = 0 : i64, scratch_operands = 1 : i64, tpu.core_type = #tpu.core_type<tc>, window_params = [{transform_indices = @transform_0, window_bounds = array<i64: 8, 16, 16>}, {pipeline_mode = #tpu.pipeline_mode<synchronous>, transform_indices = @transform_1, window_bounds = array<i64: 128, 128>}, {pipeline_mode = #tpu.pipeline_mode<synchronous>, transform_indices = @transform_2, window_bounds = array<i64: 16, 128>}, {pipeline_mode = #tpu.pipeline_mode<synchronous>, transform_indices = @transform_3, window_bounds = array<i64: 128, 384>}, {pipeline_mode = #tpu.pipeline_mode<synchronous>, transform_indices = @transform_4, window_bounds = array<i64: 1, 384>}, {pipeline_mode = #tpu.pipeline_mode<synchronous>, transform_indices = @transform_5, window_bounds = array<i64: 128, 128>}, {pipeline_mode = #tpu.pipeline_mode<synchronous>, transform_indices = @transform_6, window_bounds = array<i64: 128, 256>}, {pipeline_mode = #tpu.pipeline_mode<synchronous>, transform_indices = @transform_7, window_bounds = array<i64: 1, 256>}, {pipeline_mode = #tpu.pipeline_mode<synchronous>, transform_indices = @transform_8, window_bounds = array<i64: 256, 128>}, {pipeline_mode = #tpu.pipeline_mode<synchronous>, transform_indices = @transform_9, window_bounds = array<i64: 8, 128>}, {transform_indices = @transform_10, window_bounds = array<i64: 8, 16, 128>}]} {
    %c0 = arith.constant 0 : index
    %c0_0 = arith.constant 0 : index
    %0 = vector.load %arg10[%c0, %c0_0] : memref<8x128xf32, #tpu.memory_space<vmem>>, vector<1x128xf32>
    %c1 = arith.constant 1 : index
    %c0_1 = arith.constant 0 : index
    %1 = vector.load %arg10[%c1, %c0_1] : memref<8x128xf32, #tpu.memory_space<vmem>>, vector<1x128xf32>
    %c2 = arith.constant 2 : index
    %c0_2 = arith.constant 0 : index
    %2 = vector.load %arg10[%c2, %c0_2] : memref<8x128xf32, #tpu.memory_space<vmem>>, vector<1x128xf32>
    %c3 = arith.constant 3 : index
    %c0_3 = arith.constant 0 : index
    %3 = vector.load %arg10[%c3, %c0_3] : memref<8x128xf32, #tpu.memory_space<vmem>>, vector<1x128xf32>
    %c4 = arith.constant 4 : index
    %c0_4 = arith.constant 0 : index
    %4 = vector.load %arg10[%c4, %c0_4] : memref<8x128xf32, #tpu.memory_space<vmem>>, vector<1x128xf32>
    %c5 = arith.constant 5 : index
    %c0_5 = arith.constant 0 : index
    %5 = vector.load %arg10[%c5, %c0_5] : memref<8x128xf32, #tpu.memory_space<vmem>>, vector<1x128xf32>
    %c6 = arith.constant 6 : index
    %c0_6 = arith.constant 0 : index
    %6 = vector.load %arg10[%c6, %c0_6] : memref<8x128xf32, #tpu.memory_space<vmem>>, vector<1x128xf32>
    %c0_7 = arith.constant 0 : index
    %c0_8 = arith.constant 0 : index
    %c0_9 = arith.constant 0 : index
    %7 = vector.load %arg1[%c0_7, %c0_8, %c0_9] : memref<8x16x16xf32, #tpu.memory_space<vmem>>, vector<8x16x16xf32>
    %8 = vector.shape_cast %7 : vector<8x16x16xf32> to vector<128x16xf32>
    %9 = arith.truncf %8 : vector<128x16xf32> to vector<128x16xbf16>
    %c0_10 = arith.constant 0 : index
    %c0_11 = arith.constant 0 : index
    %10 = vector.load %arg3[%c0_10, %c0_11] : memref<16x128xbf16, #tpu.memory_space<vmem>>, vector<16x128xbf16>
    %cst = arith.constant dense<0.000000e+00> : vector<128x128xf32>
    %11 = tpu.matmul %9, %10, %cst {dimension_numbers = #tpu.dot_dimension_numbers<[1], [0], [0], [1], [0, 0, 1, 1], [], []>} : vector<128x16xbf16>, vector<16x128xbf16>, vector<128x128xf32> -> vector<128x128xf32>
    %12 = vector.broadcast %0 : vector<1x128xf32> to vector<128x128xf32>
    %13 = arith.addf %11, %12 : vector<128x128xf32>
    %14 = arith.truncf %13 : vector<128x128xf32> to vector<128x128xbf16>
    %c0_12 = arith.constant 0 : index
    %c0_13 = arith.constant 0 : index
    %15 = vector.load %arg4[%c0_12, %c0_13] : memref<128x384xbf16, #tpu.memory_space<vmem>>, vector<128x384xbf16>
    %cst_14 = arith.constant dense<0.000000e+00> : vector<128x384xf32>
    %16 = tpu.matmul %14, %15, %cst_14 {dimension_numbers = #tpu.dot_dimension_numbers<[1], [0], [0], [1], [0, 0, 1, 1], [], []>} : vector<128x128xbf16>, vector<128x384xbf16>, vector<128x384xf32> -> vector<128x384xf32>
    %c0_15 = arith.constant 0 : index
    %c0_16 = arith.constant 0 : index
    %17 = vector.load %arg5[%c0_15, %c0_16] : memref<1x384xf32, #tpu.memory_space<vmem>>, vector<1x384xf32>
    %18 = vector.broadcast %17 : vector<1x384xf32> to vector<128x384xf32>
    %19 = arith.addf %16, %18 : vector<128x384xf32>
    %20 = arith.truncf %19 : vector<128x384xf32> to vector<128x384xbf16>
    %21 = vector.extract_strided_slice %20 {offsets = [0, 0], sizes = [128, 128], strides = [1, 1]} : vector<128x384xbf16> to vector<128x128xbf16>
    %22 = vector.extract_strided_slice %20 {offsets = [0, 128], sizes = [128, 128], strides = [1, 1]} : vector<128x384xbf16> to vector<128x128xbf16>
    %23 = vector.extract_strided_slice %20 {offsets = [0, 256], sizes = [128, 128], strides = [1, 1]} : vector<128x384xbf16> to vector<128x128xbf16>
    %24 = tpu.iota {dimensions = array<i32: 1>} : vector<1x128xi32>
    %c0_i32 = arith.constant 0 : i32
    %25 = vector.broadcast %c0_i32 : i32 to vector<1x128xi32>
    %26 = arith.cmpi sge, %24, %25 : vector<1x128xi32>
    %c32_i32 = arith.constant 32 : i32
    %27 = vector.broadcast %c32_i32 : i32 to vector<1x128xi32>
    %28 = arith.cmpi slt, %24, %27 : vector<1x128xi32>
    %29 = arith.andi %26, %28 : vector<1x128xi1>
    %cst_17 = arith.constant 0.000000e+00 : bf16
    %30 = vector.broadcast %cst_17 : bf16 to vector<128x128xbf16>
    %31 = vector.shape_cast %29 : vector<1x128xi1> to vector<1x128xi1>
    %32 = vector.broadcast %31 : vector<1x128xi1> to vector<128x128xi1>
    %33 = arith.select %32, %22, %30 : vector<128x128xi1>, vector<128x128xbf16>
    %cst_18 = arith.constant 0.000000e+00 : bf16
    %34 = vector.broadcast %cst_18 : bf16 to vector<128x128xbf16>
    %35 = vector.shape_cast %29 : vector<1x128xi1> to vector<1x128xi1>
    %36 = vector.broadcast %35 : vector<1x128xi1> to vector<128x128xi1>
    %37 = arith.select %36, %23, %34 : vector<128x128xi1>, vector<128x128xbf16>
    "tpu.trace_start"() <{level = 10 : i32, message = "nd,md->nm"}> : () -> ()
    %cst_19 = arith.constant dense<0.000000e+00> : vector<128x128xf32>
    %38 = tpu.matmul %21, %33, %cst_19 {dimension_numbers = #tpu.dot_dimension_numbers<[1], [1], [0], [0], [0, 0, 1, 0], [], []>} : vector<128x128xbf16>, vector<128x128xbf16>, vector<128x128xf32> -> vector<128x128xf32>
    "tpu.trace_stop"() : () -> ()
    %cst_20 = arith.constant 0.176776692 : f32
    %39 = vector.broadcast %cst_20 : f32 to vector<128x128xf32>
    %40 = arith.mulf %38, %39 : vector<128x128xf32>
    %c0_21 = arith.constant 0 : index
    %c0_22 = arith.constant 0 : index
    %41 = vector.load %arg2[%c0_21, %c0_22] : memref<128x128xf32, #tpu.memory_space<vmem>>, vector<128x128xf32>
    %42 = arith.addf %40, %41 : vector<128x128xf32>
    %cst_23 = arith.constant dense<0xFF800000> : vector<128xf32>
    %43 = vector.multi_reduction <maximumf>, %42, %cst_23 [1] : vector<128x128xf32> to vector<128xf32>
    %44 = vector.shape_cast %43 : vector<128xf32> to vector<128x1xf32>
    %45 = vector.broadcast %44 : vector<128x1xf32> to vector<128x128xf32>
    %46 = arith.subf %42, %45 : vector<128x128xf32>
    %47 = math.exp %46 : vector<128x128xf32>
    %cst_24 = arith.constant dense<0.000000e+00> : vector<128xf32>
    %48 = vector.multi_reduction <add>, %47, %cst_24 [1] : vector<128x128xf32> to vector<128xf32>
    %49 = vector.shape_cast %48 : vector<128xf32> to vector<128x1xf32>
    %50 = tpu.reciprocal %49 {approx = true} : vector<128x1xf32> -> vector<128x1xf32>
    %51 = vector.broadcast %50 : vector<128x1xf32> to vector<128x128xf32>
    %52 = arith.mulf %47, %51 : vector<128x128xf32>
    %53 = arith.truncf %52 : vector<128x128xf32> to vector<128x128xbf16>
    %cst_25 = arith.constant dense<0.000000e+00> : vector<128x128xf32>
    %54 = tpu.matmul %53, %37, %cst_25 {dimension_numbers = #tpu.dot_dimension_numbers<[1], [0], [0], [1], [0, 0, 1, 1], [], []>} : vector<128x128xbf16>, vector<128x128xbf16>, vector<128x128xf32> -> vector<128x128xf32>
    %c0_26 = arith.constant 0 : index
    %c0_27 = arith.constant 0 : index
    %55 = vector.load %arg12[%c0_26, %c0_27] : memref<128x128xf32, #tpu.memory_space<vmem>>, vector<128x128xf32>
    tpu.vector_store %arg12[%c0_26, %c0_27], %54 {strides = array<i32>} : memref<128x128xf32, #tpu.memory_space<vmem>>, vector<128x128xf32>,
    %c32_i32_28 = arith.constant 32 : i32
    %56 = vector.broadcast %c32_i32_28 : i32 to vector<1x128xi32>
    %57 = arith.cmpi sge, %24, %56 : vector<1x128xi32>
    %c64_i32 = arith.constant 64 : i32
    %58 = vector.broadcast %c64_i32 : i32 to vector<1x128xi32>
    %59 = arith.cmpi slt, %24, %58 : vector<1x128xi32>
    %60 = arith.andi %57, %59 : vector<1x128xi1>
    %cst_29 = arith.constant 0.000000e+00 : bf16
    %61 = vector.broadcast %cst_29 : bf16 to vector<128x128xbf16>
    %62 = vector.shape_cast %60 : vector<1x128xi1> to vector<1x128xi1>
    %63 = vector.broadcast %62 : vector<1x128xi1> to vector<128x128xi1>
    %64 = arith.select %63, %22, %61 : vector<128x128xi1>, vector<128x128xbf16>
    %cst_30 = arith.constant 0.000000e+00 : bf16
    %65 = vector.broadcast %cst_30 : bf16 to vector<128x128xbf16>
    %66 = vector.shape_cast %60 : vector<1x128xi1> to vector<1x128xi1>
    %67 = vector.broadcast %66 : vector<1x128xi1> to vector<128x128xi1>
    %68 = arith.select %67, %23, %65 : vector<128x128xi1>, vector<128x128xbf16>
    "tpu.trace_start"() <{level = 10 : i32, message = "nd,md->nm"}> : () -> ()
    %cst_31 = arith.constant dense<0.000000e+00> : vector<128x128xf32>
    %69 = tpu.matmul %21, %64, %cst_31 {dimension_numbers = #tpu.dot_dimension_numbers<[1], [1], [0], [0], [0, 0, 1, 0], [], []>} : vector<128x128xbf16>, vector<128x128xbf16>, vector<128x128xf32> -> vector<128x128xf32>
    "tpu.trace_stop"() : () -> ()
    %cst_32 = arith.constant 0.176776692 : f32
    %70 = vector.broadcast %cst_32 : f32 to vector<128x128xf32>
    %71 = arith.mulf %69, %70 : vector<128x128xf32>
    %c0_33 = arith.constant 0 : index
    %c0_34 = arith.constant 0 : index
    %72 = vector.load %arg2[%c0_33, %c0_34] : memref<128x128xf32, #tpu.memory_space<vmem>>, vector<128x128xf32>
    %73 = arith.addf %71, %72 : vector<128x128xf32>
    %cst_35 = arith.constant dense<0xFF800000> : vector<128xf32>
    %74 = vector.multi_reduction <maximumf>, %73, %cst_35 [1] : vector<128x128xf32> to vector<128xf32>
    %75 = vector.shape_cast %74 : vector<128xf32> to vector<128x1xf32>
    %76 = vector.broadcast %75 : vector<128x1xf32> to vector<128x128xf32>
    %77 = arith.subf %73, %76 : vector<128x128xf32>
    %78 = math.exp %77 : vector<128x128xf32>
    %cst_36 = arith.constant dense<0.000000e+00> : vector<128xf32>
    %79 = vector.multi_reduction <add>, %78, %cst_36 [1] : vector<128x128xf32> to vector<128xf32>
    %80 = vector.shape_cast %79 : vector<128xf32> to vector<128x1xf32>
    %81 = tpu.reciprocal %80 {approx = true} : vector<128x1xf32> -> vector<128x1xf32>
    %82 = vector.broadcast %81 : vector<128x1xf32> to vector<128x128xf32>
    %83 = arith.mulf %78, %82 : vector<128x128xf32>
    %84 = arith.truncf %83 : vector<128x128xf32> to vector<128x128xbf16>
    %cst_37 = arith.constant dense<0.000000e+00> : vector<128x128xf32>
    %85 = tpu.matmul %84, %68, %cst_37 {dimension_numbers = #tpu.dot_dimension_numbers<[1], [0], [0], [1], [0, 0, 1, 1], [], []>} : vector<128x128xbf16>, vector<128x128xbf16>, vector<128x128xf32> -> vector<128x128xf32>
    %c0_38 = arith.constant 0 : index
    %c0_39 = arith.constant 0 : index
    %86 = vector.load %arg12[%c0_38, %c0_39] : memref<128x128xf32, #tpu.memory_space<vmem>>, vector<128x128xf32>
    %87 = arith.addf %86, %85 : vector<128x128xf32>
    %c0_40 = arith.constant 0 : index
    %c0_41 = arith.constant 0 : index
    %88 = vector.load %arg12[%c0_40, %c0_41] : memref<128x128xf32, #tpu.memory_space<vmem>>, vector<128x128xf32>
    tpu.vector_store %arg12[%c0_40, %c0_41], %87 {strides = array<i32>} : memref<128x128xf32, #tpu.memory_space<vmem>>, vector<128x128xf32>,
    %c64_i32_42 = arith.constant 64 : i32
    %89 = vector.broadcast %c64_i32_42 : i32 to vector<1x128xi32>
    %90 = arith.cmpi sge, %24, %89 : vector<1x128xi32>
    %c96_i32 = arith.constant 96 : i32
    %91 = vector.broadcast %c96_i32 : i32 to vector<1x128xi32>
    %92 = arith.cmpi slt, %24, %91 : vector<1x128xi32>
    %93 = arith.andi %90, %92 : vector<1x128xi1>
    %cst_43 = arith.constant 0.000000e+00 : bf16
    %94 = vector.broadcast %cst_43 : bf16 to vector<128x128xbf16>
    %95 = vector.shape_cast %93 : vector<1x128xi1> to vector<1x128xi1>
    %96 = vector.broadcast %95 : vector<1x128xi1> to vector<128x128xi1>
    %97 = arith.select %96, %22, %94 : vector<128x128xi1>, vector<128x128xbf16>
    %cst_44 = arith.constant 0.000000e+00 : bf16
    %98 = vector.broadcast %cst_44 : bf16 to vector<128x128xbf16>
    %99 = vector.shape_cast %93 : vector<1x128xi1> to vector<1x128xi1>
    %100 = vector.broadcast %99 : vector<1x128xi1> to vector<128x128xi1>
    %101 = arith.select %100, %23, %98 : vector<128x128xi1>, vector<128x128xbf16>
    "tpu.trace_start"() <{level = 10 : i32, message = "nd,md->nm"}> : () -> ()
    %cst_45 = arith.constant dense<0.000000e+00> : vector<128x128xf32>
    %102 = tpu.matmul %21, %97, %cst_45 {dimension_numbers = #tpu.dot_dimension_numbers<[1], [1], [0], [0], [0, 0, 1, 0], [], []>} : vector<128x128xbf16>, vector<128x128xbf16>, vector<128x128xf32> -> vector<128x128xf32>
    "tpu.trace_stop"() : () -> ()
    %cst_46 = arith.constant 0.176776692 : f32
    %103 = vector.broadcast %cst_46 : f32 to vector<128x128xf32>
    %104 = arith.mulf %102, %103 : vector<128x128xf32>
    %c0_47 = arith.constant 0 : index
    %c0_48 = arith.constant 0 : index
    %105 = vector.load %arg2[%c0_47, %c0_48] : memref<128x128xf32, #tpu.memory_space<vmem>>, vector<128x128xf32>
    %106 = arith.addf %104, %105 : vector<128x128xf32>
    %cst_49 = arith.constant dense<0xFF800000> : vector<128xf32>
    %107 = vector.multi_reduction <maximumf>, %106, %cst_49 [1] : vector<128x128xf32> to vector<128xf32>
    %108 = vector.shape_cast %107 : vector<128xf32> to vector<128x1xf32>
    %109 = vector.broadcast %108 : vector<128x1xf32> to vector<128x128xf32>
    %110 = arith.subf %106, %109 : vector<128x128xf32>
    %111 = math.exp %110 : vector<128x128xf32>
    %cst_50 = arith.constant dense<0.000000e+00> : vector<128xf32>
    %112 = vector.multi_reduction <add>, %111, %cst_50 [1] : vector<128x128xf32> to vector<128xf32>
    %113 = vector.shape_cast %112 : vector<128xf32> to vector<128x1xf32>
    %114 = tpu.reciprocal %113 {approx = true} : vector<128x1xf32> -> vector<128x1xf32>
    %115 = vector.broadcast %114 : vector<128x1xf32> to vector<128x128xf32>
    %116 = arith.mulf %111, %115 : vector<128x128xf32>
    %117 = arith.truncf %116 : vector<128x128xf32> to vector<128x128xbf16>
    %cst_51 = arith.constant dense<0.000000e+00> : vector<128x128xf32>
    %118 = tpu.matmul %117, %101, %cst_51 {dimension_numbers = #tpu.dot_dimension_numbers<[1], [0], [0], [1], [0, 0, 1, 1], [], []>} : vector<128x128xbf16>, vector<128x128xbf16>, vector<128x128xf32> -> vector<128x128xf32>
    %c0_52 = arith.constant 0 : index
    %c0_53 = arith.constant 0 : index
    %119 = vector.load %arg12[%c0_52, %c0_53] : memref<128x128xf32, #tpu.memory_space<vmem>>, vector<128x128xf32>
    %120 = arith.addf %119, %118 : vector<128x128xf32>
    %c0_54 = arith.constant 0 : index
    %c0_55 = arith.constant 0 : index
    %121 = vector.load %arg12[%c0_54, %c0_55] : memref<128x128xf32, #tpu.memory_space<vmem>>, vector<128x128xf32>
    tpu.vector_store %arg12[%c0_54, %c0_55], %120 {strides = array<i32>} : memref<128x128xf32, #tpu.memory_space<vmem>>, vector<128x128xf32>,
    %c96_i32_56 = arith.constant 96 : i32
    %122 = vector.broadcast %c96_i32_56 : i32 to vector<1x128xi32>
    %123 = arith.cmpi sge, %24, %122 : vector<1x128xi32>
    %c128_i32 = arith.constant 128 : i32
    %124 = vector.broadcast %c128_i32 : i32 to vector<1x128xi32>
    %125 = arith.cmpi slt, %24, %124 : vector<1x128xi32>
    %126 = arith.andi %123, %125 : vector<1x128xi1>
    %cst_57 = arith.constant 0.000000e+00 : bf16
    %127 = vector.broadcast %cst_57 : bf16 to vector<128x128xbf16>
    %128 = vector.shape_cast %126 : vector<1x128xi1> to vector<1x128xi1>
    %129 = vector.broadcast %128 : vector<1x128xi1> to vector<128x128xi1>
    %130 = arith.select %129, %22, %127 : vector<128x128xi1>, vector<128x128xbf16>
    %cst_58 = arith.constant 0.000000e+00 : bf16
    %131 = vector.broadcast %cst_58 : bf16 to vector<128x128xbf16>
    %132 = vector.shape_cast %126 : vector<1x128xi1> to vector<1x128xi1>
    %133 = vector.broadcast %132 : vector<1x128xi1> to vector<128x128xi1>
    %134 = arith.select %133, %23, %131 : vector<128x128xi1>, vector<128x128xbf16>
    "tpu.trace_start"() <{level = 10 : i32, message = "nd,md->nm"}> : () -> ()
    %cst_59 = arith.constant dense<0.000000e+00> : vector<128x128xf32>
    %135 = tpu.matmul %21, %130, %cst_59 {dimension_numbers = #tpu.dot_dimension_numbers<[1], [1], [0], [0], [0, 0, 1, 0], [], []>} : vector<128x128xbf16>, vector<128x128xbf16>, vector<128x128xf32> -> vector<128x128xf32>
    "tpu.trace_stop"() : () -> ()
    %cst_60 = arith.constant 0.176776692 : f32
    %136 = vector.broadcast %cst_60 : f32 to vector<128x128xf32>
    %137 = arith.mulf %135, %136 : vector<128x128xf32>
    %c0_61 = arith.constant 0 : index
    %c0_62 = arith.constant 0 : index
    %138 = vector.load %arg2[%c0_61, %c0_62] : memref<128x128xf32, #tpu.memory_space<vmem>>, vector<128x128xf32>
    %139 = arith.addf %137, %138 : vector<128x128xf32>
    %cst_63 = arith.constant dense<0xFF800000> : vector<128xf32>
    %140 = vector.multi_reduction <maximumf>, %139, %cst_63 [1] : vector<128x128xf32> to vector<128xf32>
    %141 = vector.shape_cast %140 : vector<128xf32> to vector<128x1xf32>
    %142 = vector.broadcast %141 : vector<128x1xf32> to vector<128x128xf32>
    %143 = arith.subf %139, %142 : vector<128x128xf32>
    %144 = math.exp %143 : vector<128x128xf32>
    %cst_64 = arith.constant dense<0.000000e+00> : vector<128xf32>
    %145 = vector.multi_reduction <add>, %144, %cst_64 [1] : vector<128x128xf32> to vector<128xf32>
    %146 = vector.shape_cast %145 : vector<128xf32> to vector<128x1xf32>
    %147 = tpu.reciprocal %146 {approx = true} : vector<128x1xf32> -> vector<128x1xf32>
    %148 = vector.broadcast %147 : vector<128x1xf32> to vector<128x128xf32>
    %149 = arith.mulf %144, %148 : vector<128x128xf32>
    %150 = arith.truncf %149 : vector<128x128xf32> to vector<128x128xbf16>
    %cst_65 = arith.constant dense<0.000000e+00> : vector<128x128xf32>
    %151 = tpu.matmul %150, %134, %cst_65 {dimension_numbers = #tpu.dot_dimension_numbers<[1], [0], [0], [1], [0, 0, 1, 1], [], []>} : vector<128x128xbf16>, vector<128x128xbf16>, vector<128x128xf32> -> vector<128x128xf32>
    %c0_66 = arith.constant 0 : index
    %c0_67 = arith.constant 0 : index
    %152 = vector.load %arg12[%c0_66, %c0_67] : memref<128x128xf32, #tpu.memory_space<vmem>>, vector<128x128xf32>
    %153 = arith.addf %152, %151 : vector<128x128xf32>
    %c0_68 = arith.constant 0 : index
    %c0_69 = arith.constant 0 : index
    %154 = vector.load %arg12[%c0_68, %c0_69] : memref<128x128xf32, #tpu.memory_space<vmem>>, vector<128x128xf32>
    tpu.vector_store %arg12[%c0_68, %c0_69], %153 {strides = array<i32>} : memref<128x128xf32, #tpu.memory_space<vmem>>, vector<128x128xf32>,
    %c0_70 = arith.constant 0 : index
    %c0_71 = arith.constant 0 : index
    %155 = vector.load %arg12[%c0_70, %c0_71] : memref<128x128xf32, #tpu.memory_space<vmem>>, vector<128x128xf32>
    %156 = arith.truncf %155 : vector<128x128xf32> to vector<128x128xbf16>
    %c0_72 = arith.constant 0 : index
    %c0_73 = arith.constant 0 : index
    %157 = vector.load %arg6[%c0_72, %c0_73] : memref<128x128xbf16, #tpu.memory_space<vmem>>, vector<128x128xbf16>
    %cst_74 = arith.constant dense<0.000000e+00> : vector<128x128xf32>
    %158 = tpu.matmul %156, %157, %cst_74 {dimension_numbers = #tpu.dot_dimension_numbers<[1], [0], [0], [1], [0, 0, 1, 1], [], []>} : vector<128x128xbf16>, vector<128x128xbf16>, vector<128x128xf32> -> vector<128x128xf32>
    %159 = vector.broadcast %1 : vector<1x128xf32> to vector<128x128xf32>
    %160 = arith.addf %158, %159 : vector<128x128xf32>
    %161 = arith.addf %13, %160 : vector<128x128xf32>
    %cst_75 = arith.constant dense<0.000000e+00> : vector<128xf32>
    %162 = vector.multi_reduction <add>, %161, %cst_75 [1] : vector<128x128xf32> to vector<128xf32>
    %163 = vector.shape_cast %162 : vector<128xf32> to vector<128x1xf32>
    %cst_76 = arith.constant 1.280000e+02 : f32
    %164 = vector.broadcast %cst_76 : f32 to vector<128x1xf32>
    %165 = arith.divf %163, %164 : vector<128x1xf32>
    %166 = vector.broadcast %165 : vector<128x1xf32> to vector<128x128xf32>
    %167 = arith.subf %161, %166 : vector<128x128xf32>
    %168 = arith.mulf %167, %167 : vector<128x128xf32>
    %cst_77 = arith.constant dense<0.000000e+00> : vector<128xf32>
    %169 = vector.multi_reduction <add>, %168, %cst_77 [1] : vector<128x128xf32> to vector<128xf32>
    %170 = vector.shape_cast %169 : vector<128xf32> to vector<128x1xf32>
    %cst_78 = arith.constant 1.280000e+02 : f32
    %171 = vector.broadcast %cst_78 : f32 to vector<128x1xf32>
    %172 = arith.divf %170, %171 : vector<128x1xf32>
    %173 = vector.broadcast %165 : vector<128x1xf32> to vector<128x128xf32>
    %174 = arith.subf %161, %173 : vector<128x128xf32>
    %cst_79 = arith.constant 9.99999974E-6 : f32
    %175 = vector.broadcast %cst_79 : f32 to vector<128x1xf32>
    %176 = arith.addf %172, %175 : vector<128x1xf32>
    %177 = math.rsqrt %176 : vector<128x1xf32>
    %178 = vector.broadcast %177 : vector<128x1xf32> to vector<128x128xf32>
    %179 = arith.mulf %174, %178 : vector<128x128xf32>
    %180 = vector.broadcast %2 : vector<1x128xf32> to vector<128x128xf32>
    %181 = arith.mulf %179, %180 : vector<128x128xf32>
    %182 = vector.broadcast %3 : vector<1x128xf32> to vector<128x128xf32>
    %183 = arith.addf %181, %182 : vector<128x128xf32>
    %184 = arith.truncf %183 : vector<128x128xf32> to vector<128x128xbf16>
    %c0_80 = arith.constant 0 : index
    %c0_81 = arith.constant 0 : index
    %185 = vector.load %arg7[%c0_80, %c0_81] : memref<128x256xbf16, #tpu.memory_space<vmem>>, vector<128x256xbf16>
    %cst_82 = arith.constant dense<0.000000e+00> : vector<128x256xf32>
    %186 = tpu.matmul %184, %185, %cst_82 {dimension_numbers = #tpu.dot_dimension_numbers<[1], [0], [0], [1], [0, 0, 1, 1], [], []>} : vector<128x128xbf16>, vector<128x256xbf16>, vector<128x256xf32> -> vector<128x256xf32>
    %c0_83 = arith.constant 0 : index
    %c0_84 = arith.constant 0 : index
    %187 = vector.load %arg8[%c0_83, %c0_84] : memref<1x256xf32, #tpu.memory_space<vmem>>, vector<1x256xf32>
    %188 = vector.broadcast %187 : vector<1x256xf32> to vector<128x256xf32>
    %189 = arith.addf %186, %188 : vector<128x256xf32>
    %cst_85 = arith.constant 0.000000e+00 : f32
    %190 = vector.broadcast %cst_85 : f32 to vector<128x256xf32>
    %191 = arith.maximumf %189, %190 : vector<128x256xf32>
    %192 = arith.truncf %191 : vector<128x256xf32> to vector<128x256xbf16>
    %c0_86 = arith.constant 0 : index
    %c0_87 = arith.constant 0 : index
    %193 = vector.load %arg9[%c0_86, %c0_87] : memref<256x128xbf16, #tpu.memory_space<vmem>>, vector<256x128xbf16>
    %cst_88 = arith.constant dense<0.000000e+00> : vector<128x128xf32>
    %194 = tpu.matmul %192, %193, %cst_88 {dimension_numbers = #tpu.dot_dimension_numbers<[1], [0], [0], [1], [0, 0, 1, 1], [], []>} : vector<128x256xbf16>, vector<256x128xbf16>, vector<128x128xf32> -> vector<128x128xf32>
    %195 = vector.broadcast %4 : vector<1x128xf32> to vector<128x128xf32>
    %196 = arith.addf %194, %195 : vector<128x128xf32>
    %197 = arith.addf %183, %196 : vector<128x128xf32>
    %cst_89 = arith.constant dense<0.000000e+00> : vector<128xf32>
    %198 = vector.multi_reduction <add>, %197, %cst_89 [1] : vector<128x128xf32> to vector<128xf32>
    %199 = vector.shape_cast %198 : vector<128xf32> to vector<128x1xf32>
    %cst_90 = arith.constant 1.280000e+02 : f32
    %200 = vector.broadcast %cst_90 : f32 to vector<128x1xf32>
    %201 = arith.divf %199, %200 : vector<128x1xf32>
    %202 = vector.broadcast %201 : vector<128x1xf32> to vector<128x128xf32>
    %203 = arith.subf %197, %202 : vector<128x128xf32>
    %204 = arith.mulf %203, %203 : vector<128x128xf32>
    %cst_91 = arith.constant dense<0.000000e+00> : vector<128xf32>
    %205 = vector.multi_reduction <add>, %204, %cst_91 [1] : vector<128x128xf32> to vector<128xf32>
    %206 = vector.shape_cast %205 : vector<128xf32> to vector<128x1xf32>
    %cst_92 = arith.constant 1.280000e+02 : f32
    %207 = vector.broadcast %cst_92 : f32 to vector<128x1xf32>
    %208 = arith.divf %206, %207 : vector<128x1xf32>
    %209 = vector.broadcast %201 : vector<128x1xf32> to vector<128x128xf32>
    %210 = arith.subf %197, %209 : vector<128x128xf32>
    %cst_93 = arith.constant 9.99999974E-6 : f32
    %211 = vector.broadcast %cst_93 : f32 to vector<128x1xf32>
    %212 = arith.addf %208, %211 : vector<128x1xf32>
    %213 = math.rsqrt %212 : vector<128x1xf32>
    %214 = vector.broadcast %213 : vector<128x1xf32> to vector<128x128xf32>
    %215 = arith.mulf %210, %214 : vector<128x128xf32>
    %216 = vector.broadcast %5 : vector<1x128xf32> to vector<128x128xf32>
    %217 = arith.mulf %215, %216 : vector<128x128xf32>
    %218 = vector.broadcast %6 : vector<1x128xf32> to vector<128x128xf32>
    %219 = arith.addf %217, %218 : vector<128x128xf32>
    %220 = vector.shape_cast %219 : vector<128x128xf32> to vector<8x16x128xf32>
    %c0_94 = arith.constant 0 : index
    %c0_95 = arith.constant 0 : index
    %c0_96 = arith.constant 0 : index
    %221 = vector.load %arg11[%c0_94, %c0_95, %c0_96] : memref<8x16x128xf32, #tpu.memory_space<vmem>>, vector<8x16x128xf32>
    tpu.vector_store %arg11[%c0_94, %c0_95, %c0_96], %220 {strides = array<i32>} : memref<8x16x128xf32, #tpu.memory_space<vmem>>, vector<8x16x128xf32>,
    return
  }
  func.func @transform_0(%arg0: i32) -> (i32, i32, i32) {
    %c0_i32 = arith.constant 0 : i32
    %c0_i32_0 = arith.constant 0 : i32
    %c0_i32_1 = arith.constant 0 : i32
    return %c0_i32, %arg0, %c0_i32_0 : i32, i32, i32
  }
  func.func @transform_1(%arg0: i32) -> (i32, i32) {
    %c0_i32 = arith.constant 0 : i32
    %c0_i32_0 = arith.constant 0 : i32
    %c0_i32_1 = arith.constant 0 : i32
    return %c0_i32, %c0_i32_0 : i32, i32
  }
  func.func @transform_2(%arg0: i32) -> (i32, i32) {
    %c0_i32 = arith.constant 0 : i32
    %c0_i32_0 = arith.constant 0 : i32
    %c0_i32_1 = arith.constant 0 : i32
    return %c0_i32, %c0_i32_0 : i32, i32
  }
  func.func @transform_3(%arg0: i32) -> (i32, i32) {
    %c0_i32 = arith.constant 0 : i32
    %c0_i32_0 = arith.constant 0 : i32
    %c0_i32_1 = arith.constant 0 : i32
    return %c0_i32, %c0_i32_0 : i32, i32
  }
  func.func @transform_4(%arg0: i32) -> (i32, i32) {
    %c0_i32 = arith.constant 0 : i32
    %c0_i32_0 = arith.constant 0 : i32
    %c0_i32_1 = arith.constant 0 : i32
    return %c0_i32, %c0_i32_0 : i32, i32
  }
  func.func @transform_5(%arg0: i32) -> (i32, i32) {
    %c0_i32 = arith.constant 0 : i32
    %c0_i32_0 = arith.constant 0 : i32
    %c0_i32_1 = arith.constant 0 : i32
    return %c0_i32, %c0_i32_0 : i32, i32
  }
  func.func @transform_6(%arg0: i32) -> (i32, i32) {
    %c0_i32 = arith.constant 0 : i32
    %c0_i32_0 = arith.constant 0 : i32
    %c0_i32_1 = arith.constant 0 : i32
    return %c0_i32, %c0_i32_0 : i32, i32
  }
  func.func @transform_7(%arg0: i32) -> (i32, i32) {
    %c0_i32 = arith.constant 0 : i32
    %c0_i32_0 = arith.constant 0 : i32
    %c0_i32_1 = arith.constant 0 : i32
    return %c0_i32, %c0_i32_0 : i32, i32
  }
  func.func @transform_8(%arg0: i32) -> (i32, i32) {
    %c0_i32 = arith.constant 0 : i32
    %c0_i32_0 = arith.constant 0 : i32
    %c0_i32_1 = arith.constant 0 : i32
    return %c0_i32, %c0_i32_0 : i32, i32
  }
  func.func @transform_9(%arg0: i32) -> (i32, i32) {
    %c0_i32 = arith.constant 0 : i32
    %c0_i32_0 = arith.constant 0 : i32
    %c0_i32_1 = arith.constant 0 : i32
    return %c0_i32, %c0_i32_0 : i32, i32
  }
  func.func @transform_10(%arg0: i32) -> (i32, i32, i32) {
    %c0_i32 = arith.constant 0 : i32
    %c0_i32_0 = arith.constant 0 : i32
    %c0_i32_1 = arith.constant 0 : i32
    return %c0_i32, %arg0, %c0_i32_0 : i32, i32, i32
  }
}

</mosaic_0001>

<bundles_post_ra>
// kernel: trans_encoder_forward.1
= control target key start
LH: loop header
LB: loop body
LE: loop exit
PB: predicated region body
PF: predicated region fallthrough
CT: control target
= control target key end

     0   :  { %s7831_s0 = inlined_call_operand.vmem [shape: f32[8,32,16], index: 0, kind: input, shape index: {}]   ;;  %s7832_s1 = inlined_call_operand.vmem [shape: f32[128,128], index: 1, kind: input, shape index: {}]   ;;  %s7833_s2 = inlined_call_operand.vmem [shape: bf16[16,128], index: 2, kind: input, shape index: {}]   ;;  %s7834_s3 = inlined_call_operand.vmem [shape: bf16[128,384], index: 3, kind: input, shape index: {}]   ;;  %s7835_s4 = inlined_call_operand.vmem [shape: f32[1,384], index: 4, kind: input, shape index: {}]   ;;  %s7836_s5 = inlined_call_operand.vmem [shape: bf16[128,128], index: 5, kind: input, shape index: {}]   ;;  %s7837_s6 = inlined_call_operand.vmem [shape: bf16[128,256], index: 6, kind: input, shape index: {}]   ;;  %s7838_s7 = inlined_call_operand.vmem [shape: f32[1,256], index: 7, kind: input, shape index: {}]   ;;  %s7839_s8 = inlined_call_operand.vmem [shape: bf16[256,128], index: 8, kind: input, shape index: {}]   ;;  %s7840_s9 = inlined_call_operand.vmem [shape: f32[8,128], index: 9, kind: input, shape index: {}]   ;;  %s7841_s10 = inlined_call_operand.hbm [shape: f32[8,32,128], index: 10, kind: output, shape index: {}]  }
   0x1   :  { %7888 = sst [smem:[#allocation39_spill]] %s7831_s0 }
   0x2   :  { %15 = vsyncpa [#allocation5], 0 }
   0x3   :  { %17 = vsyncpa [#allocation5 + $0x1], 0  ;;  %s5230_s13 = smov 0   ;;  %s5232_s14 = smov 0  }
   0x4   :  { %s5234_s15 = smov 0   ;;  %s5236_s16 = smov 0  }
   0x5 LB: > { %s7842_s17 = sadd.s32 4294967295, %s5165_s16   ;;  %s4387_s18 = sadd.s32 4294967294, %s5165_s16   ;;  %s5165_s16 = sphi %s5236_s16, %s7990_s16   ;;  %s5161_s15 = sphi %s5234_s15, %s7989_s15   ;;  %s5157_s14 = sphi %s5232_s14, %s7988_s14   ;;  %s5153_s13 = sphi %s5230_s13, %s7987_s13  }
   0x6   : > { %s5253_s19 = sadd.s32 1, %s5165_s16   ;;  %s30_s20 = sadd.s32 1, %s5161_s15 }
   0x7   : > { %s27_s21 = ssub.s32 %s5165_s16, %s5253_s19  ;;  %p37_p0 = scmp.ne.s32.totalorder %s5161_s15, %s5157_s14 }
   0x8   : > { %p28_p1 = scmp.eq.s32.totalorder %s27_s21, 0  ;;  %p38_p2 = scmp.eq.s32.totalorder %s5165_s16, 0 }
   0x9   : > { %p256_p3 = scmp.eq.s32.totalorder %s7842_s17, 1  ;;  %p261_p4 = scmp.ne.s32.totalorder %s5157_s14, %s5153_s13 }
   0xa   : > { %s5266_s22 = scalar_select %p28_p1, %s5161_s15, %s30_s20  }
   0xb   : > { %p39_p5 = por %p38_p2, %p37_p0  ;;  %p5268_p6 = por %p256_p3, %p37_p0 }
   0xc   : > { %p262_p7 = scmp.eq.s32.totalorder %s4387_s18, 1  ;;  %p4389_p9 = scmp.ge.s32.totalorder %s5165_s16, 2 }
   0xe   : > { %p5272_p8 = por %p262_p7, %p261_p4  ;;  %305 = sbr.rel (%p4389_p9) target bundleno = 45 (0x2d), region = 52 }
  0x13   : > { %308 = sbr.rel (!%p39_p5) target bundleno = 45 (0x2d), region = 56  ;;  %s310_s25 = sand.u32 (%p39_p5), 1, %s5161_s15  }
  0x14   : > { %s4669_s26 = sshll.u32 (%p39_p5), %s5165_s16, 4  ;;  %s4390_s27 = sshll.u32 (%p39_p5), %s310_s25, 7 }
  0x15   : > { %s7891_s0 = sld [smem:[#allocation39_spill]] (%p39_p5)  ;;  %s312_s11 = scalar_lea.vmem (%p39_p5), [#allocation3], %s4390_s27 }
  0x1b   : > { %s5284_s30 = scalar_lea.vmem %s7891_s0, %s4669_s26 }
  0x1c   : > { %v374_v0 = vld [vmem:[%s5284_s30] sm:$0xff]  ;;  %v376_v1 = vld [vmem:[%s5284_s30 + $0x8] sm:$0xff] }
  0x1d   : > { %v378_v2 = vld [vmem:[%s5284_s30 + $0x20] sm:$0xff]  ;;  %375 = vst [vmem:[%s312_s11] sm:$0xff] %v374_v0  ;;  %v380_v3 = vld [vmem:[%s5284_s30 + $0x28] sm:$0xff] }
  0x1e   : > { %377 = vst [vmem:[%s312_s11 + $0x8] sm:$0xff] %v376_v1  ;;  %v382_v4 = vld [vmem:[%s5284_s30 + $0x40] sm:$0xff]  ;;  %v384_v5 = vld [vmem:[%s5284_s30 + $0x48] sm:$0xff] }
  0x1f   : > { %379 = vst [vmem:[%s312_s11 + $0x10] sm:$0xff] %v378_v2  ;;  %v386_v6 = vld [vmem:[%s5284_s30 + $0x60] sm:$0xff]  ;;  %v388_v7 = vld [vmem:[%s5284_s30 + $0x68] sm:$0xff] }
  0x20   : > { %381 = vst [vmem:[%s312_s11 + $0x18] sm:$0xff] %v380_v3  ;;  %v390_v8 = vld [vmem:[%s5284_s30 + $0x80] sm:$0xff]  ;;  %v392_v9 = vld [vmem:[%s5284_s30 + $0x88] sm:$0xff] }
  0x21   : > { %383 = vst [vmem:[%s312_s11 + $0x20] sm:$0xff] %v382_v4  ;;  %v394_v10 = vld [vmem:[%s5284_s30 + $0xa0] sm:$0xff]  ;;  %v396_v11 = vld [vmem:[%s5284_s30 + $0xa8] sm:$0xff] }
  0x22   : > { %385 = vst [vmem:[%s312_s11 + $0x28] sm:$0xff] %v384_v5  ;;  %v398_v12 = vld [vmem:[%s5284_s30 + $0xc0] sm:$0xff]  ;;  %v400_v13 = vld [vmem:[%s5284_s30 + $0xc8] sm:$0xff] }
  0x23   : > { %387 = vst [vmem:[%s312_s11 + $0x30] sm:$0xff] %v386_v6  ;;  %v402_v14 = vld [vmem:[%s5284_s30 + $0xe0] sm:$0xff]  ;;  %v404_v15 = vld [vmem:[%s5284_s30 + $0xe8] sm:$0xff] }
  0x24   : > { %389 = vst [vmem:[%s312_s11 + $0x38] sm:$0xff] %v388_v7 }
  0x25   : > { %391 = vst [vmem:[%s312_s11 + $0x40] sm:$0xff] %v390_v8 }
  0x26   : > { %393 = vst [vmem:[%s312_s11 + $0x48] sm:$0xff] %v392_v9 }
  0x27   : > { %395 = vst [vmem:[%s312_s11 + $0x50] sm:$0xff] %v394_v10 }
  0x28   : > { %397 = vst [vmem:[%s312_s11 + $0x58] sm:$0xff] %v396_v11 }
  0x29   : > { %399 = vst [vmem:[%s312_s11 + $0x60] sm:$0xff] %v398_v12 }
  0x2a   : > { %401 = vst [vmem:[%s312_s11 + $0x68] sm:$0xff] %v400_v13 }
  0x2b   : > { %403 = vst [vmem:[%s312_s11 + $0x70] sm:$0xff] %v402_v14 }
  0x2c   : > { %405 = vst [vmem:[%s312_s11 + $0x78] sm:$0xff] %v404_v15 }
  0x2d PF: > { %p4393_p10 = scmp.ge.s32.totalorder %s5165_s16, 1  ;;  %p410_p11 = scmp.lt.s32.totalorder %s5165_s16, 3 }
  0x2f   : > { %p411_p12 = pnand %p4393_p10, %p410_p11 }
  0x31   : > { %414 = sbr.rel (%p411_p12) target bundleno = 2437 (0x985), region = 94 }
  0x36   : > { %v4670_v16 = vld [vmem:[%s7833_s2] sm:$0xff]  ;;  %s7843_s20 = sand.u32 1, %s5157_s14   ;;  %vm497_vm0 = vcmask 130048   ;;  %v4494_v29 = vld [vmem:[%s7834_s3 + $0xa8] sm:$0xf] }
  0x37   : > { %s5310_s21 = sshll.u32 %s7843_s20, 7  ;;  %529 = vmatpush.bf16.msra.mxu0 %v4670_v16  ;;  %4736 = vmatpush.bf16.msra.mxu1 %v4670_v16  ;;  %v4693_v30 = vld [vmem:[%s7834_s3 + $0xb0] sm:$0xf0]  ;;  %v4692_v31 = vld [vmem:[%s7834_s3 + $0xac] sm:$0xf] }
  0x38   : > { %s5313_s25 = scalar_lea.vmem [#allocation3], %s5310_s21  ;;  %4737 = vmatpush.bf16.msra.mxu3 %v4670_v16  ;;  %v4496_v32 = vld [vmem:[%s7834_s3 + $0xb4] sm:$0xf0]  ;;  %v4495_v33 = vor.u32 %v4693_v30, %v4494_v29  ;;  %v4502_v35 = vld [vmem:[%s7834_s3 + $0xb0] sm:$0xf]  ;;  %s7693_s27 = scalar_lea.vmem [#allocation4], %s5310_s21 }
  0x39   : > { %v464_v17 = vld [vmem:[%s5313_s25] sm:$0xff]  ;;  %v465_v18 = vld [vmem:[%s5313_s25 + $0x8] sm:$0xff]  ;;  %v466_v20 = vld [vmem:[%s5313_s25 + $0x10] sm:$0xff]  ;;  %v4499_v34 = vor.u32 %v4692_v31, %v4496_v32  ;;  %s7985_s21 = sand.u32 1, %s5157_s14  }
  0x3a   : > { %v480_v19 = vpack.c.bf16 %v465_v18, %v464_v17  ;;  %v467_v21 = vld [vmem:[%s5313_s25 + $0x18] sm:$0xff]  ;;  %v472_v23 = vld [vmem:[%s5313_s25 + $0x40] sm:$0xff]  ;;  %v473_v24 = vld [vmem:[%s5313_s25 + $0x48] sm:$0xff]  ;;  %s4281_s28 = scalar_lea.sflag [#allocation5], %s7985_s21 }
  0x3b   : > { %v481_v22 = vpack.c.bf16 %v467_v21, %v466_v20  ;;  %v484_v25 = vpack.c.bf16 %v473_v24, %v472_v23  ;;  %v476_v26 = vld [vmem:[%s5313_s25 + $0x60] sm:$0xff]  ;;  %v477_v27 = vld [vmem:[%s5313_s25 + $0x68] sm:$0xff]  ;;  %v4694_v36 = vld [vmem:[%s7834_s3 + $0xb8] sm:$0xf0]  ;;  %747 = vmatpush.bf16.msrb.mxu1 %v4495_v33  ;;  %796 = vmatpush.bf16.msra.mxu2 %v4499_v34 }
  0x3c   : > { %4400 = vmatmul.msk.bf16.vlgmr.msra.gmra.mxu0 %vm497_vm0, %v480_v19  ;;  %v486_v28 = vpack.c.bf16 %v477_v27, %v476_v26  ;;  %v4482_v37 = vld [vmem:[%s7834_s3 + $0x90] sm:$0xf]  ;;  %v4503_v38 = vor.u32 %v4694_v36, %v4502_v35  ;;  %v4690_v39 = vld [vmem:[%s7834_s3 + $0x98] sm:$0xf0]  ;;  %v4689_v40 = vld [vmem:[%s7834_s3 + $0x94] sm:$0xf] }
  0x3d   : > { %4404 = vmatmul.msk.bf16.vlgmr.msra.gmra.mxu1 %vm497_vm0, %v484_v25  ;;  %v4484_v41 = vld [vmem:[%s7834_s3 + $0x9c] sm:$0xf0]  ;;  %v4483_v42 = vor.u32 %v4690_v39, %v4482_v37  ;;  %v4490_v44 = vld [vmem:[%s7834_s3 + $0x98] sm:$0xf]  ;;  %v4691_v45 = vld [vmem:[%s7834_s3 + $0xa0] sm:$0xf0] }
  0x3e   : > { %4406 = vmatmul.msk.bf16.vlgmr.msra.gmra.mxu3 %vm497_vm0, %v486_v28  ;;  %v4487_v43 = vor.u32 %v4689_v40, %v4484_v41  ;;  %v4470_v46 = vld [vmem:[%s7834_s3 + $0x78] sm:$0xf]  ;;  %v4491_v47 = vor.u32 %v4691_v45, %v4490_v44  ;;  %v4687_v48 = vld [vmem:[%s7834_s3 + $0x80] sm:$0xf0]  ;;  %v4686_v49 = vld [vmem:[%s7834_s3 + $0x7c] sm:$0xf] }
  0x3f   : > { %845 = vmatpush.bf16.msrb.mxu3 %v4503_v38  ;;  %v4472_v50 = vld [vmem:[%s7834_s3 + $0x84] sm:$0xf0]  ;;  %v4478_v51 = vld [vmem:[%s7834_s3 + $0x80] sm:$0xf]  ;;  %v4688_v52 = vld [vmem:[%s7834_s3 + $0x88] sm:$0xf0]  ;;  %748 = vmatpush.bf16.msrb.mxu1 %v4483_v42  ;;  %v4471_v56 = vor.u32 %v4687_v48, %v4470_v46 }
  0x40   : > { %v468_v53 = vld [vmem:[%s5313_s25 + $0x20] sm:$0xff]  ;;  %v469_v54 = vld [vmem:[%s5313_s25 + $0x28] sm:$0xff]  ;;  %v474_v55 = vld [vmem:[%s5313_s25 + $0x50] sm:$0xff]  ;;  %797 = vmatpush.bf16.msra.mxu2 %v4487_v43  ;;  %v4475_v57 = vor.u32 %v4686_v49, %v4472_v50  ;;  %v4479_v59 = vor.u32 %v4688_v52, %v4478_v51 }
  0x41   : > { %v4458_v58 = vld [vmem:[%s7834_s3 + $0x60] sm:$0xf]  ;;  %v4684_v60 = vld [vmem:[%s7834_s3 + $0x68] sm:$0xf0]  ;;  %v4683_v61 = vld [vmem:[%s7834_s3 + $0x64] sm:$0xf]  ;;  %v482_v63 = vpack.c.bf16 %v469_v54, %v468_v53 }
  0x42   : > { %v4460_v62 = vld [vmem:[%s7834_s3 + $0x6c] sm:$0xf0]  ;;  %v475_v0 = vld [vmem:[%s5313_s25 + $0x58] sm:$0xff]  ;;  %v4466_v1 = vld [vmem:[%s7834_s3 + $0x68] sm:$0xf]  ;;  %v4459_v5 = vor.u32 %v4684_v60, %v4458_v58 }
  0x43   : > { %846 = vmatpush.bf16.msrb.mxu3 %v4491_v47  ;;  %v4685_v2 = vld [vmem:[%s7834_s3 + $0x70] sm:$0xf0]  ;;  %v479_v4 = vld [vmem:[%s5313_s25 + $0x78] sm:$0xff]  ;;  %749 = vmatpush.bf16.msrb.mxu1 %v4471_v56  ;;  %v4463_v6 = vor.u32 %v4683_v61, %v4460_v62  ;;  %v4446_v7 = vld [vmem:[%s7834_s3 + $0x48] sm:$0xf]  ;;  %v485_v8 = vpack.c.bf16 %v475_v0, %v474_v55 }
  0x44   : > { %v478_v3 = vld [vmem:[%s5313_s25 + $0x70] sm:$0xff]  ;;  %798 = vmatpush.bf16.msra.mxu2 %v4475_v57  ;;  %v4467_v9 = vor.u32 %v4685_v2, %v4466_v1  ;;  %v4680_v11 = vld [vmem:[%s7834_s3 + $0x4c] sm:$0xf]  ;;  %v4448_v12 = vld [vmem:[%s7834_s3 + $0x54] sm:$0xf0] }
  0x45   : > { %v4681_v10 = vld [vmem:[%s7834_s3 + $0x50] sm:$0xf0]  ;;  %v487_v13 = vpack.c.bf16 %v479_v4, %v478_v3  ;;  %v4454_v14 = vld [vmem:[%s7834_s3 + $0x50] sm:$0xf]  ;;  %v4682_v15 = vld [vmem:[%s7834_s3 + $0x58] sm:$0xf0]  ;;  %v4451_v17 = vor.u32 %v4680_v11, %v4448_v12 }
  0x46   : > { %v4447_v16 = vor.u32 %v4681_v10, %v4446_v7  ;;  %v4455_v18 = vor.u32 %v4682_v15, %v4454_v14  ;;  %v470_v19 = vld [vmem:[%s5313_s25 + $0x30] sm:$0xff]  ;;  %v471_v20 = vld [vmem:[%s5313_s25 + $0x38] sm:$0xff]  ;;  %v4436_v26 = vld [vmem:[%s7834_s3 + $0x3c] sm:$0xf0] }
  0x47   : > { %847 = vmatpush.bf16.msrb.mxu3 %v4479_v59  ;;  %750 = vmatpush.bf16.msrb.mxu1 %v4459_v5  ;;  %v483_v21 = vpack.c.bf16 %v471_v20, %v470_v19  ;;  %v4678_v23 = vld [vmem:[%s7834_s3 + $0x38] sm:$0xf0]  ;;  %v4677_v24 = vld [vmem:[%s7834_s3 + $0x34] sm:$0xf]  ;;  %v4442_v27 = vld [vmem:[%s7834_s3 + $0x38] sm:$0xf] }
  0x48   : > { %799 = vmatpush.bf16.msra.mxu2 %v4463_v6  ;;  %v4679_v28 = vld [vmem:[%s7834_s3 + $0x40] sm:$0xf0]  ;;  %v4439_v29 = vor.u32 %v4677_v24, %v4436_v26  ;;  %v4422_v31 = vld [vmem:[%s7834_s3 + $0x18] sm:$0xf]  ;;  %v4674_v33 = vld [vmem:[%s7834_s3 + $0x1c] sm:$0xf] }
  0x49   : > { %v4443_v30 = vor.u32 %v4679_v28, %v4442_v27  ;;  %v4675_v32 = vld [vmem:[%s7834_s3 + $0x20] sm:$0xf0]  ;;  %v4424_v35 = vld [vmem:[%s7834_s3 + $0x24] sm:$0xf0]  ;;  %v4430_v36 = vld [vmem:[%s7834_s3 + $0x20] sm:$0xf] }
  0x4a   : > { %v4423_v34 = vor.u32 %v4675_v32, %v4422_v31  ;;  %v4676_v37 = vld [vmem:[%s7834_s3 + $0x28] sm:$0xf0]  ;;  %v4427_v38 = vor.u32 %v4674_v33, %v4424_v35  ;;  %v4410_v40 = vld [vmem:[%s7834_s3] sm:$0xf]  ;;  %v4671_v42 = vld [vmem:[%s7834_s3 + $0x4] sm:$0xf] }
  0x4b   : > { %848 = vmatpush.bf16.msrb.mxu3 %v4467_v9  ;;  %751 = vmatpush.bf16.msrb.mxu1 %v4447_v16  ;;  %v4431_v39 = vor.u32 %v4676_v37, %v4430_v36  ;;  %v4672_v41 = vld [vmem:[%s7834_s3 + $0x8] sm:$0xf0]  ;;  %v4412_v44 = vld [vmem:[%s7834_s3 + $0xc] sm:$0xf0]  ;;  %v4418_v45 = vld [vmem:[%s7834_s3 + $0x8] sm:$0xf] }
  0x4c   : > { %4401 = vmatmul.msk.bf16.gmra.mxu0 %vm497_vm0, %v481_v22  ;;  %800 = vmatpush.bf16.msra.mxu2 %v4451_v17  ;;  %v4434_v22 = vld [vmem:[%s7834_s3 + $0x30] sm:$0xf]  ;;  %v4411_v43 = vor.u32 %v4672_v41, %v4410_v40  ;;  %v4673_v46 = vld [vmem:[%s7834_s3 + $0x10] sm:$0xf0]  ;;  %v4415_v47 = vor.u32 %v4671_v42, %v4412_v44  ;;  %v4799_v50 = vld [vmem:[%s7840_s9] ss:$0 sm:$0xff] }
  0x4d   : > { %4405 = vmatmul.msk.bf16.gmra.mxu1 %vm497_vm0, %v485_v8  ;;  %v4435_v25 = vor.u32 %v4678_v23, %v4434_v22  ;;  %v4419_v48 = vor.u32 %v4673_v46, %v4418_v45  ;;  %v5537_v26 = vld [vmem:[%s7835_s4] sm:$0x7] }
  0x4e   : > { %4407 = vmatmul.msk.bf16.gmra.mxu3 %vm497_vm0, %v487_v13  ;;  %v5540_v28 = vperm.slane %v5537_v26, 0 }
  0x4f   : > { %849 = vmatpush.bf16.msrb.mxu3 %v4455_v18  ;;  %752 = vmatpush.bf16.msrb.mxu1 %v4435_v25 }
  0x50   : > { %801 = vmatpush.bf16.msra.mxu2 %v4439_v29  ;;  %v5543_v29 = vperm.slane %v5537_v26, 1 }
  0x53   : > { %850 = vmatpush.bf16.msrb.mxu3 %v4443_v30  ;;  %753 = vmatpush.bf16.msrb.mxu1 %v4423_v34 }
  0x54   : > { %802 = vmatpush.bf16.msra.mxu2 %v4427_v38 }
  0x57   : > { %851 = vmatpush.bf16.msrb.mxu3 %v4431_v39  ;;  %754 = vmatpush.bf16.msrb.mxu1 %v4411_v43 }
  0x58   : > { %803 = vmatpush.bf16.msra.mxu2 %v4415_v47 }
  0x5b   : > { %852 = vmatpush.bf16.msrb.mxu3 %v4419_v48 }
  0x5c   : > { %4402 = vmatmul.msk.bf16.gmra.mxu0 %vm497_vm0, %v482_v63 }
  0x6c   : > { %4403 = vmatmul.msk.bf16.gmra.mxu0 %vm497_vm0, %v483_v21 }
  0xb9   : > { %v531_v49 = vpop.f32.mrf.mxu0 }
  0xba   : > { %v5486_v52 = vadd.f32 %v4799_v50, %v531_v49  ;;  %v551_v2 = vpop.f32.mrf.mxu1 }
  0xbb   : > { %v5510_v8 = vadd.f32 %v4799_v50, %v551_v2 }
  0xbc   : > { %7892 = vst [vmem:[#allocation9_spill] sm:$0xff] %v5486_v52 }
  0xbd   : > { %7900 = vst [vmem:[#allocation17_spill] sm:$0xff] %v5510_v8 }
  0xc1   : > { %v533_v51 = vpop.f32.mrf.mxu0  ;;  %v561_v13 = vpop.f32.mrf.mxu3 }
  0xc2   : > { %v5488_v53 = vadd.f32 %v4799_v50, %v533_v51  ;;  %v553_v7 = vpop.f32.mrf.mxu1  ;;  %v5522_v18 = vadd.f32 %v4799_v50, %v561_v13 }
  0xc3   : > { %v5512_v9 = vadd.f32 %v4799_v50, %v553_v7 }
  0xc4   : > { %7893 = vst [vmem:[#allocation10_spill] sm:$0xff] %v5488_v53  ;;  %v571_v54 = vpack.c.bf16 %v5488_v53, %v5486_v52 }
  0xc5   : > { %7901 = vst [vmem:[#allocation18_spill] sm:$0xff] %v5512_v9  ;;  %v575_v11 = vpack.c.bf16 %v5512_v9, %v5510_v8 }
  0xc6   : > { %755 = vmatmul.bf16.vlgmr.msrb.gmra.mxu1 %v571_v54  ;;  %804 = vmatmul.bf16.vlgmr.msra.gmra.mxu2 %v571_v54  ;;  %7904 = vst [vmem:[#allocation21_spill] sm:$0xff] %v5522_v18 }
  0xc7   : > { %853 = vmatmul.bf16.vlgmr.msrb.gmra.mxu3 %v571_v54 }
  0xc9   : > { %v536_v55 = vpop.f32.mrf.mxu0  ;;  %v563_v17 = vpop.f32.mrf.mxu3 }
  0xca   : > { %v5492_v57 = vadd.f32 %v4799_v50, %v536_v55  ;;  %v556_v10 = vpop.f32.mrf.mxu1  ;;  %v5524_v19 = vadd.f32 %v4799_v50, %v563_v17 }
  0xcb   : > { %v5516_v14 = vadd.f32 %v4799_v50, %v556_v10 }
  0xcc   : > { %7894 = vst [vmem:[#allocation11_spill] sm:$0xff] %v5492_v57  ;;  %v577_v21 = vpack.c.bf16 %v5524_v19, %v5522_v18 }
  0xcd   : > { %7902 = vst [vmem:[#allocation19_spill] sm:$0xff] %v5516_v14 }
  0xce   : > { %7905 = vst [vmem:[#allocation22_spill] sm:$0xff] %v5524_v19 }
  0xd1   : > { %v538_v56 = vpop.f32.mrf.mxu0  ;;  %v566_v20 = vpop.f32.mrf.mxu3 }
  0xd2   : > { %v5494_v58 = vadd.f32 %v4799_v50, %v538_v56  ;;  %v558_v12 = vpop.f32.mrf.mxu1  ;;  %v5528_v23 = vadd.f32 %v4799_v50, %v566_v20 }
  0xd3   : > { %v5518_v15 = vadd.f32 %v4799_v50, %v558_v12 }
  0xd4   : > { %7895 = vst [vmem:[#allocation12_spill] sm:$0xff] %v5494_v58  ;;  %v572_v59 = vpack.c.bf16 %v5494_v58, %v5492_v57 }
  0xd5   : > { %7903 = vst [vmem:[#allocation20_spill] sm:$0xff] %v5518_v15  ;;  %v576_v16 = vpack.c.bf16 %v5518_v15, %v5516_v14 }
  0xd6   : > { %760 = vmatmul.bf16.gmra.mxu1 %v572_v59  ;;  %809 = vmatmul.bf16.gmra.mxu2 %v572_v59  ;;  %7906 = vst [vmem:[#allocation23_spill] sm:$0xff] %v5528_v23 }
  0xd7   : > { %858 = vmatmul.bf16.gmra.mxu3 %v572_v59 }
  0xd9   : > { %v541_v60 = vpop.f32.mrf.mxu0  ;;  %v568_v22 = vpop.f32.mrf.mxu3 }
  0xda   : > { %v5498_v62 = vadd.f32 %v4799_v50, %v541_v60  ;;  %v5530_v24 = vadd.f32 %v4799_v50, %v568_v22 }
  0xdc   : > { %7896 = vst [vmem:[#allocation13_spill] sm:$0xff] %v5498_v62  ;;  %v578_v25 = vpack.c.bf16 %v5530_v24, %v5528_v23 }
  0xdd   : > { %7907 = vst [vmem:[#allocation24_spill] sm:$0xff] %v5530_v24 }
  0xe1   : > { %v543_v61 = vpop.f32.mrf.mxu0 }
  0xe2   : > { %v5500_v63 = vadd.f32 %v4799_v50, %v543_v61 }
  0xe4   : > { %7897 = vst [vmem:[#allocation14_spill] sm:$0xff] %v5500_v63  ;;  %v573_v0 = vpack.c.bf16 %v5500_v63, %v5498_v62 }
  0xe6   : > { %765 = vmatmul.bf16.gmra.mxu1 %v573_v0  ;;  %814 = vmatmul.bf16.gmra.mxu2 %v573_v0 }
  0xe7   : > { %863 = vmatmul.bf16.gmra.mxu3 %v573_v0 }
  0xe9   : > { %v546_v1 = vpop.f32.mrf.mxu0 }
  0xea   : > { %v5504_v4 = vadd.f32 %v4799_v50, %v546_v1 }
  0xec   : > { %7898 = vst [vmem:[#allocation15_spill] sm:$0xff] %v5504_v4 }
  0xf1   : > { %v548_v3 = vpop.f32.mrf.mxu0 }
  0xf2   : > { %v5506_v5 = vadd.f32 %v4799_v50, %v548_v3 }
  0xf4   : > { %7899 = vst [vmem:[#allocation16_spill] sm:$0xff] %v5506_v5  ;;  %v574_v6 = vpack.c.bf16 %v5506_v5, %v5504_v4 }
  0xf6   : > { %770 = vmatmul.bf16.gmra.mxu1 %v574_v6  ;;  %819 = vmatmul.bf16.gmra.mxu2 %v574_v6 }
  0xf7   : > { %868 = vmatmul.bf16.gmra.mxu3 %v574_v6 }
 0x106   : > { %775 = vmatmul.bf16.gmra.mxu1 %v575_v11  ;;  %824 = vmatmul.bf16.gmra.mxu2 %v575_v11 }
 0x107   : > { %873 = vmatmul.bf16.gmra.mxu3 %v575_v11 }
 0x116   : > { %780 = vmatmul.bf16.gmra.mxu1 %v576_v16  ;;  %829 = vmatmul.bf16.gmra.mxu2 %v576_v16 }
 0x117   : > { %878 = vmatmul.bf16.gmra.mxu3 %v576_v16 }
 0x126   : > { %785 = vmatmul.bf16.gmra.mxu1 %v577_v21  ;;  %834 = vmatmul.bf16.gmra.mxu2 %v577_v21 }
 0x127   : > { %883 = vmatmul.bf16.gmra.mxu3 %v577_v21 }
 0x136   : > { %790 = vmatmul.bf16.gmra.mxu1 %v578_v25  ;;  %839 = vmatmul.bf16.gmra.mxu2 %v578_v25 }
 0x137   : > { %888 = vmatmul.bf16.gmra.mxu3 %v578_v25 }
 0x143   : > { %v756_v27 = vpop.f32.mrf.mxu1 }
 0x144   : > { %v757_v31 = vadd.f32 %v756_v27, %v5540_v28 }
 0x149   : > { %v805_v30 = vpop.f32.mrf.mxu2 }
 0x14a   : > { %v806_v32 = vadd.f32 %v805_v30, %v5543_v29  ;;  %v5547_v33 = vpop.f32.mrf.mxu3 }
 0x14b   : > { %v5549_v34 = vpop.f32.mrf.mxu1 }
 0x14c   : > { %v5551_v35 = vpack.c.bf16 %v806_v32, %v757_v31 }
 0x14e   : > { %7908 = vst [vmem:[#allocation25_spill] sm:$0xff] %v5551_v35 }
 0x151   : > { %v5553_v36 = vpop.f32.mrf.mxu2 }
 0x152   : > { %v5555_v37 = vpop.f32.mrf.mxu3 }
 0x153   : > { %v761_v38 = vpop.f32.mrf.mxu1 }
 0x154   : > { %v762_v40 = vadd.f32 %v761_v38, %v5540_v28 }
 0x159   : > { %v810_v39 = vpop.f32.mrf.mxu2 }
 0x15a   : > { %v811_v41 = vadd.f32 %v810_v39, %v5543_v29  ;;  %v5559_v42 = vpop.f32.mrf.mxu3 }
 0x15b   : > { %v5561_v43 = vpop.f32.mrf.mxu1 }
 0x15c   : > { %v5563_v44 = vpack.c.bf16 %v811_v41, %v762_v40 }
 0x15e   : > { %7909 = vst [vmem:[#allocation26_spill] sm:$0xff] %v5563_v44 }
 0x161   : > { %v5565_v45 = vpop.f32.mrf.mxu2 }
 0x162   : > { %v5567_v46 = vpop.f32.mrf.mxu3 }
 0x163   : > { %v766_v47 = vpop.f32.mrf.mxu1 }
 0x164   : > { %v767_v49 = vadd.f32 %v766_v47, %v5540_v28 }
 0x169   : > { %v815_v48 = vpop.f32.mrf.mxu2 }
 0x16a   : > { %v816_v50 = vadd.f32 %v815_v48, %v5543_v29  ;;  %v5571_v51 = vpop.f32.mrf.mxu3 }
 0x16b   : > { %v5573_v54 = vpop.f32.mrf.mxu1 }
 0x16c   : > { %v5575_v55 = vpack.c.bf16 %v816_v50, %v767_v49 }
 0x16e   : > { %7910 = vst [vmem:[#allocation27_spill] sm:$0xff] %v5575_v55 }
 0x171   : > { %v5577_v56 = vpop.f32.mrf.mxu2 }
 0x172   : > { %v5579_v59 = vpop.f32.mrf.mxu3 }
 0x173   : > { %v771_v60 = vpop.f32.mrf.mxu1 }
 0x174   : > { %v772_v0 = vadd.f32 %v771_v60, %v5540_v28 }
 0x179   : > { %v820_v61 = vpop.f32.mrf.mxu2 }
 0x17a   : > { %v821_v1 = vadd.f32 %v820_v61, %v5543_v29  ;;  %v5583_v2 = vpop.f32.mrf.mxu3 }
 0x17b   : > { %v773_v3 = vpop.f32.mrf.mxu1 }
 0x17c   : > { %v5585_v6 = vpack.c.bf16 %v821_v1, %v772_v0  ;;  %v774_v12 = vadd.f32 %v773_v3, %v5540_v28 }
 0x17e   : > { %v1020_v27 = vunpack.c.l.b16 %v5585_v6 }
 0x181   : > { %v822_v7 = vpop.f32.mrf.mxu2 }
 0x182   : > { %v823_v10 = vadd.f32 %v822_v7, %v5543_v29  ;;  %v5588_v11 = vpop.f32.mrf.mxu3 }
 0x183   : > { %v776_v13 = vpop.f32.mrf.mxu1 }
 0x184   : > { %v5591_v16 = vpack.c.bf16 %v823_v10, %v774_v12  ;;  %v777_v21 = vadd.f32 %v776_v13, %v5540_v28 }
 0x186   : > { %v1021_v17 = vunpack.c.l.b16 %v5591_v16 }
 0x188   : > { %v5601_v32 = vpack.c.b16 %v1021_v17, %v1020_v27 }
 0x189   : > { %v825_v20 = vpop.f32.mrf.mxu2 }
 0x18a   : > { %v826_v22 = vadd.f32 %v825_v20, %v5543_v29  ;;  %v5596_v25 = vpop.f32.mrf.mxu3  ;;  %7911 = vst [vmem:[#allocation28_spill] sm:$0xff] %v5601_v32  ;;  %v926_v20 = vlaneseq }
 0x18b   : > { %v778_v30 = vpop.f32.mrf.mxu1 }
 0x18c   : > { %v5599_v31 = vpack.c.bf16 %v826_v22, %v777_v21  ;;  %v779_v41 = vadd.f32 %v778_v30, %v5540_v28  ;;  %v5623_v30 = vand.u32 127, %v926_v20 }
 0x18e   : > { %v1022_v61 = vunpack.c.l.b16 %v5599_v31  ;;  %vm1456_vm1 = vcmp.ge.s32.totalorder %v5623_v30, 32  ;;  %vm1457_vm2 = vcmp.lt.s32.totalorder %v5623_v30, 64  ;;  %vm929_vm3 = vcmp.lt.s32.totalorder %v5623_v30, 32 }
 0x18f   : > { %vm1936_vm4 = vcmp.ge.s32.totalorder %v5623_v30, 64  ;;  %vm1937_vm5 = vcmp.lt.s32.totalorder %v5623_v30, 96  ;;  %vm1458_vm6 = vmand %vm1456_vm1, %vm1457_vm2  ;;  %vm2416_vm11 = vcmp.ge.s32.totalorder %v5623_v30, 96 }
 0x190   : > { %vm5641_vm7 = vmpackc.low %vm929_vm3, %vm929_vm3 }
 0x191   : > { %v827_v38 = vpop.f32.mrf.mxu2  ;;  %vm1938_vm8 = vmand %vm1936_vm4, %vm1937_vm5 }
 0x192   : > { %v828_v39 = vadd.f32 %v827_v38, %v5543_v29  ;;  %v5604_v40 = vpop.f32.mrf.mxu3  ;;  %v5626_v38 = vperm.slane %v5537_v26, 2  ;;  %vm5650_vm9 = vmpackc.low %vm1458_vm6, %vm1458_vm6 }
 0x193   : > { %v781_v47 = vpop.f32.mrf.mxu1  ;;  %vm5658_vm10 = vmpackc.low %vm1938_vm8, %vm1938_vm8 }
 0x194   : > { %v5607_v48 = vpack.c.bf16 %v828_v39, %v779_v41  ;;  %v782_v21 = vadd.f32 %v781_v47, %v5540_v28  ;;  %v855_v47 = vadd.f32 %v5547_v33, %v5626_v38  ;;  %v857_v26 = vadd.f32 %v5555_v37, %v5626_v38  ;;  %vm5940_vm12 = vmpackc.low %vm2416_vm11, %vm2416_vm11 }
 0x196   : > { %v1023_v49 = vunpack.c.l.b16 %v5607_v48  ;;  %v5647_v33 = vpack.c.bf16 %v857_v26, %v857_v26 }
 0x198   : > { %v5613_v1 = vpack.c.b16 %v1023_v49, %v1022_v61  ;;  %7917 = vst [vmem:[#allocation32_spill] sm:$0xff] %v5647_v33 }
 0x199   : > { %v830_v50 = vpop.f32.mrf.mxu2 }
 0x19a   : > { %v5610_v60 = vpop.f32.mrf.mxu3  ;;  %7912 = vst [vmem:[#allocation29_spill] sm:$0xff] %v5613_v1  ;;  %v831_v12 = vadd.f32 %v830_v50, %v5543_v29 }
 0x19b   : > { %v783_v0 = vpop.f32.mrf.mxu1 }
 0x19c   : > { %v784_v13 = vadd.f32 %v783_v0, %v5540_v28  ;;  %v5621_v27 = vpack.c.bf16 %v831_v12, %v782_v21 }
 0x19e   : > { %v1024_v50 = vunpack.c.l.b16 %v5621_v27 }
 0x1a1   : > { %v832_v3 = vpop.f32.mrf.mxu2 }
 0x1a2   : > { %v833_v7 = vadd.f32 %v832_v3, %v5543_v29  ;;  %v881_v10 = vpop.f32.mrf.mxu3 }
 0x1a3   : > { %v786_v17 = vpop.f32.mrf.mxu1  ;;  %v882_v14 = vadd.f32 %v881_v10, %v5626_v38  ;;  %v867_v10 = vadd.f32 %v5579_v59, %v5626_v38  ;;  %v880_v59 = vadd.f32 %v5610_v60, %v5626_v38 }
 0x1a4   : > { %v5619_v22 = vpack.c.bf16 %v833_v7, %v784_v13  ;;  %v5645_v7 = vpack.c.bf16 %v855_v47, %v855_v47  ;;  %v787_v26 = vadd.f32 %v786_v17, %v5540_v28  ;;  %v862_v17 = vadd.f32 %v5567_v46, %v5626_v38 }
 0x1a5   : > { %v5722_v63 = vpack.c.bf16 %v882_v14, %v882_v14 }
 0x1a6   : > { %v1025_v39 = vunpack.c.l.b16 %v5619_v22  ;;  %7916 = vst [vmem:[#allocation31_spill] sm:$0xff] %v5645_v7  ;;  %v998_v23 = vsel %vm5641_vm7, %v5645_v7, 0 }
 0x1a7   : > { %7925 = vst [vmem:[#allocation36_spill] sm:$0xff] %v5722_v63  ;;  %v1489_v62 = vsel %vm5650_vm9, %v5722_v63, 0 }
 0x1a8   : > { %v5635_v0 = vpack.c.b16 %v1025_v39, %v1024_v50  ;;  %v808_v50 = vadd.f32 %v5553_v36, %v5543_v29  ;;  %v759_v36 = vadd.f32 %v5549_v34, %v5540_v28  ;;  %v872_v34 = vadd.f32 %v5588_v11, %v5626_v38 }
 0x1a9   : > { %v835_v41 = vpop.f32.mrf.mxu2 }
 0x1aa   : > { %v884_v49 = vpop.f32.mrf.mxu3  ;;  %7913 = vst [vmem:[#allocation30_spill] sm:$0xff] %v5635_v0  ;;  %v836_v21 = vadd.f32 %v835_v41, %v5543_v29  ;;  %v1478_v41 = vsel %vm5650_vm9, %v5645_v7, 0  ;;  %v5686_v15 = vpack.c.bf16 %v808_v50, %v759_v36  ;;  %v870_v36 = vadd.f32 %v5583_v2, %v5626_v38 }
 0x1ab   : > { %v788_v61 = vpop.f32.mrf.mxu1  ;;  %v5692_v46 = vunpack.c.l.b16 %v1478_v41  ;;  %v5712_v4 = vpack.c.bf16 %v872_v34, %v872_v34 }
 0x1ac   : > { %v789_v39 = vadd.f32 %v788_v61, %v5540_v28  ;;  %v860_v61 = vadd.f32 %v5559_v42, %v5626_v38  ;;  %v918_v19 = vpack.c.bf16 %v836_v21, %v787_v26  ;;  %7923 = vst [vmem:[#allocation34_spill] sm:$0xff] %v5686_v15  ;;  %v5690_v42 = vunpack.c.l.b16 %v998_v23 }
 0x1ad   : > { %v1479_v21 = vsel %vm5650_vm9, %v5647_v33, 0  ;;  %v5703_v26 = vpack.c.bf16 %v862_v17, %v862_v17  ;;  %v885_v17 = vadd.f32 %v884_v49, %v5626_v38 }
 0x1ae   : > { %7924 = vst [vmem:[#allocation35_spill] sm:$0xff] %v5690_v42  ;;  %v5701_v50 = vpack.c.bf16 %v860_v61, %v860_v61  ;;  %v875_v61 = vadd.f32 %v5596_v25, %v5626_v38  ;;  %v5732_v49 = vunpack.c.l.b16 %v1479_v21 }
 0x1af   : > { %v5750_v21 = vpack.c.bf16 %v885_v17, %v885_v17 }
 0x1b1   : > { %v837_v12 = vpop.f32.mrf.mxu2  ;;  %v1490_v58 = vsel %vm5650_vm9, %v5750_v21, 0  ;;  %v7947_v47 = vld [vmem:[#allocation30_spill] sm:$0xff] }
 0x1b2   : > { %v838_v13 = vadd.f32 %v837_v12, %v5543_v29  ;;  %v886_v20 = vpop.f32.mrf.mxu3  ;;  %v1819_v42 = vunpack.c.l.b16 %v1490_v58 }
 0x1b3   : > { %v791_v12 = vpop.f32.mrf.mxu1  ;;  %v887_v23 = vadd.f32 %v886_v20, %v5626_v38 }
 0x1b4   : > { %v5663_v24 = vpack.c.bf16 %v838_v13, %v789_v39  ;;  %v999_v13 = vsel %vm5641_vm7, %v5647_v33, 0  ;;  %v5681_v39 = vrot.slane %v5551_v35, 4  ;;  %v792_v20 = vadd.f32 %v791_v12, %v5540_v28 }
 0x1b5   : > { %v5696_v5 = vunpack.c.l.b16 %v999_v13  ;;  %v1026_v13 = vunpack.c.l.b16 %v918_v19  ;;  %v5736_v12 = vadd.f32 %v5571_v51, %v5626_v38  ;;  %v5755_v51 = vpack.c.bf16 %v875_v61, %v875_v61 }
 0x1b6   : > { %7922 = vst [vmem:[#allocation33_spill] sm:$0xff] %v5681_v39  ;;  %v1027_v9 = vunpack.c.l.b16 %v5663_v24  ;;  %v5791_v57 = vrot.slane %v5663_v24, 4 }
 0x1b8   : > { %v5724_v2 = vpack.c.b16 %v1027_v9, %v1026_v13 }
 0x1b9   : > { %v840_v8 = vpop.f32.mrf.mxu2 }
 0x1ba   : > { %v841_v11 = vadd.f32 %v840_v8, %v5543_v29  ;;  %v889_v41 = vpop.f32.mrf.mxu3  ;;  %v877_v8 = vadd.f32 %v5604_v40, %v5626_v38  ;;  %7926 = vst [vmem:[#allocation37_spill] sm:$0xff] %v5724_v2 }
 0x1bb   : > { %v890_v18 = vadd.f32 %v889_v41, %v5626_v38  ;;  %v5726_v41 = vpack.c.bf16 %v887_v23, %v887_v23  ;;  %v793_v60 = vpop.f32.mrf.mxu1  ;;  %v5746_v23 = vpack.c.bf16 %v867_v10, %v867_v10  ;;  %v1009_v10 = vsel %vm5641_vm7, %v5722_v63, 0 }
 0x1bc   : > { %v5728_v34 = vpack.c.bf16 %v841_v11, %v792_v20  ;;  %v5748_v11 = vpack.c.bf16 %v870_v36, %v870_v36  ;;  %v5757_v13 = vpack.c.bf16 %v877_v8, %v877_v8  ;;  %v5759_v20 = vpack.c.bf16 %v880_v59, %v880_v59 }
 0x1bd   : > { %v5738_v40 = vpack.c.bf16 %v890_v18, %v890_v18  ;;  %v794_v17 = vadd.f32 %v793_v60, %v5540_v28  ;;  %v1011_v61 = vsel %vm5641_vm7, %v5726_v41, 0  ;;  %v5772_v8 = vrot.slane %v918_v19, 4 }
 0x1be   : > { %v5765_v36 = vrot.slane %v5728_v34, 4  ;;  %v1010_v19 = vsel %vm5641_vm7, %v5750_v21, 0  ;;  %v1491_v53 = vsel %vm5650_vm9, %v5726_v41, 0  ;;  %v1028_v33 = vunpack.c.l.b16 %v5728_v34 }
 0x1bf   : > { %v1012_v59 = vsel %vm5641_vm7, %v5738_v40, 0  ;;  %v1820_v44 = vunpack.c.l.b16 %v1491_v53  ;;  %v1007_v63 = vsel %vm5641_vm7, %v5757_v13, 0  ;;  %v1008_v53 = vsel %vm5641_vm7, %v5759_v20, 0 }
 0x1c0   : > { %7927 = vst [vmem:[#allocation38_spill] sm:$0xff] %v5765_v36  ;;  %v1373_v52 = vunpack.c.l.b16 %v1012_v59  ;;  %v1476_v2 = vsel %vm5650_vm9, %v5765_v36, 0  ;;  %v1488_v58 = vsel %vm5650_vm9, %v5759_v20, 0  ;;  %v1487_v34 = vsel %vm5650_vm9, %v5757_v13, 0 }
 0x1c1   : > { %v842_v25 = vpop.f32.mrf.mxu2 }
 0x1c2   : > { %v843_v9 = vadd.f32 %v842_v25, %v5543_v29  ;;  %v891_v14 = vpop.f32.mrf.mxu3  ;;  %v1492_v25 = vsel %vm5650_vm9, %v5738_v40, 0 }
 0x1c3   : > { %v892_v18 = vadd.f32 %v891_v14, %v5626_v38  ;;  %v1372_v14 = vunpack.c.l.b16 %v1011_v61  ;;  %v1821_v24 = vunpack.c.l.b16 %v1492_v25 }
 0x1c4   : > { %v924_v60 = vpack.c.bf16 %v843_v9, %v794_v17  ;;  %v996_v17 = vsel %vm5641_vm7, %v5765_v36, 0  ;;  %v1524_v36 = vunpack.c.l.b16 %v1476_v2  ;;  %v994_v2 = vsel %vm5641_vm7, %v5772_v8, 0 }
 0x1c5   : > { %v5793_v38 = vpack.c.bf16 %v892_v18, %v892_v18  ;;  %v1076_v25 = vunpack.c.l.b16 %v996_v17  ;;  %v1368_v17 = vunpack.c.l.b16 %v1007_v63  ;;  %v1003_v63 = vsel %vm5641_vm7, %v5746_v23, 0 }
 0x1c6   : > { %v5798_v9 = vrot.slane %v924_v60, 4  ;;  %v1029_v0 = vunpack.c.l.b16 %v924_v60 }
 0x1c7   : > { %v1013_v18 = vsel %vm5641_vm7, %v5793_v38, 0  ;;  %v1493_v61 = vsel %vm5650_vm9, %v5793_v38, 0  ;;  %v2453_v30 = vsel %vm5940_vm12, %v5793_v38, 0  ;;  %v7942_v3 = vld [vmem:[#allocation38_spill] sm:$0xff] }
 0x1c8   : > { %v1374_v59 = vunpack.c.l.b16 %v1013_v18  ;;  %v1822_v1 = vunpack.c.l.b16 %v1493_v61  ;;  %v997_v32 = vsel %vm5641_vm7, %v5798_v9, 0  ;;  %v1477_v35 = vsel %vm5650_vm9, %v5798_v9, 0 }
 0x1c9   : > { %v1077_v60 = vunpack.c.l.b16 %v997_v32  ;;  %v1525_v39 = vunpack.c.l.b16 %v1477_v35  ;;  %v1371_v61 = vunpack.c.l.b16 %v1010_v19  ;;  %v995_v32 = vsel %vm5641_vm7, %v5791_v57, 0 }
 0x1ca   : > { %v1382_v7 = vpack.c.b16 %v1374_v59, %v1373_v52  ;;  %v1830_v15 = vpack.c.b16 %v1822_v1, %v1821_v24  ;;  %v1475_v52 = vsel %vm5650_vm9, %v5791_v57, 0  ;;  %v5828_v35 = vpack.c.b16 %v1029_v0, %v1028_v33 }
 0x1cb   : > { %v1085_v55 = vpack.c.b16 %v1077_v60, %v1076_v25  ;;  %v1533_v18 = vpack.c.b16 %v1525_v39, %v1524_v36  ;;  %v1370_v1 = vunpack.c.l.b16 %v1009_v10  ;;  %v1829_v39 = vpack.c.b16 %v1820_v44, %v1819_v42 }
 0x1cc   : > { %1391 = vmatpush.bf16.msra.mxu1 %v1382_v7  ;;  %1839 = vmatpush.bf16.msra.mxu3 %v1830_v15  ;;  %v1818_v15 = vunpack.c.l.b16 %v1489_v62  ;;  %v1381_v7 = vpack.c.b16 %v1372_v14, %v1371_v61  ;;  %v1075_v0 = vunpack.c.l.b16 %v995_v32  ;;  %v1523_v33 = vunpack.c.l.b16 %v1475_v52 }
 0x1cd   : > { %1094 = vmatpush.bf16.xpose.msrb.mxu0 %v1085_v55  ;;  %1542 = vmatpush.bf16.xpose.msrb.mxu2 %v1533_v18  ;;  %v1474_v55 = vsel %vm5650_vm9, %v5772_v8, 0  ;;  %v1485_v62 = vsel %vm5650_vm9, %v5712_v4, 0  ;;  %v5849_v44 = vrot.slane %v5619_v22, 4  ;;  %v1369_v42 = vunpack.c.l.b16 %v1008_v53 }
 0x1ce   : > { %v1817_v10 = vunpack.c.l.b16 %v1488_v58  ;;  %v1006_v36 = vsel %vm5641_vm7, %v5755_v51, 0  ;;  %v1074_v19 = vunpack.c.l.b16 %v994_v2  ;;  %v1522_v14 = vunpack.c.l.b16 %v1474_v55 }
 0x1cf   : > { %v1486_v24 = vsel %vm5650_vm9, %v5755_v51, 0  ;;  %v5858_v59 = vrot.slane %v5621_v27, 4  ;;  %v1380_v22 = vpack.c.b16 %v1370_v1, %v1369_v42  ;;  %v1816_v60 = vunpack.c.l.b16 %v1487_v34 }
 0x1d0   : > { %1392 = vmatpush.bf16.msra.mxu1 %v1381_v7  ;;  %1840 = vmatpush.bf16.msra.mxu3 %v1829_v39  ;;  %v1828_v25 = vpack.c.b16 %v1818_v15, %v1817_v10  ;;  %v5862_v18 = vpack.c.bf16 %v5736_v12, %v5736_v12  ;;  %v1084_v61 = vpack.c.b16 %v1075_v0, %v1074_v19  ;;  %v1367_v52 = vunpack.c.l.b16 %v1006_v36 }
 0x1d1   : > { %v1532_v32 = vpack.c.b16 %v1523_v33, %v1522_v14  ;;  %v1815_v27 = vunpack.c.l.b16 %v1486_v24  ;;  %v993_v53 = vsel %vm5641_vm7, %v5849_v44, 0  ;;  %v1473_v12 = vsel %vm5650_vm9, %v5849_v44, 0 }
 0x1d2   : > { %v1004_v1 = vsel %vm5641_vm7, %v5748_v11, 0  ;;  %v7928_v58 = vsel %vm5641_vm7, %v5712_v4, 0  ;;  %v1484_v7 = vsel %vm5650_vm9, %v5748_v11, 0  ;;  %v1814_v39 = vunpack.c.l.b16 %v1485_v62 }
 0x1d3   : > { %v1366_v15 = vunpack.c.l.b16 %v7928_v58  ;;  %v1379_v2 = vpack.c.b16 %v1368_v17, %v1367_v52  ;;  %v1827_v55 = vpack.c.b16 %v1816_v60, %v1815_v27  ;;  %v992_v0 = vsel %vm5641_vm7, %v5858_v59, 0 }
 0x1d4   : > { %1393 = vmatpush.bf16.msra.mxu1 %v1380_v22  ;;  %1841 = vmatpush.bf16.msra.mxu3 %v1828_v25  ;;  %v1472_v33 = vsel %vm5650_vm9, %v5858_v59, 0  ;;  %v1073_v34 = vunpack.c.l.b16 %v993_v53  ;;  %v1521_v42 = vunpack.c.l.b16 %v1473_v12  ;;  %v1483_v10 = vsel %vm5650_vm9, %v5746_v23, 0 }
 0x1d5   : > { %1095 = vmatpush.bf16.xpose.msrb.mxu0 %v1084_v61  ;;  %1543 = vmatpush.bf16.xpose.msrb.mxu2 %v1532_v32  ;;  %v1481_v62 = vsel %vm5650_vm9, %v5703_v26, 0  ;;  %v5897_v36 = vrot.slane %v5607_v48, 4  ;;  %v1365_v19 = vunpack.c.l.b16 %v1004_v1  ;;  %v1813_v14 = vunpack.c.l.b16 %v1484_v7 }
 0x1d6   : > { %v1002_v17 = vsel %vm5641_vm7, %v5862_v18, 0  ;;  %v1072_v24 = vunpack.c.l.b16 %v992_v0  ;;  %v1520_v22 = vunpack.c.l.b16 %v1472_v33  ;;  %v1364_v25 = vunpack.c.l.b16 %v1003_v63 }
 0x1d7   : > { %v1482_v60 = vsel %vm5650_vm9, %v5862_v18, 0  ;;  %v5906_v61 = vrot.slane %v5599_v31, 4  ;;  %v1378_v48 = vpack.c.b16 %v1366_v15, %v1365_v19  ;;  %v1826_v32 = vpack.c.b16 %v1814_v39, %v1813_v14 }
 0x1d8   : > { %1394 = vmatpush.bf16.msra.mxu1 %v1379_v2  ;;  %1842 = vmatpush.bf16.msra.mxu3 %v1827_v55  ;;  %v1812_v52 = vunpack.c.l.b16 %v1483_v10  ;;  %v1083_v27 = vpack.c.b16 %v1073_v34, %v1072_v24  ;;  %v1531_v53 = vpack.c.b16 %v1521_v42, %v1520_v22  ;;  %v7929_v12 = vsel %vm5641_vm7, %v5703_v26, 0 }
 0x1d9   : > { %v1362_v1 = vunpack.c.l.b16 %v7929_v12  ;;  %v1480_v63 = vsel %vm5650_vm9, %v5701_v50, 0  ;;  %v1363_v58 = vunpack.c.l.b16 %v1002_v17  ;;  %v1811_v7 = vunpack.c.l.b16 %v1482_v60 }
 0x1da   : > { %v991_v31 = vsel %vm5641_vm7, %v5897_v36, 0  ;;  %v1471_v15 = vsel %vm5650_vm9, %v5897_v36, 0  ;;  %v764_v39 = vadd.f32 %v5561_v43, %v5540_v28  ;;  %v7930_v2 = vsel %vm5641_vm7, %v5701_v50, 0 }
 0x1db   : > { %v1361_v55 = vunpack.c.l.b16 %v7930_v2  ;;  %v1810_v0 = vunpack.c.l.b16 %v1481_v62  ;;  %v1823_v33 = vpack.c.b16 %v5732_v49, %v5692_v46  ;;  %v1377_v34 = vpack.c.b16 %v1364_v25, %v1363_v58  ;;  %v7948_v62 = vld [vmem:[#allocation37_spill] sm:$0xff] }
 0x1dc   : > { %1395 = vmatpush.bf16.msra.mxu1 %v1378_v48  ;;  %1843 = vmatpush.bf16.msra.mxu3 %v1826_v32  ;;  %v1825_v42 = vpack.c.b16 %v1812_v52, %v1811_v7  ;;  %v990_v10 = vsel %vm5641_vm7, %v5906_v61, 0  ;;  %v1470_v43 = vsel %vm5650_vm9, %v5906_v61, 0  ;;  %v813_v19 = vadd.f32 %v5565_v45, %v5543_v29 }
 0x1dd   : > { %1096 = vmatpush.bf16.xpose.msrb.mxu0 %v1083_v27  ;;  %1544 = vmatpush.bf16.xpose.msrb.mxu2 %v1531_v53  ;;  %v1809_v46 = vunpack.c.l.b16 %v1480_v63  ;;  %v1071_v49 = vunpack.c.l.b16 %v991_v31  ;;  %v1519_v14 = vunpack.c.l.b16 %v1471_v15  ;;  %v818_v17 = vadd.f32 %v5577_v56, %v5543_v29 }
 0x1de   : > { %v1376_v24 = vpack.c.b16 %v1362_v1, %v1361_v55  ;;  %v1973_v45 = vsel %vm5658_vm10, %v5793_v38, 0  ;;  %v5953_v22 = vrot.slane %v5591_v16, 4  ;;  %v1070_v60 = vunpack.c.l.b16 %v990_v10 }
 0x1df   : > { %v1824_v25 = vpack.c.b16 %v1810_v0, %v1809_v46  ;;  %v1518_v48 = vunpack.c.l.b16 %v1470_v43  ;;  %v769_v29 = vadd.f32 %v5573_v54, %v5540_v28  ;;  %v5958_v56 = vrot.slane %v5585_v6, 4 }
 0x1e0   : > { %1396 = vmatpush.bf16.msra.mxu1 %v1377_v34  ;;  %1844 = vmatpush.bf16.msra.mxu3 %v1825_v42  ;;  %v1972_v32 = vsel %vm5658_vm10, %v5738_v40, 0  ;;  %v2452_v38 = vsel %vm5940_vm12, %v5738_v40, 0  ;;  %v1082_v52 = vpack.c.b16 %v1071_v49, %v1070_v60  ;;  %v2302_v27 = vunpack.c.l.b16 %v1973_v45  ;;  %v7933_v34 = vld [vmem:[#allocation35_spill] sm:$0xff] }
 0x1e1   : > { %v1530_v16 = vpack.c.b16 %v1519_v14, %v1518_v48  ;;  %v2782_v53 = vunpack.c.l.b16 %v2453_v30  ;;  %v5966_v12 = vpack.c.bf16 %v813_v19, %v764_v39  ;;  %v5968_v1 = vpack.c.bf16 %v818_v17, %v769_v29  ;;  %v7936_v49 = vld [vmem:[#allocation27_spill] sm:$0xff] }
 0x1e2   : > { %v1971_v28 = vsel %vm5658_vm10, %v5726_v41, 0  ;;  %v2451_v54 = vsel %vm5940_vm12, %v5726_v41, 0  ;;  %v2301_v6 = vunpack.c.l.b16 %v1972_v32  ;;  %v2781_v40 = vunpack.c.l.b16 %v2452_v38 }
 0x1e3   : > { %v989_v63 = vsel %vm5641_vm7, %v5953_v22, 0  ;;  %v1469_v58 = vsel %vm5650_vm9, %v5953_v22, 0  ;;  %v1970_v7 = vsel %vm5658_vm10, %v5750_v21, 0  ;;  %v2450_v41 = vsel %vm5940_vm12, %v5750_v21, 0  ;;  %v7935_v21 = vld [vmem:[#allocation36_spill] sm:$0xff] }
 0x1e4   : > { %1397 = vmatpush.bf16.msra.mxu1 %v1376_v24  ;;  %1845 = vmatpush.bf16.msra.mxu3 %v1824_v25  ;;  %v988_v31 = vsel %vm5641_vm7, %v5958_v56, 0  ;;  %v1468_v15 = vsel %vm5650_vm9, %v5958_v56, 0  ;;  %v2310_v39 = vpack.c.b16 %v2302_v27, %v2301_v6  ;;  %v2790_v2 = vpack.c.b16 %v2782_v53, %v2781_v40 }
 0x1e5   : > { %1097 = vmatpush.bf16.xpose.msrb.mxu0 %v1082_v52  ;;  %1545 = vmatpush.bf16.xpose.msrb.mxu2 %v1530_v16  ;;  %v2300_v55 = vunpack.c.l.b16 %v1971_v28  ;;  %v2780_v0 = vunpack.c.l.b16 %v2451_v54  ;;  %v7934_v42 = vpack.c.b16 %v5696_v5, %v7933_v34  ;;  %v1069_v10 = vunpack.c.l.b16 %v989_v63 }
 0x1e6   : > { %v1517_v43 = vunpack.c.l.b16 %v1469_v58  ;;  %v1969_v19 = vsel %vm5658_vm10, %v7935_v21, 0  ;;  %v2449_v46 = vsel %vm5940_vm12, %v7935_v21, 0  ;;  %v6004_v14 = vrot.slane %v7936_v49, 4 }
 0x1e7   : > { %v6007_v17 = vrot.slane %v5968_v1, 4  ;;  %v2299_v5 = vunpack.c.l.b16 %v1970_v7  ;;  %v1068_v24 = vunpack.c.l.b16 %v988_v31  ;;  %v1516_v45 = vunpack.c.l.b16 %v1468_v15 }
 0x1e8   : > { %1398 = vmatpush.bf16.msra.mxu1 %v7934_v42  ;;  %1846 = vmatpush.bf16.msra.mxu3 %v1823_v33  ;;  %v2779_v33 = vunpack.c.l.b16 %v2450_v41  ;;  %v1968_v30 = vsel %vm5658_vm10, %v5759_v20, 0  ;;  %v2448_v25 = vsel %vm5940_vm12, %v5759_v20, 0  ;;  %v2298_v29 = vunpack.c.l.b16 %v1969_v19 }
 0x1e9   : > { %v2309_v60 = vpack.c.b16 %v2300_v55, %v2299_v5  ;;  %v2778_v32 = vunpack.c.l.b16 %v2449_v46  ;;  %v1081_v38 = vpack.c.b16 %v1069_v10, %v1068_v24  ;;  %v1529_v52 = vpack.c.b16 %v1517_v43, %v1516_v45  ;;  %v7937_v55 = vld [vmem:[#allocation26_spill] sm:$0xff] }
 0x1ea   : > { %v2789_v48 = vpack.c.b16 %v2780_v0, %v2779_v33  ;;  %v1967_v16 = vsel %vm5658_vm10, %v5757_v13, 0  ;;  %v2447_v27 = vsel %vm5940_vm12, %v5757_v13, 0  ;;  %v2297_v53 = vunpack.c.l.b16 %v1968_v30 }
 0x1eb   : > { %v2777_v28 = vunpack.c.l.b16 %v2448_v25  ;;  %v987_v20 = vsel %vm5641_vm7, %v6007_v17, 0  ;;  %v1467_v54 = vsel %vm5650_vm9, %v6007_v17, 0  ;;  %v1966_v6 = vsel %vm5658_vm10, %v5755_v51, 0 }
 0x1ec   : > { %2319 = vmatpush.bf16.msrb.mxu1 %v2310_v39  ;;  %2799 = vmatpush.bf16.msrb.mxu3 %v2790_v2  ;;  %v2446_v13 = vsel %vm5940_vm12, %v5755_v51, 0  ;;  %v986_v40 = vsel %vm5641_vm7, %v6004_v14, 0  ;;  %v1466_v63 = vsel %vm5650_vm9, %v6004_v14, 0  ;;  %v2308_v58 = vpack.c.b16 %v2298_v29, %v2297_v53 }
 0x1ed   : > { %1098 = vmatpush.bf16.xpose.msrb.mxu0 %v1081_v38  ;;  %1546 = vmatpush.bf16.xpose.msrb.mxu2 %v1529_v52  ;;  %v2788_v7 = vpack.c.b16 %v2778_v32, %v2777_v28  ;;  %v2296_v41 = vunpack.c.l.b16 %v1967_v16  ;;  %v2776_v31 = vunpack.c.l.b16 %v2447_v27  ;;  %v1067_v15 = vunpack.c.l.b16 %v987_v20 }
 0x1ee   : > { %v1515_v39 = vunpack.c.l.b16 %v1467_v54  ;;  %v1965_v2 = vsel %vm5658_vm10, %v5712_v4, 0  ;;  %v2445_v51 = vsel %vm5940_vm12, %v5712_v4, 0  ;;  %v6046_v0 = vrot.slane %v7937_v55, 4 }
 0x1ef   : > { %v6049_v34 = vrot.slane %v5966_v12, 4  ;;  %v2295_v42 = vunpack.c.l.b16 %v1966_v6  ;;  %v2775_v10 = vunpack.c.l.b16 %v2446_v13  ;;  %v1066_v43 = vunpack.c.l.b16 %v986_v40  ;;  %v7938_v40 = vld [vmem:[#allocation34_spill] sm:$0xff] }
 0x1f0   : > { %2320 = vmatpush.bf16.msrb.mxu1 %v2309_v60  ;;  %2800 = vmatpush.bf16.msrb.mxu3 %v2789_v48  ;;  %v1514_v21 = vunpack.c.l.b16 %v1466_v63  ;;  %v1964_v19 = vsel %vm5658_vm10, %v5748_v11, 0  ;;  %v2444_v4 = vsel %vm5940_vm12, %v5748_v11, 0  ;;  %v2294_v33 = vunpack.c.l.b16 %v1965_v2 }
 0x1f1   : > { %v2307_v46 = vpack.c.b16 %v2296_v41, %v2295_v42  ;;  %v2787_v5 = vpack.c.b16 %v2776_v31, %v2775_v10  ;;  %v2774_v24 = vunpack.c.l.b16 %v2445_v51  ;;  %v1080_v45 = vpack.c.b16 %v1067_v15, %v1066_v43  ;;  %v7939_v41 = vld [vmem:[#allocation31_spill] sm:$0xff] }
 0x1f2   : > { %v1528_v30 = vpack.c.b16 %v1515_v39, %v1514_v21  ;;  %v1963_v25 = vsel %vm5658_vm10, %v5746_v23, 0  ;;  %v2443_v60 = vsel %vm5940_vm12, %v5746_v23, 0  ;;  %v2293_v48 = vunpack.c.l.b16 %v1964_v19 }
 0x1f3   : > { %v2773_v29 = vunpack.c.l.b16 %v2444_v4  ;;  %v985_v11 = vsel %vm5641_vm7, %v6049_v34, 0  ;;  %v1465_v32 = vsel %vm5650_vm9, %v6049_v34, 0  ;;  %v1962_v38 = vsel %vm5658_vm10, %v5862_v18, 0  ;;  %v7940_v4 = vld [vmem:[#allocation32_spill] sm:$0xff] }
 0x1f4   : > { %2321 = vmatpush.bf16.msrb.mxu1 %v2308_v58  ;;  %2801 = vmatpush.bf16.msrb.mxu3 %v2788_v7  ;;  %v2442_v23 = vsel %vm5940_vm12, %v5862_v18, 0  ;;  %v984_v52 = vsel %vm5641_vm7, %v6046_v0, 0  ;;  %v1464_v16 = vsel %vm5650_vm9, %v6046_v0, 0  ;;  %v2306_v27 = vpack.c.b16 %v2294_v33, %v2293_v48 }
 0x1f5   : > { %1099 = vmatpush.bf16.xpose.msrb.mxu0 %v1080_v45  ;;  %1547 = vmatpush.bf16.xpose.msrb.mxu2 %v1528_v30  ;;  %v2786_v53 = vpack.c.b16 %v2774_v24, %v2773_v29  ;;  %v2292_v28 = vunpack.c.l.b16 %v1963_v25  ;;  %v2772_v20 = vunpack.c.l.b16 %v2443_v60  ;;  %v1065_v54 = vunpack.c.l.b16 %v985_v11  ;;  %v7941_v30 = vld [vmem:[#allocation33_spill] sm:$0xff] }
 0x1f6   : > { %v1513_v6 = vunpack.c.l.b16 %v1465_v32  ;;  %v1961_v13 = vsel %vm5658_vm10, %v5703_v26, 0  ;;  %v2441_v18 = vsel %vm5940_vm12, %v5703_v26, 0  ;;  %v6088_v63 = vrot.slane %v7938_v40, 4 }
 0x1f7   : > { %v2291_v58 = vunpack.c.l.b16 %v1962_v38  ;;  %v2771_v7 = vunpack.c.l.b16 %v2442_v23  ;;  %v2438_v31 = vsel %vm5940_vm12, %v7939_v41, 0  ;;  %v1064_v15 = vunpack.c.l.b16 %v984_v52 }
 0x1f8   : > { %2322 = vmatpush.bf16.msrb.mxu1 %v2307_v46  ;;  %2802 = vmatpush.bf16.msrb.mxu3 %v2787_v5  ;;  %v1512_v39 = vunpack.c.l.b16 %v1464_v16  ;;  %v1960_v2 = vsel %vm5658_vm10, %v5701_v50, 0  ;;  %v2440_v26 = vsel %vm5940_vm12, %v5701_v50, 0  ;;  %v2290_v10 = vunpack.c.l.b16 %v1961_v13 }
 0x1f9   : > { %v2305_v51 = vpack.c.b16 %v2292_v28, %v2291_v58  ;;  %v2785_v42 = vpack.c.b16 %v2772_v20, %v2771_v7  ;;  %v2770_v43 = vunpack.c.l.b16 %v2441_v18  ;;  %v1079_v21 = vpack.c.b16 %v1065_v54, %v1064_v15 }
 0x1fa   : > { %v1527_v19 = vpack.c.b16 %v1513_v6, %v1512_v39  ;;  %v1959_v46 = vsel %vm5658_vm10, %v7940_v4, 0  ;;  %v2439_v5 = vsel %vm5940_vm12, %v7940_v4, 0  ;;  %v2289_v33 = vunpack.c.l.b16 %v1960_v2 }
 0x1fb   : > { %v2769_v24 = vunpack.c.l.b16 %v2440_v26  ;;  %v983_v50 = vsel %vm5641_vm7, %v6088_v63, 0  ;;  %v1463_v45 = vsel %vm5650_vm9, %v6088_v63, 0  ;;  %v982_v25 = vsel %vm5641_vm7, %v7941_v30, 0 }
 0x1fc   : > { %2323 = vmatpush.bf16.msrb.mxu1 %v2306_v27  ;;  %2803 = vmatpush.bf16.msrb.mxu3 %v2786_v53  ;;  %v1462_v60 = vsel %vm5650_vm9, %v7941_v30, 0  ;;  %v1957_v48 = vsel %vm5658_vm10, %v5798_v9, 0  ;;  %v2437_v29 = vsel %vm5940_vm12, %v5798_v9, 0  ;;  %v2304_v11 = vpack.c.b16 %v2290_v10, %v2289_v33 }
 0x1fd   : > { %1100 = vmatpush.bf16.xpose.msrb.mxu0 %v1079_v21  ;;  %1548 = vmatpush.bf16.xpose.msrb.mxu2 %v1527_v19  ;;  %v2784_v32 = vpack.c.b16 %v2770_v43, %v2769_v24  ;;  %v2288_v38 = vunpack.c.l.b16 %v1959_v46  ;;  %v2768_v23 = vunpack.c.l.b16 %v2439_v5  ;;  %v1063_v52 = vunpack.c.l.b16 %v983_v50  ;;  %v7944_v21 = vld [vmem:[#allocation25_spill] sm:$0xff] }
 0x1fe   : > { %v1511_v16 = vunpack.c.l.b16 %v1463_v45  ;;  %v1956_v27 = vsel %vm5658_vm10, %v7942_v3, 0  ;;  %v2436_v37 = vsel %vm5940_vm12, %v7942_v3, 0  ;;  %v7943_v9 = vsel %vm5658_vm10, %v7939_v41, 0 }
 0x1ff   : > { %v2287_v53 = vunpack.c.l.b16 %v7943_v9  ;;  %v2767_v28 = vunpack.c.l.b16 %v2438_v31  ;;  %v2005_v20 = vunpack.c.l.b16 %v1957_v48  ;;  %v2485_v54 = vunpack.c.l.b16 %v2437_v29 }
 0x200   : > { %2324 = vmatpush.bf16.msrb.mxu1 %v2305_v51  ;;  %2804 = vmatpush.bf16.msrb.mxu3 %v2785_v42  ;;  %v1062_v6 = vunpack.c.l.b16 %v982_v25  ;;  %v1510_v13 = vunpack.c.l.b16 %v1462_v60  ;;  %v2004_v7 = vunpack.c.l.b16 %v1956_v27  ;;  %v2484_v15 = vunpack.c.l.b16 %v2436_v37 }
 0x201   : > { %v2303_v18 = vpack.c.b16 %v2288_v38, %v2287_v53  ;;  %v2783_v58 = vpack.c.b16 %v2768_v23, %v2767_v28  ;;  %v1955_v41 = vsel %vm5658_vm10, %v5791_v57, 0  ;;  %v2435_v31 = vsel %vm5940_vm12, %v5791_v57, 0 }
 0x202   : > { %v1078_v39 = vpack.c.b16 %v1063_v52, %v1062_v6  ;;  %v1526_v2 = vpack.c.b16 %v1511_v16, %v1510_v13  ;;  %v2013_v26 = vpack.c.b16 %v2005_v20, %v2004_v7  ;;  %v2493_v51 = vpack.c.b16 %v2485_v54, %v2484_v15 }
 0x203   : > { %v1015_v42 = vunpack.c.l.b16 %v7938_v40  ;;  %v1954_v10 = vsel %vm5658_vm10, %v5772_v8, 0  ;;  %v2434_v43 = vsel %vm5940_vm12, %v5772_v8, 0  ;;  %v1014_v19 = vunpack.c.l.b16 %v7944_v21 }
 0x204   : > { %2325 = vmatpush.bf16.msrb.mxu1 %v2304_v11  ;;  %2805 = vmatpush.bf16.msrb.mxu3 %v2784_v32  ;;  %v2003_v4 = vunpack.c.l.b16 %v1955_v41  ;;  %v2483_v46 = vunpack.c.l.b16 %v2435_v31  ;;  %v2002_v33 = vunpack.c.l.b16 %v1954_v10  ;;  %v2482_v57 = vunpack.c.l.b16 %v2434_v43 }
 0x205   : > { %1101 = vmatpush.bf16.xpose.msrb.mxu0 %v1078_v39  ;;  %1549 = vmatpush.bf16.xpose.msrb.mxu2 %v1526_v2  ;;  %v6147_v5 = vpack.c.b16 %v1015_v42, %v1014_v19  ;;  %v1953_v50 = vsel %vm5658_vm10, %v5849_v44, 0  ;;  %v2433_v8 = vsel %vm5940_vm12, %v5849_v44, 0  ;;  %v1952_v45 = vsel %vm5658_vm10, %v5858_v59, 0 }
 0x206   : > { %v2012_v40 = vpack.c.b16 %v2003_v4, %v2002_v33  ;;  %v2492_v24 = vpack.c.b16 %v2483_v46, %v2482_v57  ;;  %v2432_v25 = vsel %vm5940_vm12, %v5858_v59, 0  ;;  %v2001_v60 = vunpack.c.l.b16 %v1953_v50 }
 0x207   : > { %v2481_v48 = vunpack.c.l.b16 %v2433_v8  ;;  %v2000_v29 = vunpack.c.l.b16 %v1952_v45  ;;  %v2480_v11 = vunpack.c.l.b16 %v2432_v25  ;;  %v1951_v44 = vsel %vm5658_vm10, %v5897_v36, 0 }
 0x208   : > { %2326 = vmatpush.bf16.msrb.mxu1 %v2303_v18  ;;  %2806 = vmatpush.bf16.msrb.mxu3 %v2783_v58  ;;  %v2431_v23 = vsel %vm5940_vm12, %v5897_v36, 0  ;;  %v1017_v52 = vunpack.c.l.b16 %v5966_v12  ;;  %v1950_v59 = vsel %vm5658_vm10, %v5906_v61, 0  ;;  %v2430_v16 = vsel %vm5940_vm12, %v5906_v61, 0 }
 0x209   : > { %v2011_v32 = vpack.c.b16 %v2001_v60, %v2000_v29  ;;  %v2491_v38 = vpack.c.b16 %v2481_v48, %v2480_v11  ;;  %v1016_v3 = vunpack.c.l.b16 %v7937_v55  ;;  %v1999_v27 = vunpack.c.l.b16 %v1951_v44  ;;  %v7945_v29 = vld [vmem:[#allocation28_spill] sm:$0xff] }
 0x20a   : > { %v2479_v37 = vunpack.c.l.b16 %v2431_v23  ;;  %v1998_v53 = vunpack.c.l.b16 %v1950_v59  ;;  %v2478_v36 = vunpack.c.l.b16 %v2430_v16  ;;  %v1949_v20 = vsel %vm5658_vm10, %v5953_v22, 0 }
 0x20b   : > { %v6177_v9 = vpack.c.b16 %v1017_v52, %v1016_v3  ;;  %v2429_v61 = vsel %vm5940_vm12, %v5953_v22, 0  ;;  %v1948_v55 = vsel %vm5658_vm10, %v5958_v56, 0  ;;  %v2428_v54 = vsel %vm5940_vm12, %v5958_v56, 0  ;;  %v6259_v3 = vld [vmem:[%s7832_s1 + $0x8] sm:$0xff] }
 0x20c   : > { %1102 = vmatmul.bf16.vlgmr.msrb.gmra.mxu0 %v6147_v5  ;;  %1550 = vmatmul.bf16.vlgmr.msrb.gmra.mxu2 %v6147_v5  ;;  %v2010_v12 = vpack.c.b16 %v1999_v27, %v1998_v53  ;;  %v2490_v28 = vpack.c.b16 %v2479_v37, %v2478_v36  ;;  %v1997_v6 = vunpack.c.l.b16 %v1949_v20  ;;  %v2477_v13 = vunpack.c.l.b16 %v2429_v61 }
 0x20d   : > { %2022 = vmatpush.bf16.xpose.msra.mxu0 %v2013_v26  ;;  %2502 = vmatpush.bf16.xpose.msra.mxu2 %v2493_v51  ;;  %v1996_v18 = vunpack.c.l.b16 %v1948_v55  ;;  %v2476_v58 = vunpack.c.l.b16 %v2428_v54  ;;  %v1947_v22 = vsel %vm5658_vm10, %v6007_v17, 0  ;;  %v2427_v39 = vsel %vm5940_vm12, %v6007_v17, 0  ;;  %v6278_v55 = vld [vmem:[%s7832_s1 + $0x10] sm:$0xff] }
 0x20e   : > { %v1019_v2 = vunpack.c.l.b16 %v5968_v1  ;;  %v1946_v56 = vsel %vm5658_vm10, %v6004_v14, 0  ;;  %v2426_v26 = vsel %vm5940_vm12, %v6004_v14, 0  ;;  %v1018_v51 = vunpack.c.l.b16 %v7936_v49 }
 0x20f   : > { %v2009_v7 = vpack.c.b16 %v1997_v6, %v1996_v18  ;;  %v2489_v15 = vpack.c.b16 %v2477_v13, %v2476_v58  ;;  %v1995_v41 = vunpack.c.l.b16 %v1947_v22  ;;  %v2475_v31 = vunpack.c.l.b16 %v2427_v39  ;;  %v6283_v13 = vld [vmem:[%s7832_s1 + $0x18] sm:$0xff] }
 0x210   : > { %v6207_v42 = vpack.c.b16 %v1019_v2, %v1018_v51  ;;  %v1994_v10 = vunpack.c.l.b16 %v1946_v56  ;;  %v2474_v17 = vunpack.c.l.b16 %v2426_v26  ;;  %v1945_v21 = vsel %vm5658_vm10, %v6049_v34, 0  ;;  %v6300_v2 = vld [vmem:[%s7832_s1 + $0x20] sm:$0xff] }
 0x211   : > { %v2425_v49 = vsel %vm5940_vm12, %v6049_v34, 0  ;;  %v1944_v14 = vsel %vm5658_vm10, %v6046_v0, 0  ;;  %v2424_v19 = vsel %vm5940_vm12, %v6046_v0, 0  ;;  %v1993_v4 = vunpack.c.l.b16 %v1945_v21 }
 0x212   : > { %v2008_v1 = vpack.c.b16 %v1995_v41, %v1994_v10  ;;  %v2488_v43 = vpack.c.b16 %v2475_v31, %v2474_v17  ;;  %v2473_v46 = vunpack.c.l.b16 %v2425_v49  ;;  %v1992_v33 = vunpack.c.l.b16 %v1944_v14  ;;  %v6319_v49 = vld [vmem:[%s7832_s1 + $0x28] sm:$0xff] }
 0x213   : > { %v2472_v57 = vunpack.c.l.b16 %v2424_v19  ;;  %v1943_v34 = vsel %vm5658_vm10, %v6088_v63, 0  ;;  %v2423_v50 = vsel %vm5940_vm12, %v6088_v63, 0  ;;  %v1942_v0 = vsel %vm5658_vm10, %v7941_v30, 0 }
 0x214   : > { %v2422_v8 = vsel %vm5940_vm12, %v7941_v30, 0  ;;  %v1991_v45 = vunpack.c.l.b16 %v1943_v34  ;;  %v2471_v25 = vunpack.c.l.b16 %v2423_v50  ;;  %v1990_v60 = vunpack.c.l.b16 %v1942_v0  ;;  %v6343_v34 = vld [vmem:[%s7832_s1 + $0x38] sm:$0xff] }
 0x215   : > { %2023 = vmatpush.bf16.xpose.msra.mxu0 %v2012_v40  ;;  %2503 = vmatpush.bf16.xpose.msra.mxu2 %v2492_v24  ;;  %v2007_v40 = vpack.c.b16 %v1993_v4, %v1992_v33  ;;  %v2487_v24 = vpack.c.b16 %v2473_v46, %v2472_v57  ;;  %v2470_v48 = vunpack.c.l.b16 %v2422_v8 }
 0x216   : > { %v2006_v11 = vpack.c.b16 %v1991_v45, %v1990_v60 }
 0x217   : > { %v2486_v63 = vpack.c.b16 %v2471_v25, %v2470_v48  ;;  %v6356_v48 = vld [vmem:[%s7832_s1 + $0x40] sm:$0xff] }
 0x21c   : > { %1107 = vmatmul.bf16.gmra.mxu0 %v6177_v9  ;;  %1555 = vmatmul.bf16.gmra.mxu2 %v6177_v9 }
 0x21d   : > { %2024 = vmatpush.bf16.xpose.msra.mxu0 %v2011_v32  ;;  %2504 = vmatpush.bf16.xpose.msra.mxu2 %v2491_v38  ;;  %v7946_v32 = vld [vmem:[#allocation29_spill] sm:$0xff] }
 0x21e   : > { %v6248_v38 = vld [vmem:[%s7832_s1] sm:$0xff] }
 0x225   : > { %2025 = vmatpush.bf16.xpose.msra.mxu0 %v2010_v12  ;;  %2505 = vmatpush.bf16.xpose.msra.mxu2 %v2490_v28 }
 0x22c   : > { %1112 = vmatmul.bf16.gmra.mxu0 %v6207_v42  ;;  %1560 = vmatmul.bf16.gmra.mxu2 %v6207_v42 }
 0x22d   : > { %2026 = vmatpush.bf16.xpose.msra.mxu0 %v2009_v7  ;;  %2506 = vmatpush.bf16.xpose.msra.mxu2 %v2489_v15 }
 0x235   : > { %2027 = vmatpush.bf16.xpose.msra.mxu0 %v2008_v1  ;;  %2507 = vmatpush.bf16.xpose.msra.mxu2 %v2488_v43 }
 0x23c   : > { %1117 = vmatmul.bf16.gmra.mxu0 %v7945_v29  ;;  %1565 = vmatmul.bf16.gmra.mxu2 %v7945_v29 }
 0x23d   : > { %2028 = vmatpush.bf16.xpose.msra.mxu0 %v2007_v40  ;;  %2508 = vmatpush.bf16.xpose.msra.mxu2 %v2487_v24 }
 0x245   : > { %2029 = vmatpush.bf16.xpose.msra.mxu0 %v2006_v11  ;;  %2509 = vmatpush.bf16.xpose.msra.mxu2 %v2486_v63 }
 0x24c   : > { %1122 = vmatmul.bf16.gmra.mxu0 %v7946_v32  ;;  %1570 = vmatmul.bf16.gmra.mxu2 %v7946_v32 }
 0x25c   : > { %1127 = vmatmul.bf16.gmra.mxu0 %v7947_v47  ;;  %1575 = vmatmul.bf16.gmra.mxu2 %v7947_v47 }
 0x26c   : > { %1132 = vmatmul.bf16.gmra.mxu0 %v7948_v62  ;;  %1580 = vmatmul.bf16.gmra.mxu2 %v7948_v62 }
 0x27c   : > { %1137 = vmatmul.bf16.gmra.mxu0 %v5828_v35  ;;  %1585 = vmatmul.bf16.gmra.mxu2 %v5828_v35 }
 0x289   : > { %v1103_v30 = vpop.f32.mrf.mxu0 }
 0x28a   : > { %v1143_v44 = vmul.f32 0.17677669, %v1103_v30 }
 0x28c   : > { %2030 = vmatmul.bf16.vlgmr.msra.gmra.mxu0 %v6147_v5  ;;  %2510 = vmatmul.bf16.vlgmr.msra.gmra.mxu2 %v6147_v5  ;;  %v6253_v23 = vadd.f32 %v6248_v38, %v1143_v44 }
 0x28e   : > { %1191 = vmax.xlane.f32.xlu1 %v6253_v23 }
 0x28f   : > { %v1551_v52 = vpop.f32.mrf.mxu2 }
 0x290   : > { %v1591_v59 = vmul.f32 0.17677669, %v1551_v52 }
 0x291   : > { %v1105_v16 = vpop.f32.mrf.mxu0 }
 0x292   : > { %v1144_v27 = vmul.f32 0.17677669, %v1105_v16  ;;  %v6262_v37 = vadd.f32 %v1591_v59, %v6248_v38  ;;  %v6371_v59 = vld [vmem:[%s7832_s1 + $0x48] sm:$0xff] }
 0x294   : > { %1639 = vmax.xlane.f32.xlu0 %v6262_v37  ;;  %v6266_v5 = vadd.f32 %v6259_v3, %v1144_v27 }
 0x296   : > { %1193 = vmax.xlane.f32.xlu1 %v6266_v5 }
 0x297   : > { %v1553_v53 = vpop.f32.mrf.mxu2 }
 0x298   : > { %v1592_v36 = vmul.f32 0.17677669, %v1553_v53 }
 0x299   : > { %v1108_v12 = vpop.f32.mrf.mxu0 }
 0x29a   : > { %v6270_v28 = vadd.f32 %v1592_v36, %v6259_v3  ;;  %v1145_v20 = vmul.f32 0.17677669, %v1108_v12 }
 0x29c   : > { %2515 = vmatmul.bf16.gmra.mxu2 %v6177_v9  ;;  %1641 = vmax.xlane.f32.xlu0 %v6270_v28 }
 0x29d   : > { %2035 = vmatmul.bf16.gmra.mxu0 %v6177_v9  ;;  %v6289_v9 = vadd.f32 %v6278_v55, %v1145_v20  ;;  %v6384_v20 = vld [vmem:[%s7832_s1 + $0x50] sm:$0xff] }
 0x29f   : > { %v1556_v61 = vpop.f32.mrf.mxu2 }
 0x2a0   : > { %v1593_v54 = vmul.f32 0.17677669, %v1556_v61 }
 0x2a1   : > { %v1110_v6 = vpop.f32.mrf.mxu0 }
 0x2a2   : > { %v1146_v18 = vmul.f32 0.17677669, %v1110_v6  ;;  %v6286_v58 = vadd.f32 %v6278_v55, %v1593_v54 }
 0x2a4   : > { %1643 = vmax.xlane.f32.xlu2 %v6286_v58  ;;  %1195 = vmax.xlane.f32.xlu0 %v6289_v9  ;;  %v6294_v7 = vadd.f32 %v6283_v13, %v1146_v18 }
 0x2a6   : > { %1197 = vmax.xlane.f32.xlu1 %v6294_v7 }
 0x2a7   : > { %v1558_v15 = vpop.f32.mrf.mxu2 }
 0x2a8   : > { %v1594_v22 = vmul.f32 0.17677669, %v1558_v15 }
 0x2a9   : > { %v1113_v39 = vpop.f32.mrf.mxu0 }
 0x2aa   : > { %v1147_v56 = vmul.f32 0.17677669, %v1113_v39  ;;  %v6303_v26 = vadd.f32 %v1594_v22, %v6283_v13  ;;  %v6399_v39 = vld [vmem:[%s7832_s1 + $0x58] sm:$0xff] }
 0x2ac   : > { %2520 = vmatmul.bf16.gmra.mxu2 %v6207_v42  ;;  %1645 = vmax.xlane.f32.xlu2 %v6303_v26  ;;  %v6308_v51 = vadd.f32 %v6300_v2, %v1147_v56 }
 0x2ad   : > { %2040 = vmatmul.bf16.gmra.mxu0 %v6207_v42  ;;  %v6324_v42 = vld [vmem:[%s7832_s1 + $0x30] sm:$0xff] }
 0x2ae   : > { %1199 = vmax.xlane.f32.xlu1 %v6308_v51 }
 0x2af   : > { %v1561_v41 = vpop.f32.mrf.mxu2 }
 0x2b0   : > { %v1595_v31 = vmul.f32 0.17677669, %v1561_v41 }
 0x2b1   : > { %v1115_v10 = vpop.f32.mrf.mxu0 }
 0x2b2   : > { %v6313_v17 = vadd.f32 %v1595_v31, %v6300_v2  ;;  %v1148_v1 = vmul.f32 0.17677669, %v1115_v10 }
 0x2b4   : > { %1647 = vmax.xlane.f32.xlu2 %v6313_v17  ;;  %v6330_v46 = vadd.f32 %v6319_v49, %v1148_v1 }
 0x2b7   : > { %v1563_v43 = vpop.f32.mrf.mxu2 }
 0x2b8   : > { %v1596_v21 = vmul.f32 0.17677669, %v1563_v43  ;;  %v6412_v43 = vld [vmem:[%s7832_s1 + $0x60] sm:$0xff] }
 0x2b9   : > { %v1118_v14 = vpop.f32.mrf.mxu0 }
 0x2ba   : > { %v1149_v19 = vmul.f32 0.17677669, %v1118_v14  ;;  %v6327_v4 = vadd.f32 %v6319_v49, %v1596_v21 }
 0x2bc   : > { %2525 = vmatmul.bf16.gmra.mxu2 %v7945_v29  ;;  %1649 = vmax.xlane.f32.xlu0 %v6327_v4  ;;  %v6335_v33 = vadd.f32 %v6324_v42, %v1149_v19 }
 0x2bd   : > { %2045 = vmatmul.bf16.gmra.mxu0 %v7945_v29  ;;  %1201 = vmax.xlane.f32.xlu2 %v6330_v46 }
 0x2be   : > { %1203 = vmax.xlane.f32.xlu1 %v6335_v33 }
 0x2bf   : > { %v1566_v57 = vpop.f32.mrf.mxu2 }
 0x2c0   : > { %v1597_v40 = vmul.f32 0.17677669, %v1566_v57 }
 0x2c1   : > { %v1120_v24 = vpop.f32.mrf.mxu0 }
 0x2c2   : > { %v1150_v50 = vmul.f32 0.17677669, %v1120_v24  ;;  %v6346_v0 = vadd.f32 %v1597_v40, %v6324_v42 }
 0x2c4   : > { %1651 = vmax.xlane.f32.xlu0 %v6346_v0  ;;  %v6350_v8 = vadd.f32 %v6343_v34, %v1150_v50  ;;  %v6427_v50 = vld [vmem:[%s7832_s1 + $0x68] sm:$0xff] }
 0x2c5   : > { %7949 = vst [vmem:[#allocation35_spill] sm:$0xff] %v6427_v50 }
 0x2c6   : > { %1205 = vmax.xlane.f32.xlu2 %v6350_v8 }
 0x2c7   : > { %v1568_v45 = vpop.f32.mrf.mxu2 }
 0x2c8   : > { %v1598_v25 = vmul.f32 0.17677669, %v1568_v45 }
 0x2c9   : > { %v1123_v60 = vpop.f32.mrf.mxu0 }
 0x2ca   : > { %v1151_v29 = vmul.f32 0.17677669, %v1123_v60  ;;  %v6359_v11 = vadd.f32 %v1598_v25, %v6343_v34 }
 0x2cc   : > { %2530 = vmatmul.bf16.gmra.mxu2 %v7946_v32  ;;  %1653 = vmax.xlane.f32.xlu1 %v6359_v11  ;;  %v6364_v63 = vadd.f32 %v6356_v48, %v1151_v29 }
 0x2cd   : > { %2050 = vmatmul.bf16.gmra.mxu0 %v7946_v32 }
 0x2ce   : > { %1207 = vmax.xlane.f32.xlu0 %v6364_v63 }
 0x2cf   : > { %v1571_v30 = vpop.f32.mrf.mxu2 }
 0x2d0   : > { %v1599_v44 = vmul.f32 0.17677669, %v1571_v30 }
 0x2d1   : > { %v1125_v52 = vpop.f32.mrf.mxu0 }
 0x2d2   : > { %v1152_v16 = vmul.f32 0.17677669, %v1125_v52  ;;  %v6374_v27 = vadd.f32 %v1599_v44, %v6356_v48  ;;  %v1173_v44 = vld [vmem:[%s7832_s1 + $0x70] sm:$0xff] }
 0x2d4   : > { %1655 = vmax.xlane.f32.xlu2 %v6374_v27  ;;  %v6378_v53 = vadd.f32 %v6371_v59, %v1152_v16 }
 0x2d6   : > { %1209 = vmax.xlane.f32.xlu1 %v6378_v53 }
 0x2d7   : > { %v1573_v32 = vpop.f32.mrf.mxu2 }
 0x2d8   : > { %v1600_v36 = vmul.f32 0.17677669, %v1573_v32 }
 0x2d9   : > { %v1128_v12 = vpop.f32.mrf.mxu0 }
 0x2da   : > { %v1153_v61 = vmul.f32 0.17677669, %v1128_v12  ;;  %v6387_v54 = vadd.f32 %v1600_v36, %v6371_v59 }
 0x2dc   : > { %2535 = vmatmul.bf16.gmra.mxu2 %v7947_v47  ;;  %1657 = vmax.xlane.f32.xlu0 %v6387_v54  ;;  %v6392_v6 = vadd.f32 %v6384_v20, %v1153_v61 }
 0x2dd   : > { %2055 = vmatmul.bf16.gmra.mxu0 %v7947_v47 }
 0x2de   : > { %1211 = vmax.xlane.f32.xlu2 %v6392_v6 }
 0x2df   : > { %v1576_v18 = vpop.f32.mrf.mxu2 }
 0x2e0   : > { %v1601_v15 = vmul.f32 0.17677669, %v1576_v18 }
 0x2e1   : > { %v1130_v22 = vpop.f32.mrf.mxu0 }
 0x2e2   : > { %v1154_v56 = vmul.f32 0.17677669, %v1130_v22  ;;  %v6402_v41 = vadd.f32 %v1601_v15, %v6384_v20  ;;  %v1174_v15 = vld [vmem:[%s7832_s1 + $0x78] sm:$0xff] }
 0x2e4   : > { %1659 = vmax.xlane.f32.xlu1 %v6402_v41  ;;  %v6406_v31 = vadd.f32 %v6399_v39, %v1154_v56 }
 0x2e6   : > { %1213 = vmax.xlane.f32.xlu0 %v6406_v31 }
 0x2e7   : > { %v1578_v47 = vpop.f32.mrf.mxu2 }
 0x2e8   : > { %v1602_v10 = vmul.f32 0.17677669, %v1578_v47 }
 0x2e9   : > { %v1133_v1 = vpop.f32.mrf.mxu0 }
 0x2ea   : > { %v1155_v21 = vmul.f32 0.17677669, %v1133_v1  ;;  %v6415_v14 = vadd.f32 %v1602_v10, %v6399_v39 }
 0x2ec   : > { %2540 = vmatmul.bf16.gmra.mxu2 %v7948_v62  ;;  %1661 = vmax.xlane.f32.xlu2 %v6415_v14  ;;  %v6420_v19 = vadd.f32 %v6412_v43, %v1155_v21 }
 0x2ed   : > { %2060 = vmatmul.bf16.gmra.mxu0 %v7948_v62 }
 0x2ee   : > { %1215 = vmax.xlane.f32.xlu1 %v6420_v19 }
 0x2ef   : > { %v1581_v57 = vpop.f32.mrf.mxu2 }
 0x2f0   : > { %v1603_v40 = vmul.f32 0.17677669, %v1581_v57 }
 0x2f1   : > { %v1135_v24 = vpop.f32.mrf.mxu0 }
 0x2f2   : > { %v1156_v45 = vmul.f32 0.17677669, %v1135_v24  ;;  %v6430_v25 = vadd.f32 %v1603_v40, %v6412_v43 }
 0x2f4   : > { %1663 = vmax.xlane.f32.xlu0 %v6430_v25  ;;  %v6434_v60 = vadd.f32 %v6427_v50, %v1156_v45 }
 0x2f6   : > { %1217 = vmax.xlane.f32.xlu2 %v6434_v60 }
 0x2f7   : > { %v1583_v62 = vpop.f32.mrf.mxu2 }
 0x2f8   : > { %v1604_v29 = vmul.f32 0.17677669, %v1583_v62 }
 0x2f9   : > { %v1138_v30 = vpop.f32.mrf.mxu0 }
 0x2fa   : > { %v1157_v52 = vmul.f32 0.17677669, %v1138_v30  ;;  %v6441_v16 = vadd.f32 %v1604_v29, %v6427_v50 }
 0x2fc   : > { %2545 = vmatmul.bf16.gmra.mxu2 %v5828_v35  ;;  %1665 = vmax.xlane.f32.xlu1 %v6441_v16  ;;  %v6445_v32 = vadd.f32 %v1173_v44, %v1157_v52 }
 0x2fd   : > { %2065 = vmatmul.bf16.gmra.mxu0 %v5828_v35 }
 0x2fe   : > { %1219 = vmax.xlane.f32.xlu0 %v6445_v32 }
 0x2ff   : > { %v1586_v36 = vpop.f32.mrf.mxu2 }
 0x300   : > { %v1605_v12 = vmul.f32 0.17677669, %v1586_v36 }
 0x301   : > { %v1192_v61 = vpop.xlane.xlu1 %1191  ;;  %v1140_v18 = vpop.f32.mrf.mxu0 }
 0x302   : > { %v1158_v22 = vmul.f32 0.17677669, %v1140_v18  ;;  %v6452_v56 = vadd.f32 %v1605_v12, %v1173_v44  ;;  %v1223_v10 = vsub.f32 %v6253_v23, %v1192_v61 }
 0x304   : > { %1667 = vmax.xlane.f32.xlu2 %v6452_v56  ;;  %v6455_v47 = vadd.f32 %v1174_v15, %v1158_v22  ;;  %v1239_v40 = vmul.f32 1.442695, %v1223_v10 }
 0x306   : > { %1221 = vmax.xlane.f32.xlu1 %v6455_v47  ;;  %4806 = vpow2.f32 %v1239_v40 }
 0x307   : > { %v1640_v35 = vpop.xlane.xlu0 %1639  ;;  %v1588_v1 = vpop.f32.mrf.mxu2 }
 0x308   : > { %v1671_v21 = vsub.f32 %v6262_v37, %v1640_v35  ;;  %v1606_v57 = vmul.f32 0.17677669, %v1588_v1 }
 0x309   : > { %v2031_v24 = vpop.f32.mrf.mxu0  ;;  %v1194_v45 = vpop.xlane.xlu1 %1193 }
 0x30a   : > { %v2071_v62 = vmul.f32 0.17677669, %v2031_v24  ;;  %v6460_v29 = vadd.f32 %v1606_v57, %v1174_v15  ;;  %v1687_v30 = vmul.f32 1.442695, %v1671_v21  ;;  %v1224_v23 = vsub.f32 %v6266_v5, %v1194_v45 }
 0x30c   : > { %1669 = vmax.xlane.f32.xlu0 %v6460_v29  ;;  %v6464_v44 = vadd.f32 %v2071_v62, %v6248_v38  ;;  %4808 = vpow2.f32 %v1687_v30  ;;  %v1241_v12 = vmul.f32 1.442695, %v1224_v23  ;;  %v6471_v15 = vpop.eup %4806 }
 0x30e   : > { %2119 = vmax.xlane.f32.xlu2 %v6464_v44  ;;  %4810 = vpow2.f32 %v1241_v12 }
 0x30f   : > { %v1642_v37 = vpop.xlane.xlu0 %1641  ;;  %v2511_v52 = vpop.f32.mrf.mxu2 }
 0x310   : > { %v2551_v36 = vmul.f32 0.17677669, %v2511_v52  ;;  %v1672_v5 = vsub.f32 %v6270_v28, %v1642_v37 }
 0x311   : > { %v2033_v61 = vpop.f32.mrf.mxu0 }
 0x312   : > { %v6469_v18 = vadd.f32 %v2551_v36, %v6248_v38  ;;  %v6475_v22 = vpop.eup %4808  ;;  %v2072_v10 = vmul.f32 0.17677669, %v2033_v61  ;;  %v1689_v38 = vmul.f32 1.442695, %v1672_v5 }
 0x314   : > { %1271 = vadd.xlane.f32.xlu0 %v6471_v15  ;;  %2599 = vmax.xlane.f32.xlu1 %v6469_v18  ;;  %v6481_v24 = vadd.f32 %v2072_v10, %v6259_v3  ;;  %v6483_v45 = vpop.eup %4810  ;;  %4812 = vpow2.f32 %v1689_v38 }
 0x316   : > { %1719 = vadd.xlane.f32.xlu2 %v6475_v22 }
 0x317   : > { %v1644_v35 = vpop.xlane.xlu2 %1643  ;;  %v2513_v1 = vpop.f32.mrf.mxu2 }
 0x318   : > { %v2552_v21 = vmul.f32 0.17677669, %v2513_v1  ;;  %v1196_v57 = vpop.xlane.xlu0 %1195  ;;  %v1673_v23 = vsub.f32 %v6286_v58, %v1644_v35 }
 0x319   : > { %v1225_v40 = vsub.f32 %v6289_v9, %v1196_v57  ;;  %v1198_v37 = vpop.xlane.xlu1 %1197 }
 0x31a   : > { %v2036_v30 = vpop.f32.mrf.mxu0  ;;  %v6488_v28 = vadd.f32 %v2552_v21, %v6259_v3  ;;  %v1691_v61 = vmul.f32 1.442695, %v1673_v23  ;;  %v6496_v10 = vpop.eup %4812  ;;  %v1226_v35 = vsub.f32 %v6294_v7, %v1198_v37 }
 0x31b   : > { %v1243_v62 = vmul.f32 1.442695, %v1225_v40  ;;  %v2073_v52 = vmul.f32 0.17677669, %v2036_v30 }
 0x31c   : > { %2121 = vmax.xlane.f32.xlu0 %v6481_v24  ;;  %1273 = vadd.xlane.f32.xlu1 %v6483_v45  ;;  %v1245_v57 = vmul.f32 1.442695, %v1226_v35 }
 0x31d   : > { %4814 = vpow2.f32 %v1243_v62  ;;  %v6494_v5 = vadd.f32 %v2073_v52, %v6278_v55 }
 0x31e   : > { %2601 = vmax.xlane.f32.xlu2 %v6488_v28  ;;  %4816 = vpow2.f32 %v1691_v61 }
 0x31f   : > { %v1646_v9 = vpop.xlane.xlu2 %1645  ;;  %v2516_v36 = vpop.f32.mrf.mxu2 }
 0x320   : > { %v1674_v12 = vsub.f32 %v6303_v26, %v1646_v9  ;;  %v2553_v1 = vmul.f32 0.17677669, %v2516_v36 }
 0x321   : > { %v1200_v38 = vpop.xlane.xlu1 %1199 }
 0x322   : > { %v1693_v3 = vmul.f32 1.442695, %v1674_v12  ;;  %v6505_v40 = vadd.f32 %v2553_v1, %v6278_v55  ;;  %v1227_v30 = vsub.f32 %v6308_v51, %v1200_v38  ;;  %v2038_v23 = vpop.f32.mrf.mxu0 }
 0x323   : > { %v6500_v58 = vpop.eup %4814  ;;  %v2074_v55 = vmul.f32 0.17677669, %v2038_v23 }
 0x324   : > { %1721 = vadd.xlane.f32.xlu0 %v6496_v10  ;;  %2123 = vmax.xlane.f32.xlu1 %v6494_v5  ;;  %4818 = vpow2.f32 %v1693_v3  ;;  %v6507_v62 = vpop.eup %4816  ;;  %v1247_v9 = vmul.f32 1.442695, %v1227_v30 }
 0x325   : > { %4820 = vpow2.f32 %v1245_v57 }
 0x326   : > { %1275 = vadd.xlane.f32.xlu2 %v6500_v58  ;;  %4822 = vpow2.f32 %v1247_v9 }
 0x327   : > { %v2518_v26 = vpop.f32.mrf.mxu2  ;;  %v1648_v21 = vpop.xlane.xlu2 %1647 }
 0x328   : > { %v1675_v37 = vsub.f32 %v6313_v17, %v1648_v21  ;;  %v2554_v52 = vmul.f32 0.17677669, %v2518_v26  ;;  %v6524_v17 = vadd.f32 %v2074_v55, %v6283_v13 }
 0x32a   : > { %v6512_v7 = vpop.eup %4818  ;;  %v1695_v36 = vmul.f32 1.442695, %v1675_v37  ;;  %v6517_v51 = vadd.f32 %v2554_v52, %v6283_v13 }
 0x32b   : > { %v6519_v35 = vpop.eup %4820 }
 0x32c   : > { %2603 = vmax.xlane.f32.xlu0 %v6505_v40  ;;  %1723 = vadd.xlane.f32.xlu1 %v6507_v62  ;;  %4824 = vpow2.f32 %v1695_v36  ;;  %v6529_v30 = vpop.eup %4822 }
 0x32e   : > { %1725 = vadd.xlane.f32.xlu2 %v6512_v7 }
 0x32f   : > { %v2521_v12 = vpop.f32.mrf.mxu2  ;;  %v1650_v61 = vpop.xlane.xlu0 %1649 }
 0x330   : > { %v1202_v3 = vpop.xlane.xlu2 %1201  ;;  %v1676_v1 = vsub.f32 %v6327_v4, %v1650_v61  ;;  %v2555_v21 = vmul.f32 0.17677669, %v2521_v12 }
 0x331   : > { %v1228_v26 = vsub.f32 %v6330_v46, %v1202_v3  ;;  %v1204_v38 = vpop.xlane.xlu1 %1203  ;;  %v2041_v3 = vpop.f32.mrf.mxu0 }
 0x332   : > { %v1697_v57 = vmul.f32 1.442695, %v1676_v1  ;;  %v6531_v37 = vpop.eup %4824  ;;  %v1229_v13 = vsub.f32 %v6335_v33, %v1204_v38  ;;  %v6537_v4 = vadd.f32 %v2555_v21, %v6300_v2 }
 0x333   : > { %v1249_v52 = vmul.f32 1.442695, %v1228_v26 }
 0x334   : > { %1277 = vadd.xlane.f32.xlu0 %v6519_v35  ;;  %2605 = vmax.xlane.f32.xlu1 %v6517_v51  ;;  %4826 = vpow2.f32 %v1697_v57  ;;  %v1251_v61 = vmul.f32 1.442695, %v1229_v13 }
 0x335   : > { %4828 = vpow2.f32 %v1249_v52 }
 0x336   : > { %2125 = vmax.xlane.f32.xlu2 %v6524_v17  ;;  %4830 = vpow2.f32 %v1251_v61 }
 0x337   : > { %v2523_v9 = vpop.f32.mrf.mxu2  ;;  %v1652_v55 = vpop.xlane.xlu0 %1651 }
 0x338   : > { %v2556_v36 = vmul.f32 0.17677669, %v2523_v9  ;;  %v1677_v12 = vsub.f32 %v6346_v0, %v1652_v55 }
 0x339   : > { %v1206_v23 = vpop.xlane.xlu2 %1205  ;;  %v2043_v55 = vpop.f32.mrf.mxu0 }
 0x33a   : > { %v1230_v46 = vsub.f32 %v6350_v8, %v1206_v23  ;;  %v6543_v26 = vadd.f32 %v2556_v36, %v6319_v49  ;;  %v6545_v38 = vpop.eup %4826  ;;  %v1699_v21 = vmul.f32 1.442695, %v1677_v12 }
 0x33b   : > { %v6549_v8 = vpop.eup %4828 }
 0x33c   : > { %1727 = vadd.xlane.f32.xlu0 %v6531_v37  ;;  %1279 = vadd.xlane.f32.xlu1 %v6529_v30  ;;  %v1253_v33 = vmul.f32 1.442695, %v1230_v46  ;;  %v6554_v9 = vpop.eup %4830 }
 0x33e   : > { %2607 = vmax.xlane.f32.xlu2 %v6537_v4  ;;  %4832 = vpow2.f32 %v1253_v33 }
 0x33f   : > { %v1654_v1 = vpop.xlane.xlu1 %1653  ;;  %4834 = vpow2.f32 %v1699_v21 }
 0x340   : > { %v1678_v0 = vsub.f32 %v6359_v11, %v1654_v1  ;;  %v2076_v11 = vmul.f32 0.17677669, %v2043_v55 }
 0x341   : > { %v1208_v57 = vpop.xlane.xlu0 %1207 }
 0x342   : > { %v1231_v23 = vsub.f32 %v6364_v63, %v1208_v57  ;;  %v1701_v52 = vmul.f32 1.442695, %v1678_v0  ;;  %v6565_v1 = vadd.f32 %v2076_v11, %v6319_v49  ;;  %v2526_v57 = vpop.f32.mrf.mxu2  ;;  %v2046_v11 = vpop.f32.mrf.mxu0 }
 0x344   : > { %2609 = vmax.xlane.f32.xlu0 %v6543_v26  ;;  %1729 = vadd.xlane.f32.xlu1 %v6545_v38  ;;  %v6556_v13 = vpop.eup %4832  ;;  %v1255_v46 = vmul.f32 1.442695, %v1231_v23  ;;  %4836 = vpow2.f32 %v1701_v52 }
 0x345   : > { %v6560_v36 = vpop.eup %4834 }
 0x346   : > { %1281 = vadd.xlane.f32.xlu2 %v6549_v8  ;;  %4838 = vpow2.f32 %v1255_v46  ;;  %v2557_v46 = vmul.f32 0.17677669, %v2526_v57 }
 0x347   : > { %v1656_v61 = vpop.xlane.xlu2 %1655 }
 0x348   : > { %v1679_v23 = vsub.f32 %v6374_v27, %v1656_v61  ;;  %v6580_v27 = vadd.f32 %v2557_v46, %v6324_v42 }
 0x349   : > { %v1210_v33 = vpop.xlane.xlu1 %1209 }
 0x34a   : > { %v6567_v21 = vpop.eup %4836  ;;  %v1232_v55 = vsub.f32 %v6378_v53, %v1210_v33  ;;  %v1703_v49 = vmul.f32 1.442695, %v1679_v23 }
 0x34c   : > { %1283 = vadd.xlane.f32.xlu0 %v6554_v9  ;;  %1285 = vadd.xlane.f32.xlu1 %v6556_v13  ;;  %v6572_v52 = vpop.eup %4838 }
 0x34d   : > { %7950 = vst [vmem:[#allocation36_spill] sm:$0xff] %v6572_v52 }
 0x34e   : > { %1731 = vadd.xlane.f32.xlu2 %v6560_v36 }
 0x34f   : > { %v1658_v12 = vpop.xlane.xlu0 %1657 }
 0x350   : > { %v1680_v63 = vsub.f32 %v6387_v54, %v1658_v12  ;;  %v2075_v54 = vmul.f32 0.17677669, %v2041_v3  ;;  %v1257_v12 = vmul.f32 1.442695, %v1232_v55  ;;  %v2528_v3 = vpop.f32.mrf.mxu2 }
 0x351   : > { %v1212_v50 = vpop.xlane.xlu2 %1211  ;;  %v2558_v33 = vmul.f32 0.17677669, %v2528_v3 }
 0x352   : > { %v1705_v0 = vmul.f32 1.442695, %v1680_v63  ;;  %v6577_v63 = vadd.f32 %v2075_v54, %v6300_v2  ;;  %v1233_v61 = vsub.f32 %v6392_v6, %v1212_v50  ;;  %v2048_v54 = vpop.f32.mrf.mxu0 }
 0x353   : > { %v6596_v6 = vadd.f32 %v2558_v33, %v6343_v34 }
 0x354   : > { %1733 = vadd.xlane.f32.xlu0 %v6567_v21  ;;  %2129 = vmax.xlane.f32.xlu1 %v6565_v1  ;;  %4840 = vpow2.f32 %v1705_v0  ;;  %v1259_v57 = vmul.f32 1.442695, %v1233_v61  ;;  %v2077_v61 = vmul.f32 0.17677669, %v2046_v11 }
 0x355   : > { %4842 = vpow2.f32 %v1703_v49 }
 0x356   : > { %1287 = vadd.xlane.f32.xlu2 %v6572_v52  ;;  %4844 = vpow2.f32 %v1257_v12  ;;  %v2078_v12 = vmul.f32 0.17677669, %v2048_v54 }
 0x357   : > { %v1660_v2 = vpop.xlane.xlu1 %1659  ;;  %4846 = vpow2.f32 %v1259_v57 }
 0x358   : > { %v1681_v46 = vsub.f32 %v6402_v41, %v1660_v2 }
 0x359   : > { %v1214_v49 = vpop.xlane.xlu0 %1213 }
 0x35a   : > { %v6584_v53 = vpop.eup %4840  ;;  %v1234_v3 = vsub.f32 %v6406_v31, %v1214_v49  ;;  %v1707_v52 = vmul.f32 1.442695, %v1681_v46  ;;  %v6610_v31 = vadd.f32 %v2077_v61, %v6324_v42 }
 0x35b   : > { %7951 = vst [vmem:[#allocation27_spill] sm:$0xff] %v6584_v53  ;;  %v6588_v0 = vpop.eup %4842 }
 0x35c   : > { %2127 = vmax.xlane.f32.xlu0 %v6577_v63  ;;  %2611 = vmax.xlane.f32.xlu1 %v6580_v27  ;;  %7952 = vst [vmem:[#allocation26_spill] sm:$0xff] %v6588_v0  ;;  %v6590_v55 = vpop.eup %4844  ;;  %v1261_v33 = vmul.f32 1.442695, %v1234_v3  ;;  %4848 = vpow2.f32 %v1707_v52  ;;  %v2531_v52 = vpop.f32.mrf.mxu2 }
 0x35d   : > { %7953 = vst [vmem:[#allocation34_spill] sm:$0xff] %v6590_v55 }
 0x35e   : > { %1737 = vadd.xlane.f32.xlu2 %v6584_v53 }
 0x35f   : > { %v1662_v23 = vpop.xlane.xlu2 %1661 }
 0x360   : > { %v1682_v50 = vsub.f32 %v6415_v14, %v1662_v23 }
 0x361   : > { %v1216_v41 = vpop.xlane.xlu1 %1215 }
 0x362   : > { %v1709_v53 = vmul.f32 1.442695, %v1682_v50  ;;  %v1235_v57 = vsub.f32 %v6420_v19, %v1216_v41 }
 0x364   : > { %1289 = vadd.xlane.f32.xlu0 %v6590_v55  ;;  %1735 = vadd.xlane.f32.xlu1 %v6588_v0  ;;  %v6602_v55 = vadd.f32 %v2078_v12, %v6343_v34  ;;  %v6604_v0 = vpop.eup %4846  ;;  %4850 = vpow2.f32 %v1709_v53  ;;  %v1263_v23 = vmul.f32 1.442695, %v1235_v57 }
 0x365   : > { %4852 = vpow2.f32 %v1261_v33  ;;  %v6615_v19 = vpop.eup %4848 }
 0x366   : > { %2613 = vmax.xlane.f32.xlu2 %v6596_v6  ;;  %4854 = vpow2.f32 %v1263_v23 }
 0x367   : > { %v1664_v14 = vpop.xlane.xlu0 %1663 }
 0x368   : > { %v1683_v34 = vsub.f32 %v6430_v25, %v1664_v14 }
 0x369   : > { %v1218_v2 = vpop.xlane.xlu2 %1217 }
 0x36a   : > { %v1236_v11 = vsub.f32 %v6434_v60, %v1218_v2  ;;  %v6617_v49 = vpop.eup %4850  ;;  %v1711_v50 = vmul.f32 1.442695, %v1683_v34  ;;  %v2533_v2 = vpop.f32.mrf.mxu2 }
 0x36b   : > { %v6621_v60 = vpop.eup %4852 }
 0x36c   : > { %2133 = vmax.xlane.f32.xlu0 %v6602_v55  ;;  %1291 = vadd.xlane.f32.xlu1 %v6604_v0  ;;  %v1265_v54 = vmul.f32 1.442695, %v1236_v11  ;;  %v6626_v61 = vpop.eup %4854 }
 0x36e   : > { %2131 = vmax.xlane.f32.xlu2 %v6610_v31  ;;  %4856 = vpow2.f32 %v1265_v54 }
 0x36f   : > { %v1666_v46 = vpop.xlane.xlu1 %1665  ;;  %4858 = vpow2.f32 %v1711_v50 }
 0x370   : > { %v1684_v25 = vsub.f32 %v6441_v16, %v1666_v46  ;;  %v2560_v16 = vmul.f32 0.17677669, %v2533_v2  ;;  %v2051_v46 = vpop.f32.mrf.mxu0 }
 0x371   : > { %v1220_v42 = vpop.xlane.xlu0 %1219 }
 0x372   : > { %v1237_v53 = vsub.f32 %v6445_v32, %v1220_v42  ;;  %v1713_v12 = vmul.f32 1.442695, %v1684_v25  ;;  %v6637_v23 = vadd.f32 %v2560_v16, %v6371_v59 }
 0x374   : > { %1739 = vadd.xlane.f32.xlu0 %v6615_v19  ;;  %1741 = vadd.xlane.f32.xlu1 %v6617_v49  ;;  %v6628_v41 = vpop.eup %4856  ;;  %v1267_v33 = vmul.f32 1.442695, %v1237_v53  ;;  %4860 = vpow2.f32 %v1713_v12  ;;  %v2079_v12 = vmul.f32 0.17677669, %v2051_v46 }
 0x375   : > { %7954 = vst [vmem:[#allocation31_spill] sm:$0xff] %v6628_v41  ;;  %v6632_v57 = vpop.eup %4858 }
 0x376   : > { %1293 = vadd.xlane.f32.xlu2 %v6621_v60  ;;  %4862 = vpow2.f32 %v1267_v33 }
 0x377   : > { %v1668_v3 = vpop.xlane.xlu2 %1667 }
 0x378   : > { %v1685_v42 = vsub.f32 %v6452_v56, %v1668_v3  ;;  %v6652_v3 = vadd.f32 %v2079_v12, %v6356_v48 }
 0x379   : > { %v1222_v14 = vpop.xlane.xlu1 %1221 }
 0x37a   : > { %v6639_v54 = vpop.eup %4860  ;;  %v1238_v53 = vsub.f32 %v6455_v47, %v1222_v14  ;;  %v1715_v33 = vmul.f32 1.442695, %v1685_v42 }
 0x37c   : > { %1295 = vadd.xlane.f32.xlu0 %v6626_v61  ;;  %1297 = vadd.xlane.f32.xlu1 %v6628_v41  ;;  %v6644_v25 = vpop.eup %4862  ;;  %v2536_v41 = vpop.f32.mrf.mxu2 }
 0x37d   : > { %7955 = vst [vmem:[#allocation32_spill] sm:$0xff] %v6644_v25 }
 0x37e   : > { %1743 = vadd.xlane.f32.xlu2 %v6632_v57 }
 0x37f   : > { %v1670_v32 = vpop.xlane.xlu0 %1669 }
 0x380   : > { %v1686_v11 = vsub.f32 %v6460_v29, %v1670_v32  ;;  %v2559_v29 = vmul.f32 0.17677669, %v2531_v52  ;;  %v1269_v32 = vmul.f32 1.442695, %v1238_v53  ;;  %v2053_v52 = vpop.f32.mrf.mxu0 }
 0x381   : > { %v2120_v34 = vpop.xlane.xlu2 %2119 }
 0x382   : > { %v1717_v50 = vmul.f32 1.442695, %v1686_v11  ;;  %v6649_v56 = vadd.f32 %v2559_v29, %v6356_v48  ;;  %v2151_v14 = vsub.f32 %v6464_v44, %v2120_v34 }
 0x384   : > { %1745 = vadd.xlane.f32.xlu0 %v6639_v54  ;;  %2617 = vmax.xlane.f32.xlu1 %v6637_v23  ;;  %4864 = vpow2.f32 %v1717_v50  ;;  %v2080_v50 = vmul.f32 0.17677669, %v2053_v52  ;;  %v2167_v53 = vmul.f32 1.442695, %v2151_v14 }
 0x385   : > { %4866 = vpow2.f32 %v1715_v33  ;;  %v2538_v33 = vpop.f32.mrf.mxu2 }
 0x386   : > { %1299 = vadd.xlane.f32.xlu2 %v6644_v25  ;;  %4868 = vpow2.f32 %v1269_v32  ;;  %v6667_v44 = vadd.f32 %v2080_v50, %v6371_v59  ;;  %v2562_v14 = vmul.f32 0.17677669, %v2538_v33 }
 0x387   : > { %v1272_v2 = vpop.xlane.xlu0 %1271  ;;  %v2600_v16 = vpop.xlane.xlu1 %2599 }
 0x388   : > { %4870 = vrcp.f32 %v1272_v2  ;;  %v2631_v32 = vsub.f32 %v6469_v18, %v2600_v16 }
 0x389   : > { %v1720_v11 = vpop.xlane.xlu2 %1719 }
 0x38a   : > { %v6656_v47 = vpop.eup %4864 }
 0x38b   : > { %7956 = vst [vmem:[#allocation33_spill] sm:$0xff] %v6656_v47  ;;  %v6660_v12 = vpop.eup %4866 }
 0x38c   : > { %2615 = vmax.xlane.f32.xlu0 %v6649_v56  ;;  %2135 = vmax.xlane.f32.xlu1 %v6652_v3  ;;  %7957 = vst [vmem:[#allocation38_spill] sm:$0xff] %v6660_v12  ;;  %v6662_v29 = vpop.eup %4868 }
 0x38d   : > { %7958 = vst [vmem:[#allocation25_spill] sm:$0xff] %v6662_v29 }
 0x38e   : > { %1749 = vadd.xlane.f32.xlu2 %v6656_v47  ;;  %v4871_v34 = vpop.eup %4870  ;;  %v2561_v47 = vmul.f32 0.17677669, %v2536_v41 }
 0x38f   : > { %v2122_v46 = vpop.xlane.xlu0 %2121  ;;  %v1274_v42 = vpop.xlane.xlu1 %1273 }
 0x390   : > { %4872 = vrcp.f32 %v1274_v42  ;;  %v2152_v42 = vsub.f32 %v6481_v24, %v2122_v46 }
 0x391   : > { %v2602_v48 = vpop.xlane.xlu2 %2601  ;;  %4874 = vpow2.f32 %v2167_v53 }
 0x392   : > { %v2632_v2 = vsub.f32 %v6488_v28, %v2602_v48  ;;  %4876 = vrcp.f32 %v1720_v11  ;;  %v2647_v28 = vmul.f32 1.442695, %v2631_v32  ;;  %v2169_v16 = vmul.f32 1.442695, %v2152_v42 }
 0x393   : > { %v6678_v11 = vadd.f32 %v2562_v14, %v6399_v39 }
 0x394   : > { %1747 = vadd.xlane.f32.xlu1 %v6660_v12  ;;  %1301 = vadd.xlane.f32.xlu0 %v6662_v29  ;;  %v1319_v12 = vmul.f32 %v4871_v34, %v6471_v15  ;;  %v2649_v53 = vmul.f32 1.442695, %v2632_v2  ;;  %v6682_v15 = vadd.f32 %v2561_v47, %v6384_v20 }
 0x396   : > { %2137 = vmax.xlane.f32.xlu2 %v6667_v44  ;;  %v4873_v52 = vpop.eup %4872 }
 0x397   : > { %v1722_v25 = vpop.xlane.xlu0 %1721  ;;  %v1320_v59 = vmul.f32 %v4873_v52, %v6483_v45  ;;  %v2124_v50 = vpop.xlane.xlu1 %2123 }
 0x398   : > { %4878 = vrcp.f32 %v1722_v25  ;;  %v6675_v18 = vpop.eup %4874  ;;  %v2153_v24 = vsub.f32 %v6494_v5, %v2124_v50 }
 0x399   : > { %v1276_v29 = vpop.xlane.xlu2 %1275  ;;  %v1335_v48 = vpack.c.bf16 %v1320_v59, %v1319_v12  ;;  %v4877_v33 = vpop.eup %4876  ;;  %4880 = vpow2.f32 %v2649_v53 }
 0x39a   : > { %4882 = vpow2.f32 %v2647_v28  ;;  %v1767_v41 = vmul.f32 %v4877_v33, %v6475_v22  ;;  %v2171_v47 = vmul.f32 1.442695, %v2153_v24  ;;  %v2056_v53 = vpop.f32.mrf.mxu0 }
 0x39b   : > { %1399 = vmatmul.bf16.vlgmr.msra.gmra.mxu1 %v1335_v48  ;;  %4884 = vpow2.f32 %v2169_v16 }
 0x39c   : > { %2199 = vadd.xlane.f32.xlu1 %v6675_v18  ;;  %2621 = vmax.xlane.f32.xlu0 %v6678_v11  ;;  %4886 = vrcp.f32 %v1276_v29 }
 0x39e   : > { %v4879_v45 = vpop.eup %4878  ;;  %2619 = vmax.xlane.f32.xlu2 %v6682_v15 }
 0x39f   : > { %v1768_v25 = vmul.f32 %v4879_v45, %v6496_v10  ;;  %v2604_v46 = vpop.xlane.xlu0 %2603  ;;  %v1724_v34 = vpop.xlane.xlu1 %1723 }
 0x3a0   : > { %v2633_v12 = vsub.f32 %v6505_v40, %v2604_v46  ;;  %v6690_v52 = vpop.eup %4880 }
 0x3a1   : > { %v1726_v2 = vpop.xlane.xlu2 %1725  ;;  %v1783_v32 = vpack.c.bf16 %v1768_v25, %v1767_v41  ;;  %v6692_v14 = vpop.eup %4882 }
 0x3a2   : > { %v2651_v5 = vmul.f32 1.442695, %v2633_v12  ;;  %4888 = vrcp.f32 %v1726_v2  ;;  %v6695_v22 = vpop.eup %4884 }
 0x3a3   : > { %1847 = vmatmul.bf16.vlgmr.msra.gmra.mxu3 %v1783_v32  ;;  %4890 = vpow2.f32 %v2171_v47  ;;  %v4887_v29 = vpop.eup %4886 }
 0x3a4   : > { %2681 = vadd.xlane.f32.xlu1 %v6690_v52  ;;  %2679 = vadd.xlane.f32.xlu0 %v6692_v14  ;;  %4892 = vrcp.f32 %v1724_v34  ;;  %v1321_v46 = vmul.f32 %v4887_v29, %v6500_v58  ;;  %v2081_v58 = vmul.f32 0.17677669, %v2056_v53 }
 0x3a5   : > { %4894 = vpow2.f32 %v2651_v5 }
 0x3a6   : > { %2201 = vadd.xlane.f32.xlu2 %v6695_v22 }
 0x3a7   : > { %v1278_v10 = vpop.xlane.xlu0 %1277  ;;  %v2606_v40 = vpop.xlane.xlu1 %2605 }
 0x3a8   : > { %4896 = vrcp.f32 %v1278_v10  ;;  %v2634_v42 = vsub.f32 %v6517_v51, %v2606_v40  ;;  %v4889_v50 = vpop.eup %4888  ;;  %v2058_v10 = vpop.f32.mrf.mxu0 }
 0x3a9   : > { %v2126_v59 = vpop.xlane.xlu2 %2125  ;;  %v6701_v48 = vpop.eup %4890  ;;  %v1770_v41 = vmul.f32 %v4889_v50, %v6512_v7  ;;  %v2082_v40 = vmul.f32 0.17677669, %v2058_v10 }
 0x3aa   : > { %v2154_v28 = vsub.f32 %v6524_v17, %v2126_v59  ;;  %v2653_v16 = vmul.f32 1.442695, %v2634_v42  ;;  %v4893_v33 = vpop.eup %4892  ;;  %v6721_v59 = vadd.f32 %v2081_v58, %v6384_v20 }
 0x3ab   : > { %v6703_v45 = vpop.eup %4894  ;;  %v1769_v12 = vmul.f32 %v4893_v33, %v6507_v62  ;;  %v6724_v50 = vadd.f32 %v2082_v40, %v6399_v39 }
 0x3ac   : > { %v2173_v24 = vmul.f32 1.442695, %v2154_v28  ;;  %4898 = vpow2.f32 %v2653_v16  ;;  %2203 = vadd.xlane.f32.xlu0 %v6701_v48  ;;  %v2541_v28 = vpop.f32.mrf.mxu2 }
 0x3ad   : > { %v1784_v32 = vpack.c.bf16 %v1770_v41, %v1769_v12 }
 0x3ae   : > { %v4897_v25 = vpop.eup %4896  ;;  %4900 = vpow2.f32 %v2173_v24  ;;  %2683 = vadd.xlane.f32.xlu2 %v6703_v45  ;;  %v2563_v24 = vmul.f32 0.17677669, %v2541_v28 }
 0x3af   : > { %v1728_v51 = vpop.xlane.xlu0 %1727  ;;  %v1322_v17 = vmul.f32 %v4897_v25, %v6519_v35  ;;  %v1280_v34 = vpop.xlane.xlu1 %1279 }
 0x3b0   : > { %4902 = vrcp.f32 %v1728_v51 }
 0x3b1   : > { %v2608_v47 = vpop.xlane.xlu2 %2607  ;;  %v1336_v2 = vpack.c.bf16 %v1322_v17, %v1321_v46  ;;  %4904 = vrcp.f32 %v1280_v34 }
 0x3b2   : > { %v6711_v5 = vpop.eup %4898  ;;  %v2635_v42 = vsub.f32 %v6537_v4, %v2608_v47  ;;  %v6733_v47 = vadd.f32 %v2563_v24, %v6412_v43 }
 0x3b3   : > { %1404 = vmatmul.bf16.gmra.mxu1 %v1336_v2  ;;  %1852 = vmatmul.bf16.gmra.mxu3 %v1784_v32 }
 0x3b4   : > { %v6713_v7 = vpop.eup %4900  ;;  %2685 = vadd.xlane.f32.xlu0 %v6711_v5  ;;  %v2655_v41 = vmul.f32 1.442695, %v2635_v42 }
 0x3b5   : > { %2205 = vadd.xlane.f32.xlu1 %v6713_v7 }
 0x3b6   : > { %v4903_v16 = vpop.eup %4902 }
 0x3b7   : > { %v6717_v35 = vpop.xlane.xlu0 %2609  ;;  %v1730_v62 = vpop.xlane.xlu1 %1729  ;;  %v1771_v4 = vmul.f32 %v4903_v16, %v6531_v37 }
 0x3b8   : > { %4906 = vrcp.f32 %v1730_v62  ;;  %v4905_v53 = vpop.eup %4904 }
 0x3b9   : > { %v1282_v29 = vpop.xlane.xlu2 %1281  ;;  %v1323_v39 = vmul.f32 %v4905_v53, %v6529_v30  ;;  %v6738_v30 = vpop.f32.mrf.mxu0 }
 0x3ba   : > { %4908 = vrcp.f32 %v1282_v29 }
 0x3bb   : > { %4910 = vpow2.f32 %v2655_v41 }
 0x3bc   : > { %2139 = vmax.xlane.f32.xlu0 %v6721_v59 }
 0x3bd   : > { %2141 = vmax.xlane.f32.xlu1 %v6724_v50 }
 0x3be   : > { %v4907_v33 = vpop.eup %4906 }
 0x3bf   : > { %v1284_v25 = vpop.xlane.xlu0 %1283  ;;  %v1286_v46 = vpop.xlane.xlu1 %1285  ;;  %v1772_v20 = vmul.f32 %v4907_v33, %v6545_v38 }
 0x3c0   : > { %v4909_v51 = vpop.eup %4908  ;;  %4912 = vrcp.f32 %v1284_v25 }
 0x3c1   : > { %v1732_v17 = vpop.xlane.xlu2 %1731  ;;  %v1324_v12 = vmul.f32 %v4909_v51, %v6549_v8  ;;  %v1785_v34 = vpack.c.bf16 %v1772_v20, %v1771_v4  ;;  %4914 = vrcp.f32 %v1286_v46  ;;  %v6736_v32 = vpop.eup %4910 }
 0x3c2   : > { %4916 = vrcp.f32 %v1732_v17  ;;  %v2063_v4 = vpop.f32.mrf.mxu0  ;;  %v2636_v17 = vsub.f32 %v6543_v26, %v6717_v35  ;;  %v7959_v26 = vld [vmem:[#allocation35_spill] sm:$0xff] }
 0x3c3   : > { %v1337_v2 = vpack.c.bf16 %v1324_v12, %v1323_v39  ;;  %1857 = vmatmul.bf16.gmra.mxu3 %v1785_v34  ;;  %v2543_v39 = vpop.f32.mrf.mxu2 }
 0x3c5   : > { %2623 = vmax.xlane.f32.xlu1 %v6733_v47  ;;  %1409 = vmatmul.bf16.gmra.mxu1 %v1337_v2 }
 0x3c6   : > { %v4913_v43 = vpop.eup %4912 }
 0x3c7   : > { %v1734_v37 = vpop.xlane.xlu0 %1733  ;;  %v2130_v38 = vpop.xlane.xlu1 %2129  ;;  %v1325_v53 = vmul.f32 %v4913_v43, %v6554_v9  ;;  %v7960_v43 = vld [vmem:[#allocation34_spill] sm:$0xff] }
 0x3c8   : > { %4918 = vrcp.f32 %v1734_v37  ;;  %v2156_v8 = vsub.f32 %v6565_v1, %v2130_v38  ;;  %v4915_v58 = vpop.eup %4914 }
 0x3c9   : > { %v1288_v10 = vpop.xlane.xlu2 %1287  ;;  %v4917_v62 = vpop.eup %4916  ;;  %v1326_v33 = vmul.f32 %v4915_v58, %v6556_v13  ;;  %v2084_v13 = vmul.f32 0.17677669, %v2063_v4 }
 0x3ca   : > { %v2177_v40 = vmul.f32 1.442695, %v2156_v8  ;;  %v1773_v28 = vmul.f32 %v4917_v62, %v6560_v36  ;;  %v7961_v62 = vld [vmem:[#allocation26_spill] sm:$0xff] }
 0x3cb   : > { %v1338_v20 = vpack.c.bf16 %v1326_v33, %v1325_v53  ;;  %v6756_v35 = vadd.f32 %v2084_v13, %v7959_v26  ;;  %v7963_v53 = vld [vmem:[#allocation36_spill] sm:$0xff] }
 0x3cc   : > { %4920 = vpow2.f32 %v2177_v40 }
 0x3cd   : > { %2687 = vadd.xlane.f32.xlu1 %v6736_v32 }
 0x3ce   : > { %v4919_v29 = vpop.eup %4918 }
 0x3cf   : > { %v2128_v42 = vpop.xlane.xlu0 %2127  ;;  %v1774_v16 = vmul.f32 %v4919_v29, %v6567_v21  ;;  %v2612_v24 = vpop.xlane.xlu1 %2611  ;;  %v2657_v21 = vmul.f32 1.442695, %v2636_v17  ;;  %v2564_v17 = vmul.f32 0.17677669, %v2543_v39  ;;  %v5129_v39 = vld [vmem:[%s7832_s1 + $0x70] sm:$0xff] }
 0x3d0   : > { %v2155_v1 = vsub.f32 %v6577_v63, %v2128_v42  ;;  %v2637_v9 = vsub.f32 %v6580_v27, %v2612_v24  ;;  %v7962_v42 = vld [vmem:[#allocation27_spill] sm:$0xff] }
 0x3d1   : > { %v1738_v41 = vpop.xlane.xlu2 %1737  ;;  %v1786_v25 = vpack.c.bf16 %v1774_v16, %v1773_v28 }
 0x3d2   : > { %v2175_v51 = vmul.f32 1.442695, %v2155_v1  ;;  %v6747_v46 = vpop.eup %4920  ;;  %v2659_v12 = vmul.f32 1.442695, %v2637_v9 }
 0x3d3   : > { %1862 = vmatmul.bf16.gmra.mxu3 %v1786_v25  ;;  %2209 = vadd.xlane.f32.xlu0 %v6747_v46 }
 0x3d4   : > { %4922 = vpow2.f32 %v2175_v51  ;;  %v2546_v51 = vpop.f32.mrf.mxu2 }
 0x3d5   : > { %1414 = vmatmul.bf16.gmra.mxu1 %v1338_v20  ;;  %4924 = vrcp.f32 %v1288_v10  ;;  %v2565_v9 = vmul.f32 0.17677669, %v2546_v51 }
 0x3d6   : > { %4926 = vrcp.f32 %v1738_v41 }
 0x3d7   : > { %v1290_v36 = vpop.xlane.xlu0 %1289  ;;  %v1736_v63 = vpop.xlane.xlu1 %1735 }
 0x3d8   : > { %4928 = vrcp.f32 %v1290_v36 }
 0x3d9   : > { %4930 = vrcp.f32 %v1736_v63  ;;  %v2614_v34 = vpop.xlane.xlu2 %2613  ;;  %v5128_v63 = vld [vmem:[%s7832_s1 + $0x68] sm:$0xff] }
 0x3da   : > { %v6753_v2 = vpop.eup %4922  ;;  %4932 = vpow2.f32 %v2657_v21  ;;  %v2638_v13 = vsub.f32 %v6596_v6, %v2614_v34  ;;  %v6780_v6 = vadd.f32 %v5129_v39, %v2565_v9 }
 0x3db   : > { %2207 = vadd.xlane.f32.xlu2 %v6753_v2  ;;  %v4925_v27 = vpop.eup %4924  ;;  %2145 = vmax.xlane.f32.xlu0 %v6756_v35  ;;  %4934 = vpow2.f32 %v2659_v12  ;;  %v6775_v12 = vadd.f32 %v5128_v63, %v2564_v17 }
 0x3dc   : > { %v4927_v37 = vpop.eup %4926  ;;  %v1327_v33 = vmul.f32 %v4925_v27, %v7963_v53  ;;  %v2661_v26 = vmul.f32 1.442695, %v2638_v13  ;;  %v2548_v51 = vpop.f32.mrf.mxu2 }
 0x3dd   : > { %v1776_v28 = vmul.f32 %v4927_v37, %v7962_v42  ;;  %v2066_v13 = vpop.f32.mrf.mxu0 }
 0x3de   : > { %v4929_v38 = vpop.eup %4928  ;;  %v2085_v39 = vmul.f32 0.17677669, %v2066_v13  ;;  %v7965_v13 = vld [vmem:[#allocation25_spill] sm:$0xff] }
 0x3df   : > { %v4931_v8 = vpop.eup %4930  ;;  %v2134_v10 = vpop.xlane.xlu0 %2133  ;;  %v1328_v58 = vmul.f32 %v4929_v38, %v7960_v43  ;;  %v2083_v38 = vmul.f32 0.17677669, %v6738_v30  ;;  %v2099_v43 = vld [vmem:[%s7832_s1 + $0x60] sm:$0xff] }
 0x3e0   : > { %v1292_v40 = vpop.xlane.xlu1 %1291  ;;  %v1775_v29 = vmul.f32 %v4931_v8, %v7961_v62  ;;  %v6764_v1 = vpop.eup %4932  ;;  %v2158_v34 = vsub.f32 %v6602_v55, %v2134_v10 }
 0x3e1   : > { %v2132_v16 = vpop.xlane.xlu2 %2131  ;;  %v6767_v25 = vpop.eup %4934  ;;  %v1339_v4 = vpack.c.bf16 %v1328_v58, %v1327_v33 }
 0x3e2   : > { %v2157_v24 = vsub.f32 %v6610_v31, %v2132_v16  ;;  %v1787_v41 = vpack.c.bf16 %v1776_v28, %v1775_v29  ;;  %v6794_v16 = vadd.f32 %v2099_v43, %v2083_v38 }
 0x3e3   : > { %2689 = vadd.xlane.f32.xlu2 %v6764_v1  ;;  %2691 = vadd.xlane.f32.xlu0 %v6767_v25 }
 0x3e4   : > { %v2179_v20 = vmul.f32 1.442695, %v2157_v24  ;;  %1867 = vmatmul.bf16.gmra.mxu3 %v1787_v41 }
 0x3e5   : > { %1419 = vmatmul.bf16.gmra.mxu1 %v1339_v4 }
 0x3e6   : > { %4936 = vpow2.f32 %v2179_v20 }
 0x3e7   : > { %4938 = vrcp.f32 %v1292_v40  ;;  %v1740_v36 = vpop.xlane.xlu0 %1739  ;;  %v2181_v40 = vmul.f32 1.442695, %v2158_v34 }
 0x3e8   : > { %4940 = vrcp.f32 %v1740_v36  ;;  %v1742_v31 = vpop.xlane.xlu1 %1741 }
 0x3e9   : > { %4942 = vrcp.f32 %v1742_v31  ;;  %v1294_v21 = vpop.xlane.xlu2 %1293  ;;  %v5130_v31 = vld [vmem:[%s7832_s1 + $0x78] sm:$0xff] }
 0x3ea   : > { %4944 = vrcp.f32 %v1294_v21 }
 0x3eb   : > { %2625 = vmax.xlane.f32.xlu2 %v6775_v12  ;;  %2627 = vmax.xlane.f32.xlu0 %v6780_v6  ;;  %4946 = vpow2.f32 %v2661_v26 }
 0x3ec   : > { %v6784_v27 = vpop.eup %4936  ;;  %4948 = vpow2.f32 %v2181_v40 }
 0x3ed   : > { %v4939_v37 = vpop.eup %4938  ;;  %2211 = vadd.xlane.f32.xlu1 %v6784_v27 }
 0x3ee   : > { %v4941_v8 = vpop.eup %4940  ;;  %v1329_v30 = vmul.f32 %v4939_v37, %v6604_v0 }
 0x3ef   : > { %v4943_v58 = vpop.eup %4942  ;;  %v1296_v55 = vpop.xlane.xlu0 %1295  ;;  %v1777_v10 = vmul.f32 %v4941_v8, %v6615_v19  ;;  %v2566_v19 = vmul.f32 0.17677669, %v2548_v51  ;;  %v7964_v8 = vld [vmem:[#allocation31_spill] sm:$0xff] }
 0x3f0   : > { %v4945_v62 = vpop.eup %4944  ;;  %v1298_v29 = vpop.xlane.xlu1 %1297  ;;  %v1778_v42 = vmul.f32 %v4943_v58, %v6617_v49  ;;  %4950 = vrcp.f32 %v1296_v55  ;;  %v2101_v55 = vld [vmem:[%s7832_s1 + $0x70] sm:$0xff] }
 0x3f1   : > { %v1744_v28 = vpop.xlane.xlu2 %1743  ;;  %v1330_v53 = vmul.f32 %v4945_v62, %v6621_v60  ;;  %v6799_v41 = vpop.eup %4946  ;;  %4952 = vrcp.f32 %v1298_v29  ;;  %v6809_v21 = vadd.f32 %v5130_v31, %v2566_v19 }
 0x3f2   : > { %v1788_v33 = vpack.c.bf16 %v1778_v42, %v1777_v10  ;;  %4954 = vrcp.f32 %v1744_v28  ;;  %v6802_v60 = vpop.eup %4948 }
 0x3f3   : > { %2143 = vmax.xlane.f32.xlu2 %v6794_v16  ;;  %v1340_v24 = vpack.c.bf16 %v1330_v53, %v1329_v30 }
 0x3f4   : > { %1872 = vmatmul.bf16.gmra.mxu3 %v1788_v33  ;;  %v2068_v33 = vpop.f32.mrf.mxu0 }
 0x3f5   : > { %2693 = vadd.xlane.f32.xlu1 %v6799_v41  ;;  %1424 = vmatmul.bf16.gmra.mxu1 %v1340_v24 }
 0x3f6   : > { %v4951_v17 = vpop.eup %4950 }
 0x3f7   : > { %v1746_v49 = vpop.xlane.xlu0 %1745  ;;  %v4953_v9 = vpop.eup %4952  ;;  %v1331_v38 = vmul.f32 %v4951_v17, %v6626_v61  ;;  %v2102_v17 = vld [vmem:[%s7832_s1 + $0x78] sm:$0xff] }
 0x3f8   : > { %4956 = vrcp.f32 %v1746_v49  ;;  %v2618_v0 = vpop.xlane.xlu1 %2617  ;;  %v4955_v63 = vpop.eup %4954  ;;  %v1332_v43 = vmul.f32 %v4953_v9, %v7964_v8  ;;  %v7968_v8 = vld [vmem:[#allocation32_spill] sm:$0xff] }
 0x3f9   : > { %v2640_v4 = vsub.f32 %v6637_v23, %v2618_v0  ;;  %v1300_v20 = vpop.xlane.xlu2 %1299  ;;  %v1779_v34 = vmul.f32 %v4955_v63, %v6632_v57  ;;  %v7966_v63 = vld [vmem:[#allocation38_spill] sm:$0xff] }
 0x3fa   : > { %v1341_v61 = vpack.c.bf16 %v1332_v43, %v1331_v38 }
 0x3fb   : > { %v2665_v36 = vmul.f32 1.442695, %v2640_v4  ;;  %2213 = vadd.xlane.f32.xlu2 %v6802_v60  ;;  %v2086_v4 = vmul.f32 0.17677669, %v2068_v33 }
 0x3fd   : > { %4958 = vpow2.f32 %v2665_v36  ;;  %2629 = vmax.xlane.f32.xlu1 %v6809_v21  ;;  %v6841_v38 = vadd.f32 %v2102_v17, %v2086_v4 }
 0x3fe   : > { %v4957_v26 = vpop.eup %4956 }
 0x3ff   : > { %v2616_v23 = vpop.xlane.xlu0 %2615  ;;  %v1780_v37 = vmul.f32 %v4957_v26, %v6639_v54  ;;  %v6823_v54 = vadd.f32 %v2101_v55, %v2085_v39  ;;  %v7967_v39 = vld [vmem:[#allocation33_spill] sm:$0xff] }
 0x400   : > { %v2639_v58 = vsub.f32 %v6649_v56, %v2616_v23  ;;  %v2136_v40 = vpop.xlane.xlu1 %2135 }
 0x401   : > { %v2159_v10 = vsub.f32 %v6652_v3, %v2136_v40  ;;  %v1750_v62 = vpop.xlane.xlu2 %1749  ;;  %v1789_v29 = vpack.c.bf16 %v1780_v37, %v1779_v34 }
 0x402   : > { %v2663_v42 = vmul.f32 1.442695, %v2639_v58 }
 0x403   : > { %v6821_v28 = vpop.eup %4958  ;;  %v2183_v57 = vmul.f32 1.442695, %v2159_v10 }
 0x404   : > { %4960 = vpow2.f32 %v2663_v42  ;;  %1877 = vmatmul.bf16.gmra.mxu3 %v1789_v29  ;;  %2697 = vadd.xlane.f32.xlu0 %v6821_v28 }
 0x405   : > { %4962 = vpow2.f32 %v2183_v57  ;;  %2147 = vmax.xlane.f32.xlu1 %v6823_v54  ;;  %1429 = vmatmul.bf16.gmra.mxu1 %v1341_v61 }
 0x406   : > { %4964 = vrcp.f32 %v1300_v20 }
 0x407   : > { %4966 = vrcp.f32 %v1750_v62  ;;  %v1302_v56 = vpop.xlane.xlu0 %1301 }
 0x408   : > { %4968 = vrcp.f32 %v1302_v56  ;;  %v1748_v3 = vpop.xlane.xlu1 %1747 }
 0x409   : > { %4970 = vrcp.f32 %v1748_v3  ;;  %v2138_v30 = vpop.xlane.xlu2 %2137 }
 0x40a   : > { %v6827_v53 = vpop.eup %4960  ;;  %v2160_v24 = vsub.f32 %v6667_v44, %v2138_v30 }
 0x40b   : > { %v6830_v51 = vpop.eup %4962  ;;  %2695 = vadd.xlane.f32.xlu2 %v6827_v53 }
 0x40c   : > { %v4965_v19 = vpop.eup %4964  ;;  %v2185_v49 = vmul.f32 1.442695, %v2160_v24  ;;  %2215 = vadd.xlane.f32.xlu0 %v6830_v51 }
 0x40d   : > { %v4967_v0 = vpop.eup %4966  ;;  %v1333_v43 = vmul.f32 %v4965_v19, %v7968_v8 }
 0x40e   : > { %v4969_v20 = vpop.eup %4968  ;;  %4972 = vpow2.f32 %v2185_v49  ;;  %v1782_v23 = vmul.f32 %v4967_v0, %v7967_v39 }
 0x40f   : > { %v4971_v9 = vpop.eup %4970  ;;  %v1334_v36 = vmul.f32 %v4969_v20, %v7965_v13  ;;  %v2622_v44 = vpop.xlane.xlu0 %2621 }
 0x410   : > { %v2200_v31 = vpop.xlane.xlu1 %2199  ;;  %v1781_v26 = vmul.f32 %v4971_v9, %v7966_v63  ;;  %v2642_v34 = vsub.f32 %v6678_v11, %v2622_v44 }
 0x411   : > { %v2620_v37 = vpop.xlane.xlu2 %2619  ;;  %v1342_v10 = vpack.c.bf16 %v1334_v36, %v1333_v43 }
 0x412   : > { %v2641_v58 = vsub.f32 %v6682_v15, %v2620_v37  ;;  %v1790_v40 = vpack.c.bf16 %v1782_v23, %v1781_v26  ;;  %v2669_v55 = vmul.f32 1.442695, %v2642_v34 }
 0x413   : > { %2149 = vmax.xlane.f32.xlu2 %v6841_v38 }
 0x414   : > { %v6846_v62 = vpop.eup %4972  ;;  %v2667_v29 = vmul.f32 1.442695, %v2641_v58  ;;  %1882 = vmatmul.bf16.gmra.mxu3 %v1790_v40  ;;  %4974 = vpow2.f32 %v2669_v55 }
 0x415   : > { %2217 = vadd.xlane.f32.xlu1 %v6846_v62  ;;  %1434 = vmatmul.bf16.gmra.mxu1 %v1342_v10 }
 0x416   : > { %4976 = vpow2.f32 %v2667_v29 }
 0x417   : > { %4978 = vrcp.f32 %v2200_v31  ;;  %v2680_v11 = vpop.xlane.xlu0 %2679 }
 0x418   : > { %v2682_v42 = vpop.xlane.xlu1 %2681  ;;  %4980 = vrcp.f32 %v2680_v11  ;;  %v1400_v56 = vpop.f32.mrf.mxu1 }
 0x419   : > { %v2202_v57 = vpop.xlane.xlu2 %2201  ;;  %4982 = vrcp.f32 %v2682_v42 }
 0x41a   : > { %v6849_v15 = vpop.eup %4974  ;;  %4984 = vrcp.f32 %v2202_v57 }
 0x41b   : > { %2701 = vadd.xlane.f32.xlu0 %v6849_v15 }
 0x41c   : > { %v6851_v61 = vpop.eup %4976 }
 0x41d   : > { %2699 = vadd.xlane.f32.xlu2 %v6851_v61  ;;  %v4979_v3 = vpop.eup %4978 }
 0x41e   : > { %v4981_v30 = vpop.eup %4980  ;;  %v2247_v4 = vmul.f32 %v4979_v3, %v6675_v18 }
 0x41f   : > { %v4983_v33 = vpop.eup %4982  ;;  %v2727_v24 = vmul.f32 %v4981_v30, %v6692_v14  ;;  %v2204_v19 = vpop.xlane.xlu0 %2203 }
 0x420   : > { %v4985_v49 = vpop.eup %4984  ;;  %v2728_v0 = vmul.f32 %v4983_v33, %v6690_v52  ;;  %v6859_v44 = vpop.f32.mrf.mxu1 }
 0x421   : > { %v2248_v20 = vmul.f32 %v4985_v49, %v6695_v22  ;;  %v2684_v13 = vpop.xlane.xlu2 %2683 }
 0x422   : > { %v2743_v17 = vpack.c.bf16 %v2728_v0, %v2727_v24  ;;  %4986 = vrcp.f32 %v2684_v13 }
 0x423   : > { %v2263_v9 = vpack.c.bf16 %v2248_v20, %v2247_v4  ;;  %4988 = vrcp.f32 %v2204_v19 }
 0x424   : > { %2807 = vmatmul.bf16.vlgmr.msrb.gmra.mxu3 %v2743_v17 }
 0x425   : > { %2327 = vmatmul.bf16.vlgmr.msrb.gmra.mxu1 %v2263_v9 }
 0x426   : > { %v1848_v36 = vpop.f32.mrf.mxu3 }
 0x427   : > { %v6861_v31 = vadd.f32 %v1848_v36, %v1400_v56  ;;  %v2686_v14 = vpop.xlane.xlu0 %2685 }
 0x428   : > { %v2206_v63 = vpop.xlane.xlu1 %2205  ;;  %4990 = vrcp.f32 %v2686_v14  ;;  %v4987_v52 = vpop.eup %4986 }
 0x429   : > { %4992 = vrcp.f32 %v2206_v63  ;;  %v4989_v18 = vpop.eup %4988  ;;  %v2729_v37 = vmul.f32 %v4987_v52, %v6703_v45 }
 0x42a   : > { %v2249_v40 = vmul.f32 %v4989_v18, %v6701_v48  ;;  %v4702_v18 = vld [vmem:[%s7836_s5 + $0x38] sm:$0xff] }
 0x42b   : > { %2985 = vmatpush.bf16.msrb.mxu0 %v4702_v18 }
 0x42e   : > { %v6863_v26 = vpop.f32.mrf.mxu3  ;;  %v4991_v22 = vpop.eup %4990 }
 0x42f   : > { %v4993_v39 = vpop.eup %4992  ;;  %v2140_v23 = vpop.xlane.xlu0 %2139  ;;  %v2730_v8 = vmul.f32 %v4991_v22, %v6711_v5 }
 0x430   : > { %v1405_v34 = vpop.f32.mrf.mxu1  ;;  %v2161_v43 = vsub.f32 %v6721_v59, %v2140_v23  ;;  %v2142_v58 = vpop.xlane.xlu1 %2141  ;;  %v2250_v55 = vmul.f32 %v4993_v39, %v6713_v7 }
 0x431   : > { %v2162_v10 = vsub.f32 %v6724_v50, %v2142_v58  ;;  %v2744_v29 = vpack.c.bf16 %v2730_v8, %v2729_v37 }
 0x432   : > { %v2187_v11 = vmul.f32 1.442695, %v2161_v43  ;;  %v2264_v42 = vpack.c.bf16 %v2250_v55, %v2249_v40 }
 0x433   : > { %v2189_v57 = vmul.f32 1.442695, %v2162_v10 }
 0x434   : > { %4994 = vpow2.f32 %v2187_v11  ;;  %2812 = vmatmul.bf16.gmra.mxu3 %v2744_v29 }
 0x435   : > { %4996 = vpow2.f32 %v2189_v57  ;;  %2332 = vmatmul.bf16.gmra.mxu1 %v2264_v42 }
 0x436   : > { %v1853_v45 = vpop.f32.mrf.mxu3 }
 0x437   : > { %v6871_v56 = vadd.f32 %v1853_v45, %v1405_v34 }
 0x438   : > { %v2624_v5 = vpop.xlane.xlu1 %2623  ;;  %v6873_v59 = vpop.f32.mrf.mxu1 }
 0x439   : > { %v2643_v48 = vsub.f32 %v6733_v47, %v2624_v5 }
 0x43a   : > { %v6876_v3 = vpop.eup %4994 }
 0x43b   : > { %v6878_v7 = vpop.eup %4996  ;;  %v2671_v50 = vmul.f32 1.442695, %v2643_v48  ;;  %2219 = vadd.xlane.f32.xlu1 %v6876_v3 }
 0x43c   : > { %2221 = vadd.xlane.f32.xlu2 %v6878_v7 }
 0x43d   : > { %4998 = vpow2.f32 %v2671_v50 }
 0x43e   : > { %v6882_v30 = vpop.f32.mrf.mxu3 }
 0x440   : > { %v2688_v13 = vpop.xlane.xlu1 %2687 }
 0x442   : > { %v1410_v33 = vpop.f32.mrf.mxu1 }
 0x443   : > { %v6884_v24 = vpop.eup %4998 }
 0x444   : > { %2703 = vadd.xlane.f32.xlu0 %v6884_v24 }
 0x446   : > { %v1858_v19 = vpop.f32.mrf.mxu3  ;;  %v2210_v49 = vpop.xlane.xlu0 %2209 }
 0x447   : > { %v6887_v47 = vadd.f32 %v1858_v19, %v1410_v33  ;;  %5000 = vrcp.f32 %v2210_v49  ;;  %v4701_v33 = vld [vmem:[%s7836_s5 + $0x30] sm:$0xff] }
 0x448   : > { %2986 = vmatpush.bf16.msrb.mxu0 %v4701_v33 }
 0x44a   : > { %v6889_v0 = vpop.f32.mrf.mxu1 }
 0x44d   : > { %v5001_v63 = vpop.eup %5000 }
 0x44e   : > { %v2208_v4 = vpop.xlane.xlu2 %2207  ;;  %v6891_v20 = vpop.f32.mrf.mxu3  ;;  %v2252_v23 = vmul.f32 %v5001_v63, %v6747_v46 }
 0x44f   : > { %5002 = vrcp.f32 %v2208_v4  ;;  %v2146_v17 = vpop.xlane.xlu0 %2145 }
 0x450   : > { %v2164_v9 = vsub.f32 %v6756_v35, %v2146_v17 }
 0x452   : > { %v2193_v36 = vmul.f32 1.442695, %v2164_v9  ;;  %v1415_v14 = vpop.f32.mrf.mxu1 }
 0x454   : > { %5004 = vpow2.f32 %v2193_v36 }
 0x455   : > { %v5003_v52 = vpop.eup %5002  ;;  %5006 = vrcp.f32 %v2688_v13 }
 0x456   : > { %v2690_v22 = vpop.xlane.xlu2 %2689  ;;  %v2251_v39 = vmul.f32 %v5003_v52, %v6753_v2  ;;  %v1863_v34 = vpop.f32.mrf.mxu3 }
 0x457   : > { %5008 = vrcp.f32 %v2690_v22  ;;  %v2692_v37 = vpop.xlane.xlu0 %2691  ;;  %v6899_v35 = vadd.f32 %v1863_v34, %v1415_v14 }
 0x458   : > { %v2265_v8 = vpack.c.bf16 %v2252_v23, %v2251_v39 }
 0x45a   : > { %v6901_v43 = vpop.eup %5004  ;;  %v6903_v58 = vpop.f32.mrf.mxu1  ;;  %2337 = vmatmul.bf16.gmra.mxu1 %v2265_v8 }
 0x45b   : > { %v5007_v40 = vpop.eup %5006  ;;  %2225 = vadd.xlane.f32.xlu0 %v6901_v43 }
 0x45c   : > { %v2731_v2 = vmul.f32 %v5007_v40, %v6736_v32 }
 0x45d   : > { %v5009_v55 = vpop.eup %5008 }
 0x45e   : > { %v2626_v10 = vpop.xlane.xlu2 %2625  ;;  %v2732_v46 = vmul.f32 %v5009_v55, %v6764_v1  ;;  %v6909_v11 = vpop.f32.mrf.mxu3  ;;  %v4700_v55 = vld [vmem:[%s7836_s5 + $0x28] sm:$0xff] }
 0x45f   : > { %v2644_v29 = vsub.f32 %v6775_v12, %v2626_v10  ;;  %v2628_v42 = vpop.xlane.xlu0 %2627  ;;  %2987 = vmatpush.bf16.msrb.mxu0 %v4700_v55 }
 0x460   : > { %v2212_v57 = vpop.xlane.xlu1 %2211  ;;  %v2745_v45 = vpack.c.bf16 %v2732_v46, %v2731_v2  ;;  %v2645_v48 = vsub.f32 %v6780_v6, %v2628_v42 }
 0x461   : > { %v2673_v5 = vmul.f32 1.442695, %v2644_v29 }
 0x462   : > { %v1420_v50 = vpop.f32.mrf.mxu1  ;;  %2817 = vmatmul.bf16.gmra.mxu3 %v2745_v45  ;;  %v2675_v32 = vmul.f32 1.442695, %v2645_v48 }
 0x463   : > { %5010 = vpow2.f32 %v2673_v5 }
 0x464   : > { %5012 = vrcp.f32 %v2692_v37 }
 0x466   : > { %v2144_v1 = vpop.xlane.xlu2 %2143 }
 0x467   : > { %v2163_v12 = vsub.f32 %v6794_v16, %v2144_v1  ;;  %v1868_v19 = vpop.f32.mrf.mxu3 }
 0x468   : > { %v6916_v49 = vadd.f32 %v1868_v19, %v1420_v50  ;;  %v2694_v4 = vpop.xlane.xlu1 %2693  ;;  %v4699_v50 = vld [vmem:[%s7836_s5 + $0x20] sm:$0xff] }
 0x469   : > { %v6918_v17 = vpop.eup %5010  ;;  %v2191_v6 = vmul.f32 1.442695, %v2163_v12  ;;  %5014 = vrcp.f32 %v2694_v4  ;;  %2988 = vmatpush.bf16.msrb.mxu0 %v4699_v50  ;;  %v4698_v12 = vld [vmem:[%s7836_s5 + $0x18] sm:$0xff] }
 0x46a   : > { %5016 = vpow2.f32 %v2675_v32  ;;  %2705 = vadd.xlane.f32.xlu1 %v6918_v17  ;;  %v6921_v9 = vpop.f32.mrf.mxu1  ;;  %v5013_v13 = vpop.eup %5012 }
 0x46b   : > { %5018 = vpow2.f32 %v2191_v6  ;;  %v2733_v18 = vmul.f32 %v5013_v13, %v6767_v25 }
 0x46c   : > { %5020 = vrcp.f32 %v2212_v57 }
 0x46d   : > { %2989 = vmatpush.bf16.msrb.mxu0 %v4698_v12 }
 0x46e   : > { %v2214_v36 = vpop.xlane.xlu2 %2213 }
 0x46f   : > { %v5015_v14 = vpop.eup %5014  ;;  %5022 = vrcp.f32 %v2214_v36  ;;  %v6923_v16 = vpop.f32.mrf.mxu3 }
 0x470   : > { %v6925_v63 = vpop.eup %5016  ;;  %v2630_v52 = vpop.xlane.xlu1 %2629  ;;  %v2734_v22 = vmul.f32 %v5015_v14, %v6799_v41 }
 0x471   : > { %v6929_v39 = vpop.eup %5018  ;;  %v2646_v23 = vsub.f32 %v6809_v21, %v2630_v52 }
 0x472   : > { %2707 = vadd.xlane.f32.xlu1 %v6925_v63  ;;  %v1425_v34 = vpop.f32.mrf.mxu1  ;;  %2223 = vadd.xlane.f32.xlu2 %v6929_v39  ;;  %v2746_v37 = vpack.c.bf16 %v2734_v22, %v2733_v18  ;;  %v5021_v8 = vpop.eup %5020 }
 0x473   : > { %v2677_v40 = vmul.f32 1.442695, %v2646_v23  ;;  %v2253_v41 = vmul.f32 %v5021_v8, %v6784_v27 }
 0x474   : > { %2822 = vmatmul.bf16.gmra.mxu3 %v2746_v37 }
 0x475   : > { %v5023_v25 = vpop.eup %5022  ;;  %5024 = vpow2.f32 %v2677_v40 }
 0x476   : > { %v2254_v10 = vmul.f32 %v5023_v25, %v6802_v60 }
 0x477   : > { %v1873_v21 = vpop.f32.mrf.mxu3  ;;  %v2698_v42 = vpop.xlane.xlu0 %2697 }
 0x478   : > { %v6939_v2 = vadd.f32 %v1873_v21, %v1425_v34  ;;  %v2148_v46 = vpop.xlane.xlu1 %2147  ;;  %v2266_v29 = vpack.c.bf16 %v2254_v10, %v2253_v41  ;;  %5026 = vrcp.f32 %v2698_v42  ;;  %v4697_v34 = vld [vmem:[%s7836_s5 + $0x10] sm:$0xff] }
 0x479   : > { %v2165_v57 = vsub.f32 %v6823_v54, %v2148_v46  ;;  %2990 = vmatpush.bf16.msrb.mxu0 %v4697_v34 }
 0x47a   : > { %v6942_v45 = vpop.f32.mrf.mxu1  ;;  %2342 = vmatmul.bf16.gmra.mxu1 %v2266_v29  ;;  %v4695_v29 = vld [vmem:[%s7836_s5] sm:$0xff] }
 0x47b   : > { %v6944_v5 = vpop.eup %5024  ;;  %v2195_v48 = vmul.f32 1.442695, %v2165_v57 }
 0x47c   : > { %2709 = vadd.xlane.f32.xlu2 %v6944_v5 }
 0x47d   : > { %5028 = vpow2.f32 %v2195_v48 }
 0x47e   : > { %v2696_v27 = vpop.xlane.xlu2 %2695  ;;  %v5027_v33 = vpop.eup %5026 }
 0x47f   : > { %5030 = vrcp.f32 %v2696_v27  ;;  %v6947_v60 = vpop.f32.mrf.mxu3  ;;  %v2216_v1 = vpop.xlane.xlu0 %2215  ;;  %v2736_v13 = vmul.f32 %v5027_v33, %v6821_v28  ;;  %v4696_v28 = vld [vmem:[%s7836_s5 + $0x8] sm:$0xff] }
 0x480   : > { %5032 = vrcp.f32 %v2216_v1  ;;  %2991 = vmatpush.bf16.msrb.mxu0 %v4696_v28 }
 0x482   : > { %v1430_v54 = vpop.f32.mrf.mxu1 }
 0x483   : > { %v6952_v32 = vpop.eup %5028 }
 0x484   : > { %2227 = vadd.xlane.f32.xlu0 %v6952_v32  ;;  %2992 = vmatpush.bf16.msrb.mxu0 %v4695_v29 }
 0x485   : > { %v5031_v19 = vpop.eup %5030 }
 0x486   : > { %v2150_v4 = vpop.xlane.xlu2 %2149  ;;  %v2735_v6 = vmul.f32 %v5031_v19, %v6827_v53  ;;  %v5033_v53 = vpop.eup %5032 }
 0x487   : > { %v2166_v36 = vsub.f32 %v6841_v38, %v2150_v4  ;;  %v1878_v14 = vpop.f32.mrf.mxu3  ;;  %v2255_v25 = vmul.f32 %v5033_v53, %v6830_v51  ;;  %v1905_v4 = vadd.f32 %v6863_v26, %v6859_v44 }
 0x488   : > { %v6961_v52 = vadd.f32 %v1878_v14, %v1430_v54  ;;  %v2218_v18 = vpop.xlane.xlu1 %2217  ;;  %v2747_v22 = vpack.c.bf16 %v2736_v13, %v2735_v6 }
 0x489   : > { %v2197_v23 = vmul.f32 1.442695, %v2166_v36  ;;  %5034 = vrcp.f32 %v2218_v18 }
 0x48a   : > { %v6966_v37 = vpop.f32.mrf.mxu1  ;;  %2827 = vmatmul.bf16.gmra.mxu3 %v2747_v22 }
 0x48b   : > { %5036 = vpow2.f32 %v2197_v23 }
 0x48e   : > { %v2702_v40 = vpop.xlane.xlu0 %2701 }
 0x48f   : > { %v5035_v38 = vpop.eup %5034  ;;  %v6971_v8 = vpop.f32.mrf.mxu3  ;;  %5038 = vrcp.f32 %v2702_v40  ;;  %v1907_v40 = vadd.f32 %v6882_v30, %v6873_v59 }
 0x490   : > { %v2700_v55 = vpop.xlane.xlu2 %2699  ;;  %v2256_v41 = vmul.f32 %v5035_v38, %v6846_v62 }
 0x491   : > { %v6975_v10 = vpop.eup %5036  ;;  %5040 = vrcp.f32 %v2700_v55 }
 0x492   : > { %2229 = vadd.xlane.f32.xlu1 %v6975_v10  ;;  %v1435_v21 = vpop.f32.mrf.mxu1  ;;  %v2267_v46 = vpack.c.bf16 %v2256_v41, %v2255_v25 }
 0x494   : > { %2347 = vmatmul.bf16.gmra.mxu1 %v2267_v46 }
 0x495   : > { %v5039_v42 = vpop.eup %5038 }
 0x496   : > { %v2738_v62 = vmul.f32 %v5039_v42, %v6849_v15 }
 0x497   : > { %v5041_v57 = vpop.eup %5040  ;;  %v1883_v48 = vpop.f32.mrf.mxu3 }
 0x498   : > { %v6981_v27 = vadd.f32 %v1883_v48, %v1435_v21  ;;  %v2737_v51 = vmul.f32 %v5041_v57, %v6851_v61 }
 0x49a   : > { %v6985_v50 = vpop.f32.mrf.mxu1  ;;  %v2748_v33 = vpack.c.bf16 %v2738_v62, %v2737_v51 }
 0x49c   : > { %2832 = vmatmul.bf16.gmra.mxu3 %v2748_v33 }
 0x49f   : > { %v6987_v54 = vpop.f32.mrf.mxu3 }
 0x4a2   : > { %v2328_v1 = vpop.f32.mrf.mxu1 }
 0x4a3   : > { %v2384_v6 = vadd.f32 %v2328_v1, %v6861_v31 }
 0x4a7   : > { %v2808_v12 = vpop.f32.mrf.mxu3 }
 0x4a8   : > { %v2864_v15 = vadd.f32 %v2808_v12, %v2384_v6 }
 0x4aa   : > { %v2330_v19 = vpop.f32.mrf.mxu1 }
 0x4ab   : > { %v2385_v13 = vadd.f32 %v2330_v19, %v1905_v4  ;;  %v1909_v19 = vadd.f32 %v6891_v20, %v6889_v0 }
 0x4ae   : > { %v2220_v36 = vpop.xlane.xlu1 %2219 }
 0x4af   : > { %v2810_v14 = vpop.f32.mrf.mxu3  ;;  %5042 = vrcp.f32 %v2220_v36  ;;  %v2222_v61 = vpop.xlane.xlu2 %2221 }
 0x4b0   : > { %v2865_v18 = vadd.f32 %v2810_v14, %v2385_v13  ;;  %5044 = vrcp.f32 %v2222_v61 }
 0x4b2   : > { %v2912_v22 = vpack.c.bf16 %v2865_v18, %v2864_v15  ;;  %v2333_v23 = vpop.f32.mrf.mxu1 }
 0x4b3   : > { %v2386_v55 = vadd.f32 %v2333_v23, %v6871_v56 }
 0x4b4   : > { %2993 = vmatmul.bf16.vlgmr.msrb.gmra.mxu0 %v2912_v22 }
 0x4b5   : > { %v5043_v34 = vpop.eup %5042 }
 0x4b6   : > { %v5045_v28 = vpop.eup %5044  ;;  %v2257_v53 = vmul.f32 %v5043_v34, %v6876_v3 }
 0x4b7   : > { %v2813_v38 = vpop.f32.mrf.mxu3  ;;  %v2258_v44 = vmul.f32 %v5045_v28, %v6878_v7  ;;  %v2704_v42 = vpop.xlane.xlu0 %2703 }
 0x4b8   : > { %v2866_v21 = vadd.f32 %v2813_v38, %v2386_v55  ;;  %5046 = vrcp.f32 %v2704_v42  ;;  %v1913_v42 = vadd.f32 %v6923_v16, %v6921_v9 }
 0x4b9   : > { %v2268_v26 = vpack.c.bf16 %v2258_v44, %v2257_v53 }
 0x4ba   : > { %v2335_v31 = vpop.f32.mrf.mxu1 }
 0x4bb   : > { %2352 = vmatmul.bf16.gmra.mxu1 %v2268_v26  ;;  %v2387_v25 = vadd.f32 %v2335_v31, %v1907_v40 }
 0x4be   : > { %v5047_v48 = vpop.eup %5046 }
 0x4bf   : > { %v2815_v41 = vpop.f32.mrf.mxu3  ;;  %v2739_v59 = vmul.f32 %v5047_v48, %v6884_v24 }
 0x4c0   : > { %v2867_v46 = vadd.f32 %v2815_v41, %v2387_v25 }
 0x4c2   : > { %v2913_v29 = vpack.c.bf16 %v2867_v46, %v2866_v21 }
 0x4c4   : > { %2998 = vmatmul.bf16.gmra.mxu0 %v2913_v29 }
 0x4ce   : > { %v2226_v7 = vpop.xlane.xlu0 %2225 }
 0x4d7   : > { %v2338_v57 = vpop.f32.mrf.mxu1 }
 0x4d8   : > { %v2388_v13 = vadd.f32 %v2338_v57, %v6887_v47 }
 0x4dd   : > { %v2706_v3 = vpop.xlane.xlu1 %2705 }
 0x4de   : > { %5048 = vrcp.f32 %v2706_v3 }
 0x4df   : > { %5050 = vrcp.f32 %v2226_v7  ;;  %v2340_v1 = vpop.f32.mrf.mxu1 }
 0x4e0   : > { %v2389_v36 = vadd.f32 %v2340_v1, %v1909_v19 }
 0x4e4   : > { %v5049_v51 = vpop.eup %5048 }
 0x4e5   : > { %v2224_v62 = vpop.xlane.xlu2 %2223  ;;  %v2818_v33 = vpop.f32.mrf.mxu3  ;;  %v2740_v56 = vmul.f32 %v5049_v51, %v6918_v17 }
 0x4e6   : > { %5052 = vrcp.f32 %v2224_v62  ;;  %v5051_v12 = vpop.eup %5050  ;;  %v2708_v4 = vpop.xlane.xlu1 %2707  ;;  %v2868_v15 = vadd.f32 %v2818_v33, %v2388_v13 }
 0x4e7   : > { %v2749_v30 = vpack.c.bf16 %v2740_v56, %v2739_v59  ;;  %v2260_v24 = vmul.f32 %v5051_v12, %v6901_v43  ;;  %5054 = vrcp.f32 %v2708_v4  ;;  %v1911_v43 = vadd.f32 %v6909_v11, %v6903_v58  ;;  %v7969_v56 = vld [vmem:[#allocation9_spill] sm:$0xff]  ;;  %v7970_v12 = vld [vmem:[#allocation10_spill] sm:$0xff] }
 0x4e8   : > { %v1915_v4 = vadd.f32 %v6947_v60, %v6942_v45  ;;  %v7972_v60 = vld [vmem:[#allocation12_spill] sm:$0xff] }
 0x4e9   : > { %2837 = vmatmul.bf16.gmra.mxu3 %v2749_v30 }
 0x4ec   : > { %v5053_v6 = vpop.eup %5052 }
 0x4ed   : > { %v2820_v14 = vpop.f32.mrf.mxu3  ;;  %v2259_v61 = vmul.f32 %v5053_v6, %v6929_v39  ;;  %v5055_v0 = vpop.eup %5054 }
 0x4ee   : > { %v2869_v17 = vadd.f32 %v2820_v14, %v2389_v36  ;;  %v2741_v47 = vmul.f32 %v5055_v0, %v6925_v63 }
 0x4ef   : > { %v2710_v18 = vpop.xlane.xlu2 %2709  ;;  %v2269_v22 = vpack.c.bf16 %v2260_v24, %v2259_v61 }
 0x4f0   : > { %v2914_v23 = vpack.c.bf16 %v2869_v17, %v2868_v15  ;;  %5056 = vrcp.f32 %v2710_v18  ;;  %v7971_v18 = vld [vmem:[#allocation11_spill] sm:$0xff] }
 0x4f1   : > { %2357 = vmatmul.bf16.gmra.mxu1 %v2269_v22 }
 0x4f2   : > { %3003 = vmatmul.bf16.gmra.mxu0 %v2914_v23 }
 0x4f6   : > { %v5057_v20 = vpop.eup %5056 }
 0x4f7   : > { %v2343_v34 = vpop.f32.mrf.mxu1  ;;  %v2823_v28 = vpop.f32.mrf.mxu3  ;;  %v2742_v53 = vmul.f32 %v5057_v20, %v6944_v5 }
 0x4f8   : > { %v2390_v38 = vadd.f32 %v2343_v34, %v6899_v35  ;;  %v2228_v31 = vpop.xlane.xlu0 %2227 }
 0x4f9   : > { %v2750_v39 = vpack.c.bf16 %v2742_v53, %v2741_v47  ;;  %5058 = vrcp.f32 %v2228_v31  ;;  %v7973_v53 = vld [vmem:[#allocation13_spill] sm:$0xff] }
 0x4fa   : > { %v2870_v55 = vadd.f32 %v2823_v28, %v2390_v38 }
 0x4fb   : > { %2842 = vmatmul.bf16.gmra.mxu3 %v2750_v39 }
 0x4ff   : > { %v2345_v44 = vpop.f32.mrf.mxu1  ;;  %v2825_v40 = vpop.f32.mrf.mxu3 }
 0x500   : > { %v2391_v26 = vadd.f32 %v2345_v44, %v1911_v43  ;;  %v5059_v63 = vpop.eup %5058  ;;  %v1917_v43 = vadd.f32 %v6971_v8, %v6966_v37  ;;  %v7975_v8 = vld [vmem:[#allocation15_spill] sm:$0xff] }
 0x501   : > { %v2261_v46 = vmul.f32 %v5059_v63, %v6952_v32  ;;  %v7017_v32 = vld [vmem:[%s7840_s9 + $0x1] ss:$0 sm:$0xff] }
 0x502   : > { %v2871_v25 = vadd.f32 %v2825_v40, %v2391_v26 }
 0x504   : > { %v2915_v41 = vpack.c.bf16 %v2871_v25, %v2870_v55 }
 0x505   : > { %v2230_v21 = vpop.xlane.xlu1 %2229 }
 0x506   : > { %5060 = vrcp.f32 %v2230_v21  ;;  %3008 = vmatmul.bf16.gmra.mxu0 %v2915_v41  ;;  %v7974_v21 = vld [vmem:[#allocation14_spill] sm:$0xff] }
 0x50c   : > { %v5061_v5 = vpop.eup %5060 }
 0x50d   : > { %v2262_v29 = vmul.f32 %v5061_v5, %v6975_v10  ;;  %v2828_v11 = vpop.f32.mrf.mxu3 }
 0x50f   : > { %v2270_v58 = vpack.c.bf16 %v2262_v29, %v2261_v46 }
 0x511   : > { %v2348_v35 = vpop.f32.mrf.mxu1  ;;  %2362 = vmatmul.bf16.gmra.mxu1 %v2270_v58 }
 0x512   : > { %v2392_v3 = vadd.f32 %v2348_v35, %v6916_v49 }
 0x514   : > { %v2872_v51 = vadd.f32 %v2828_v11, %v2392_v3  ;;  %v5167_v11 = vmov 128.0  }
 0x515   : > { %v2830_v48 = vpop.f32.mrf.mxu3  ;;  %5062 = vrcp.f32 %v5167_v11 }
 0x519   : > { %v2350_v57 = vpop.f32.mrf.mxu1 }
 0x51a   : > { %v2393_v7 = vadd.f32 %v2350_v57, %v1913_v42  ;;  %v1919_v42 = vadd.f32 %v6987_v54, %v6985_v50 }
 0x51b   : > { %v5063_v35 = vpop.eup %5062 }
 0x51c   : > { %v2873_v62 = vadd.f32 %v2830_v48, %v2393_v7  ;;  %vm3087_vm13 = vweird.f32 %v5063_v35 }
 0x51e   : > { %v2916_v33 = vpack.c.bf16 %v2873_v62, %v2872_v51  ;;  %v3083_v51 = vmul.f32 128.0, %v5063_v35 }
 0x51f   : > { %v2833_v49 = vpop.f32.mrf.mxu3 }
 0x520   : > { %3013 = vmatmul.bf16.gmra.mxu0 %v2916_v33 }
 0x527   : > { %v2835_v61 = vpop.f32.mrf.mxu3 }
 0x531   : > { %v2994_v10 = vpop.f32.mrf.mxu0 }
 0x532   : > { %v2995_v59 = vadd.f32 %v7017_v32, %v2994_v10 }
 0x534   : > { %v7021_v30 = vadd.f32 %v2995_v59, %v7969_v56  ;;  %v3084_v59 = vsub.f32 1.0, %v3083_v51  ;;  %v7982_v51 = vld [vmem:[#allocation22_spill] sm:$0xff] }
 0x536   : > { %3050 = vadd.xlane.f32.xlu2 %v7021_v30  ;;  %v3085_v56 = vmul.f32 %v5063_v35, %v3084_v59 }
 0x538   : > { %v2353_v9 = vpop.f32.mrf.mxu1 }
 0x539   : > { %v2996_v16 = vpop.f32.mrf.mxu0  ;;  %v2394_v6 = vadd.f32 %v2353_v9, %v6939_v2 }
 0x53a   : > { %v2997_v1 = vadd.f32 %v7017_v32, %v2996_v16 }
 0x53b   : > { %v2874_v15 = vadd.f32 %v2833_v49, %v2394_v6  ;;  %v3086_v49 = vadd.f32 %v5063_v35, %v3085_v56  ;;  %v4596_v56 = vld [vmem:[%s7837_s6 + $0x78] sm:$0xf0] }
 0x53c   : > { %v7026_v19 = vadd.f32 %v2997_v1, %v7970_v12 }
 0x53d   : > { %v7063_v9 = vsel %vm3087_vm13, %v5063_v35, %v3086_v49 }
 0x53e   : > { %3052 = vadd.xlane.f32.xlu0 %v7026_v19 }
 0x540   : > { %v2355_v13 = vpop.f32.mrf.mxu1 }
 0x541   : > { %v2395_v36 = vadd.f32 %v2355_v13, %v1915_v4  ;;  %v2999_v14 = vpop.f32.mrf.mxu0 }
 0x542   : > { %v3000_v24 = vadd.f32 %v7017_v32, %v2999_v14  ;;  %v7976_v14 = vld [vmem:[#allocation16_spill] sm:$0xff] }
 0x543   : > { %v2875_v17 = vadd.f32 %v2835_v61, %v2395_v36 }
 0x544   : > { %v7034_v22 = vadd.f32 %v3000_v24, %v7971_v18 }
 0x545   : > { %v2917_v23 = vpack.c.bf16 %v2875_v17, %v2874_v15 }
 0x546   : > { %3054 = vadd.xlane.f32.xlu1 %v7034_v22 }
 0x547   : > { %3018 = vmatmul.bf16.gmra.mxu0 %v2917_v23 }
 0x549   : > { %v3001_v0 = vpop.f32.mrf.mxu0 }
 0x54a   : > { %v3002_v45 = vadd.f32 %v7017_v32, %v3001_v0 }
 0x54c   : > { %v7039_v2 = vadd.f32 %v3002_v45, %v7972_v60 }
 0x54e   : > { %3056 = vadd.xlane.f32.xlu2 %v7039_v2 }
 0x56c   : > { %v2838_v20 = vpop.f32.mrf.mxu3 }
 0x56e   : > { %v2358_v34 = vpop.f32.mrf.mxu1 }
 0x56f   : > { %v3004_v28 = vpop.f32.mrf.mxu0  ;;  %v2396_v38 = vadd.f32 %v2358_v34, %v6961_v52 }
 0x570   : > { %v3005_v47 = vadd.f32 %v7017_v32, %v3004_v28 }
 0x571   : > { %v2876_v25 = vadd.f32 %v2838_v20, %v2396_v38 }
 0x572   : > { %v7044_v39 = vadd.f32 %v3005_v47, %v7973_v53  ;;  %v7978_v47 = vld [vmem:[#allocation18_spill] sm:$0xff] }
 0x574   : > { %3058 = vadd.xlane.f32.xlu0 %v7044_v39  ;;  %v2840_v40 = vpop.f32.mrf.mxu3 }
 0x576   : > { %v2360_v44 = vpop.f32.mrf.mxu1 }
 0x577   : > { %v2397_v26 = vadd.f32 %v2360_v44, %v1917_v43  ;;  %v3006_v31 = vpop.f32.mrf.mxu0  ;;  %v7979_v44 = vld [vmem:[#allocation19_spill] sm:$0xff] }
 0x578   : > { %v3007_v55 = vadd.f32 %v7017_v32, %v3006_v31 }
 0x579   : > { %v2877_v41 = vadd.f32 %v2840_v40, %v2397_v26 }
 0x57a   : > { %v7052_v63 = vadd.f32 %v3007_v55, %v7974_v21 }
 0x57b   : > { %v2918_v5 = vpack.c.bf16 %v2877_v41, %v2876_v25 }
 0x57c   : > { %3060 = vadd.xlane.f32.xlu1 %v7052_v63 }
 0x57d   : > { %3023 = vmatmul.bf16.gmra.mxu0 %v2918_v5 }
 0x57e   : > { %v2843_v29 = vpop.f32.mrf.mxu3 }
 0x583   : > { %v3009_v46 = vpop.f32.mrf.mxu0 }
 0x584   : > { %v3010_v37 = vadd.f32 %v7017_v32, %v3009_v46 }
 0x586   : > { %v7057_v52 = vadd.f32 %v3010_v37, %v7975_v8  ;;  %v2845_v48 = vpop.f32.mrf.mxu3  ;;  %v7980_v37 = vld [vmem:[#allocation20_spill] sm:$0xff] }
 0x588   : > { %3062 = vadd.xlane.f32.xlu1 %v7057_v52 }
 0x58e   : > { %v2363_v58 = vpop.f32.mrf.mxu1 }
 0x58f   : > { %v2398_v3 = vadd.f32 %v2363_v58, %v6981_v27  ;;  %v3011_v27 = vpop.f32.mrf.mxu0 }
 0x590   : > { %v3012_v4 = vadd.f32 %v7017_v32, %v3011_v27  ;;  %v4715_v27 = vld [vmem:[%s7837_s6 + $0x64] sm:$0xf] }
 0x591   : > { %v2878_v62 = vadd.f32 %v2843_v29, %v2398_v3 }
 0x592   : > { %v7077_v61 = vadd.f32 %v3012_v4, %v7976_v14  ;;  %v4713_v14 = vld [vmem:[%s7837_s6 + $0x54] sm:$0xf] }
 0x596   : > { %v2365_v57 = vpop.f32.mrf.mxu1 }
 0x597   : > { %v2399_v7 = vadd.f32 %v2365_v57, %v1919_v42  ;;  %v7981_v42 = vld [vmem:[#allocation21_spill] sm:$0xff] }
 0x599   : > { %v2879_v33 = vadd.f32 %v2845_v48, %v2399_v7 }
 0x59b   : > { %v2919_v10 = vpack.c.bf16 %v2879_v33, %v2878_v62  ;;  %v4594_v33 = vld [vmem:[%s7837_s6 + $0x70] sm:$0xf] }
 0x59d   : > { %3028 = vmatmul.bf16.gmra.mxu0 %v2919_v10  ;;  %v3014_v36 = vpop.f32.mrf.mxu0  ;;  %v4717_v10 = vld [vmem:[%s7837_s6 + $0x74] sm:$0xf] }
 0x59e   : > { %v3015_v15 = vadd.f32 %v7017_v32, %v3014_v36  ;;  %v4599_v49 = vor.u32 %v4717_v10, %v4596_v56  ;;  %v4714_v36 = vld [vmem:[%s7837_s6 + $0x54] sm:$0xf0]  ;;  %v4704_v10 = vld [vmem:[%s7837_s6 + $0x4] sm:$0xf0] }
 0x5a0   : > { %3570 = vmatpush.bf16.msrb.mxu2 %v4599_v49  ;;  %v4540_v49 = vld [vmem:[%s7837_s6 + $0x8] sm:$0xf0] }
 0x5a5   : > { %v3016_v45 = vpop.f32.mrf.mxu0 }
 0x5a6   : > { %v3017_v20 = vadd.f32 %v7017_v32, %v3016_v45  ;;  %v4711_v45 = vld [vmem:[%s7837_s6 + $0x44] sm:$0xf] }
 0x5a8   : > { %v7101_v53 = vadd.f32 %v3017_v20, %v7978_v47  ;;  %v7983_v47 = vld [vmem:[#allocation23_spill] sm:$0xff] }
 0x5a9   : > { %v3051_v16 = vpop.xlane.xlu2 %3050 }
 0x5aa   : > { %v3089_v1 = vmul.f32 %v7063_v9, %v3051_v16  ;;  %v4586_v16 = vld [vmem:[%s7837_s6 + $0x60] sm:$0xf] }
 0x5ac   : > { %v7067_v50 = vsub.f32 %v7021_v30, %v3089_v1  ;;  %v4716_v1 = vld [vmem:[%s7837_s6 + $0x64] sm:$0xf0] }
 0x5ae   : > { %v3121_v54 = vmul.f32 %v7067_v50, %v7067_v50 }
 0x5b0   : > { %3137 = vadd.xlane.f32.xlu2 %v3121_v54  ;;  %v4587_v54 = vor.u32 %v4716_v1, %v4586_v16 }
 0x5b1   : > { %v3053_v12 = vpop.xlane.xlu0 %3052 }
 0x5b2   : > { %v3090_v6 = vmul.f32 %v7063_v9, %v3053_v12  ;;  %v4588_v12 = vld [vmem:[%s7837_s6 + $0x68] sm:$0xf0] }
 0x5b3   : > { %v4591_v4 = vor.u32 %v4715_v27, %v4588_v12 }
 0x5b4   : > { %v7074_v13 = vsub.f32 %v7026_v19, %v3090_v6  ;;  %v7977_v19 = vld [vmem:[#allocation17_spill] sm:$0xff]  ;;  %v4578_v6 = vld [vmem:[%s7837_s6 + $0x50] sm:$0xf] }
 0x5b5   : > { %v7088_v23 = vadd.f32 %v3015_v15, %v7977_v19  ;;  %3571 = vmatpush.bf16.msrb.mxu2 %v4591_v4  ;;  %v4570_v19 = vld [vmem:[%s7837_s6 + $0x40] sm:$0xf] }
 0x5b6   : > { %v3122_v30 = vmul.f32 %v7074_v13, %v7074_v13 }
 0x5b8   : > { %3064 = vadd.xlane.f32.xlu2 %v7077_v61  ;;  %3139 = vadd.xlane.f32.xlu0 %v3122_v30  ;;  %v4579_v30 = vor.u32 %v4714_v36, %v4578_v6 }
 0x5b9   : > { %v3055_v24 = vpop.xlane.xlu1 %3054 }
 0x5ba   : > { %v3091_v17 = vmul.f32 %v7063_v9, %v3055_v24  ;;  %v4580_v24 = vld [vmem:[%s7837_s6 + $0x58] sm:$0xf0] }
 0x5bb   : > { %v4583_v15 = vor.u32 %v4713_v14, %v4580_v24 }
 0x5bc   : > { %v7085_v18 = vsub.f32 %v7034_v22, %v3091_v17 }
 0x5bd   : > { %3572 = vmatpush.bf16.msrb.mxu2 %v4583_v15 }
 0x5be   : > { %v3123_v0 = vmul.f32 %v7085_v18, %v7085_v18 }
 0x5c0   : > { %3066 = vadd.xlane.f32.xlu2 %v7088_v23  ;;  %3141 = vadd.xlane.f32.xlu0 %v3123_v0  ;;  %v4712_v0 = vld [vmem:[%s7837_s6 + $0x44] sm:$0xf0] }
 0x5c1   : > { %v3057_v60 = vpop.xlane.xlu2 %3056  ;;  %v4571_v20 = vor.u32 %v4712_v0, %v4570_v19 }
 0x5c2   : > { %v3092_v34 = vmul.f32 %v7063_v9, %v3057_v60 }
 0x5c4   : > { %v7096_v28 = vsub.f32 %v7039_v2, %v3092_v34  ;;  %v3019_v43 = vpop.f32.mrf.mxu0  ;;  %v4572_v34 = vld [vmem:[%s7837_s6 + $0x48] sm:$0xf0] }
 0x5c5   : > { %v3020_v38 = vadd.f32 %v7017_v32, %v3019_v43 }
 0x5c6   : > { %v3124_v22 = vmul.f32 %v7096_v28, %v7096_v28 }
 0x5c7   : > { %v7106_v26 = vadd.f32 %v3020_v38, %v7979_v44  ;;  %v4562_v38 = vld [vmem:[%s7837_s6 + $0x30] sm:$0xf]  ;;  %v4710_v44 = vld [vmem:[%s7837_s6 + $0x34] sm:$0xf0] }
 0x5c8   : > { %3143 = vadd.xlane.f32.xlu1 %v3124_v22  ;;  %3068 = vadd.xlane.f32.xlu0 %v7101_v53  ;;  %v4575_v22 = vor.u32 %v4711_v45, %v4572_v34 }
 0x5ca   : > { %3573 = vmatpush.bf16.msrb.mxu2 %v4575_v22 }
 0x5cc   : > { %v3021_v25 = vpop.f32.mrf.mxu0 }
 0x5cd   : > { %v3022_v21 = vadd.f32 %v7017_v32, %v3021_v25 }
 0x5cf   : > { %v7121_v8 = vadd.f32 %v3022_v21, %v7980_v37  ;;  %v4708_v21 = vld [vmem:[%s7837_s6 + $0x24] sm:$0xf0] }
 0x5d0   : > { %3070 = vadd.xlane.f32.xlu0 %v7106_v26 }
 0x5e7   : > { %v3059_v31 = vpop.xlane.xlu0 %3058 }
 0x5e8   : > { %v3093_v2 = vmul.f32 %v7063_v9, %v3059_v31  ;;  %v4709_v31 = vld [vmem:[%s7837_s6 + $0x34] sm:$0xf] }
 0x5ea   : > { %v7111_v40 = vsub.f32 %v7044_v39, %v3093_v2  ;;  %v4563_v2 = vor.u32 %v4710_v44, %v4562_v38 }
 0x5ec   : > { %v3125_v55 = vmul.f32 %v7111_v40, %v7111_v40 }
 0x5ee   : > { %3145 = vadd.xlane.f32.xlu1 %v3125_v55  ;;  %v4564_v55 = vld [vmem:[%s7837_s6 + $0x38] sm:$0xf0] }
 0x5ef   : > { %v3061_v41 = vpop.xlane.xlu1 %3060  ;;  %v4567_v25 = vor.u32 %v4709_v31, %v4564_v55 }
 0x5f0   : > { %v3094_v5 = vmul.f32 %v7063_v9, %v3061_v41  ;;  %v4554_v41 = vld [vmem:[%s7837_s6 + $0x20] sm:$0xf] }
 0x5f1   : > { %3574 = vmatpush.bf16.msrb.mxu2 %v4567_v25  ;;  %v4555_v37 = vor.u32 %v4708_v21, %v4554_v41 }
 0x5f2   : > { %v7118_v46 = vsub.f32 %v7052_v63, %v3094_v5  ;;  %v4707_v5 = vld [vmem:[%s7837_s6 + $0x24] sm:$0xf] }
 0x5f4   : > { %v3126_v39 = vmul.f32 %v7118_v46, %v7118_v46 }
 0x5f6   : > { %3072 = vadd.xlane.f32.xlu1 %v7121_v8  ;;  %3147 = vadd.xlane.f32.xlu2 %v3126_v39  ;;  %v4556_v39 = vld [vmem:[%s7837_s6 + $0x28] sm:$0xf0] }
 0x5fa   : > { %v3024_v29 = vpop.f32.mrf.mxu0 }
 0x5fb   : > { %v3025_v58 = vadd.f32 %v7017_v32, %v3024_v29  ;;  %v3063_v11 = vpop.xlane.xlu1 %3062 }
 0x5fc   : > { %v3095_v35 = vmul.f32 %v7063_v9, %v3063_v11 }
 0x5fd   : > { %v7129_v3 = vadd.f32 %v3025_v58, %v7981_v42  ;;  %v4559_v58 = vor.u32 %v4707_v5, %v4556_v39  ;;  %v4706_v42 = vld [vmem:[%s7837_s6 + $0x14] sm:$0xf0] }
 0x5fe   : > { %v7132_v63 = vsub.f32 %v7057_v52, %v3095_v35  ;;  %v4718_v52 = vld [vmem:[%s7837_s6 + $0x74] sm:$0xf0]  ;;  %v4546_v35 = vld [vmem:[%s7837_s6 + $0x10] sm:$0xf] }
 0x5ff   : > { %3074 = vadd.xlane.f32.xlu1 %v7129_v3  ;;  %v4595_v59 = vor.u32 %v4718_v52, %v4594_v33  ;;  %3575 = vmatpush.bf16.msrb.mxu2 %v4559_v58  ;;  %v4538_v52 = vld [vmem:[%s7837_s6] sm:$0xf] }
 0x600   : > { %v3127_v57 = vmul.f32 %v7132_v63, %v7132_v63  ;;  %v4539_v56 = vor.u32 %v4704_v10, %v4538_v52 }
 0x601   : > { %3521 = vmatpush.bf16.msra.mxu1 %v4595_v59  ;;  %v4703_v59 = vld [vmem:[%s7837_s6 + $0x4] sm:$0xf] }
 0x602   : > { %v3026_v7 = vpop.f32.mrf.mxu0  ;;  %3149 = vadd.xlane.f32.xlu2 %v3127_v57  ;;  %v4705_v57 = vld [vmem:[%s7837_s6 + $0x14] sm:$0xf]  ;;  %v4543_v27 = vor.u32 %v4703_v59, %v4540_v49 }
 0x603   : > { %v3027_v48 = vadd.f32 %v7017_v32, %v3026_v7 }
 0x605   : > { %v7139_v62 = vadd.f32 %v3027_v48, %v7982_v51  ;;  %3522 = vmatpush.bf16.msra.mxu1 %v4587_v54  ;;  %v4547_v48 = vor.u32 %v4706_v42, %v4546_v35  ;;  %v4548_v51 = vld [vmem:[%s7837_s6 + $0x18] sm:$0xf0] }
 0x606   : > { %v4551_v33 = vor.u32 %v4705_v57, %v4548_v51  ;;  %v7984_v57 = vld [vmem:[#allocation24_spill] sm:$0xff] }
 0x608   : > { %3576 = vmatpush.bf16.msrb.mxu2 %v4551_v33 }
 0x609   : > { %3523 = vmatpush.bf16.msra.mxu1 %v4579_v30 }
 0x60a   : > { %3076 = vadd.xlane.f32.xlu2 %v7139_v62 }
 0x60c   : > { %3577 = vmatpush.bf16.msrb.mxu2 %v4543_v27 }
 0x60d   : > { %3524 = vmatpush.bf16.msra.mxu1 %v4571_v20 }
 0x611   : > { %3525 = vmatpush.bf16.msra.mxu1 %v4563_v2 }
 0x615   : > { %3526 = vmatpush.bf16.msra.mxu1 %v4555_v37 }
 0x619   : > { %3527 = vmatpush.bf16.msra.mxu1 %v4547_v48 }
 0x61a   : > { %v3029_v17 = vpop.f32.mrf.mxu0 }
 0x61b   : > { %v3030_v60 = vadd.f32 %v7017_v32, %v3029_v17 }
 0x61d   : > { %v7192_v43 = vadd.f32 %v3030_v60, %v7983_v47  ;;  %3528 = vmatpush.bf16.msra.mxu1 %v4539_v56 }
 0x61f   : > { %3078 = vadd.xlane.f32.xlu2 %v7192_v43 }
 0x622   : > { %v3031_v44 = vpop.f32.mrf.mxu0 }
 0x623   : > { %v3138_v29 = vpop.xlane.xlu2 %3137 }
 0x624   : > { %v3169_v11 = vmul.f32 %v3138_v29, %v7063_v9  ;;  %v7264_v29 = vld [vmem:[%s7840_s9 + $0x2] ss:$0 sm:$0xff] }
 0x626   : > { %v3185_v7 = vadd.f32 1e-05, %v3169_v11 }
 0x628   : > { %5064 = vrsqrt.f32 %v3185_v7  ;;  %vm3207_vm15 = vweird.f32 %v3185_v7 }
 0x62b   : > { %v3065_v16 = vpop.xlane.xlu2 %3064  ;;  %v3140_v1 = vpop.xlane.xlu0 %3139 }
 0x62c   : > { %v3096_v54 = vmul.f32 %v7063_v9, %v3065_v16  ;;  %v3170_v12 = vmul.f32 %v3140_v1, %v7063_v9 }
 0x62e   : > { %v5065_v4 = vpop.eup %5064  ;;  %v7247_v6 = vsub.f32 %v7077_v61, %v3096_v54  ;;  %v3186_v36 = vadd.f32 1e-05, %v3170_v12 }
 0x62f   : > { %v3202_v14 = vmul.f32 %v5065_v4, %v3185_v7  ;;  %vm3208_vm14 = vweird.f32 %v5065_v4 }
 0x630   : > { %5066 = vrsqrt.f32 %v3186_v36  ;;  %v3128_v30 = vmul.f32 %v7247_v6, %v7247_v6  ;;  %vm3209_vm0 = vmor %vm3207_vm15, %vm3208_vm14  ;;  %vm3217_vm2 = vweird.f32 %v3186_v36 }
 0x631   : > { %v3203_v24 = vmul.f32 %v5065_v4, %v3202_v14 }
 0x632   : > { %3151 = vadd.xlane.f32.xlu0 %v3128_v30 }
 0x633   : > { %v3204_v15 = vmul.f32 0.5, %v3203_v24  ;;  %v3067_v17 = vpop.xlane.xlu2 %3066  ;;  %v3142_v19 = vpop.xlane.xlu0 %3141 }
 0x634   : > { %v3097_v0 = vmul.f32 %v7063_v9, %v3067_v17  ;;  %v3171_v45 = vmul.f32 %v3142_v19, %v7063_v9 }
 0x635   : > { %v3205_v60 = vsub.f32 1.5, %v3204_v15 }
 0x636   : > { %v5067_v20 = vpop.eup %5066  ;;  %v7254_v61 = vsub.f32 %v7088_v23, %v3097_v0  ;;  %v3187_v34 = vadd.f32 1e-05, %v3171_v45  ;;  %v3032_v23 = vadd.f32 %v7017_v32, %v3031_v44 }
 0x637   : > { %v3206_v22 = vmul.f32 %v5065_v4, %v3205_v60  ;;  %v3212_v47 = vmul.f32 %v5067_v20, %v3186_v36  ;;  %vm3218_vm1 = vweird.f32 %v5067_v20 }
 0x638   : > { %5068 = vrsqrt.f32 %v3187_v34  ;;  %v3129_v38 = vmul.f32 %v7254_v61, %v7254_v61  ;;  %v7271_v7 = vadd.f32 %v3032_v23, %v7984_v57  ;;  %vm3219_vm3 = vmor %vm3217_vm2, %vm3218_vm1  ;;  %vm3227_vm5 = vweird.f32 %v3187_v34 }
 0x639   : > { %v3213_v31 = vmul.f32 %v5067_v20, %v3212_v47  ;;  %v3210_v2 = vsel %vm3209_vm0, %v5065_v4, %v3206_v22 }
 0x63a   : > { %3153 = vadd.xlane.f32.xlu0 %v3129_v38  ;;  %v3361_v58 = vmul.f32 %v3210_v2, %v7067_v50  ;;  %v7278_v50 = vld [vmem:[%s7840_s9 + $0x3] ss:$0 sm:$0xff] }
 0x63b   : > { %v3214_v55 = vmul.f32 0.5, %v3213_v31  ;;  %v3069_v25 = vpop.xlane.xlu0 %3068  ;;  %v3144_v41 = vpop.xlane.xlu1 %3143 }
 0x63c   : > { %v3098_v21 = vmul.f32 %v7063_v9, %v3069_v25  ;;  %v3172_v5 = vmul.f32 %v3144_v41, %v7063_v9 }
 0x63d   : > { %v3215_v37 = vsub.f32 1.5, %v3214_v55 }
 0x63e   : > { %v5069_v39 = vpop.eup %5068  ;;  %v7268_v11 = vsub.f32 %v7101_v53, %v3098_v21  ;;  %v3188_v35 = vadd.f32 1e-05, %v3172_v5  ;;  %v3378_v53 = vmul.f32 %v7264_v29, %v3361_v58 }
 0x63f   : > { %v3216_v42 = vmul.f32 %v5067_v20, %v3215_v37  ;;  %v3222_v32 = vmul.f32 %v5069_v39, %v3187_v34  ;;  %vm3228_vm4 = vweird.f32 %v5069_v39 }
 0x640   : > { %5070 = vrsqrt.f32 %v3188_v35  ;;  %v3130_v48 = vmul.f32 %v7268_v11, %v7268_v11  ;;  %v7286_v27 = vadd.f32 %v7278_v50, %v3378_v53  ;;  %vm3229_vm6 = vmor %vm3227_vm5, %vm3228_vm4  ;;  %vm3237_vm8 = vweird.f32 %v3188_v35 }
 0x641   : > { %v3220_v51 = vsel %vm3219_vm3, %v5067_v20, %v3216_v42  ;;  %v3223_v33 = vmul.f32 %v5069_v39, %v3222_v32 }
 0x642   : > { %v3362_v52 = vmul.f32 %v3220_v51, %v7074_v13  ;;  %3080 = vadd.xlane.f32.xlu0 %v7271_v7  ;;  %3155 = vadd.xlane.f32.xlu1 %v3130_v48 }
 0x643   : > { %v3224_v10 = vmul.f32 0.5, %v3223_v33  ;;  %v3071_v59 = vpop.xlane.xlu0 %3070 }
 0x644   : > { %v3379_v56 = vmul.f32 %v7264_v29, %v3362_v52  ;;  %v3099_v49 = vmul.f32 %v7063_v9, %v3071_v59 }
 0x645   : > { %v3225_v16 = vsub.f32 1.5, %v3224_v10 }
 0x646   : > { %v5071_v1 = vpop.eup %5070  ;;  %v7289_v54 = vadd.f32 %v7278_v50, %v3379_v56  ;;  %v7292_v12 = vsub.f32 %v7106_v26, %v3099_v49 }
 0x647   : > { %v3226_v13 = vmul.f32 %v5069_v39, %v3225_v16  ;;  %v3232_v4 = vmul.f32 %v5071_v1, %v3188_v35  ;;  %vm3238_vm7 = vweird.f32 %v5071_v1 }
 0x648   : > { %v3411_v36 = vpack.c.bf16 %v7289_v54, %v7286_v27  ;;  %v3131_v14 = vmul.f32 %v7292_v12, %v7292_v12  ;;  %vm3239_vm9 = vmor %vm3237_vm8, %vm3238_vm7 }
 0x649   : > { %v3233_v30 = vmul.f32 %v5071_v1, %v3232_v4  ;;  %v3230_v24 = vsel %vm3229_vm6, %v5069_v39, %v3226_v13 }
 0x64a   : > { %3529 = vmatmul.bf16.vlgmr.msra.gmra.mxu1 %v3411_v36  ;;  %3578 = vmatmul.bf16.vlgmr.msrb.gmra.mxu2 %v3411_v36  ;;  %v3363_v26 = vmul.f32 %v3230_v24, %v7085_v18 }
 0x64b   : > { %v3234_v15 = vmul.f32 0.5, %v3233_v30  ;;  %3157 = vadd.xlane.f32.xlu1 %v3131_v14 }
 0x64c   : > { %v3380_v60 = vmul.f32 %v7264_v29, %v3363_v26 }
 0x64d   : > { %v3235_v17 = vsub.f32 1.5, %v3234_v15 }
 0x64e   : > { %v7303_v34 = vadd.f32 %v7278_v50, %v3380_v60 }
 0x64f   : > { %v3236_v19 = vmul.f32 %v5071_v1, %v3235_v17 }
 0x651   : > { %v3240_v0 = vsel %vm3239_vm9, %v5071_v1, %v3236_v19 }
 0x652   : > { %v3364_v45 = vmul.f32 %v3240_v0, %v7096_v28 }
 0x654   : > { %v3381_v20 = vmul.f32 %v7264_v29, %v3364_v45  ;;  %v4726_v45 = vld [vmem:[%s7839_s8 + $0x38] sm:$0xff] }
 0x655   : > { %3796 = vmatpush.bf16.msra.mxu3 %v4726_v45 }
 0x656   : > { %v7306_v22 = vadd.f32 %v7278_v50, %v3381_v20  ;;  %v4725_v20 = vld [vmem:[%s7839_s8 + $0x30] sm:$0xff] }
 0x658   : > { %v3412_v47 = vpack.c.bf16 %v7306_v22, %v7303_v34 }
 0x659   : > { %3797 = vmatpush.bf16.msra.mxu3 %v4725_v20 }
 0x65a   : > { %3534 = vmatmul.bf16.gmra.mxu1 %v3412_v47  ;;  %3583 = vmatmul.bf16.gmra.mxu2 %v3412_v47 }
 0x661   : > { %v3146_v18 = vpop.xlane.xlu1 %3145 }
 0x662   : > { %v3173_v38 = vmul.f32 %v3146_v18, %v7063_v9  ;;  %v4724_v18 = vld [vmem:[%s7839_s8 + $0x28] sm:$0xff] }
 0x663   : > { %3798 = vmatpush.bf16.msra.mxu3 %v4724_v18 }
 0x664   : > { %v3189_v44 = vadd.f32 1e-05, %v3173_v38  ;;  %v4733_v38 = vld [vmem:[%s7839_s8 + $0x70] sm:$0xff] }
 0x666   : > { %5072 = vrsqrt.f32 %v3189_v44  ;;  %vm3247_vm11 = vweird.f32 %v3189_v44 }
 0x669   : > { %v3148_v28 = vpop.xlane.xlu2 %3147  ;;  %v3073_v31 = vpop.xlane.xlu1 %3072 }
 0x66a   : > { %v3174_v2 = vmul.f32 %v3148_v28, %v7063_v9  ;;  %v3100_v55 = vmul.f32 %v7063_v9, %v3073_v31 }
 0x66c   : > { %v5073_v25 = vpop.eup %5072  ;;  %v3190_v41 = vadd.f32 1e-05, %v3174_v2  ;;  %v7314_v23 = vsub.f32 %v7121_v8, %v3100_v55  ;;  %v4723_v2 = vld [vmem:[%s7839_s8 + $0x20] sm:$0xff] }
 0x66d   : > { %v3242_v21 = vmul.f32 %v5073_v25, %v3189_v44  ;;  %vm3248_vm10 = vweird.f32 %v5073_v25  ;;  %3799 = vmatpush.bf16.msra.mxu3 %v4723_v2 }
 0x66e   : > { %5074 = vrsqrt.f32 %v3190_v41  ;;  %v3132_v5 = vmul.f32 %v7314_v23, %v7314_v23  ;;  %vm3249_vm12 = vmor %vm3247_vm11, %vm3248_vm10  ;;  %vm3257_vm14 = vweird.f32 %v3190_v41 }
 0x66f   : > { %v3243_v37 = vmul.f32 %v5073_v25, %v3242_v21  ;;  %v4722_v21 = vld [vmem:[%s7839_s8 + $0x18] sm:$0xff] }
 0x670   : > { %3159 = vadd.xlane.f32.xlu2 %v3132_v5  ;;  %v4731_v5 = vld [vmem:[%s7839_s8 + $0x60] sm:$0xff] }
 0x671   : > { %v3244_v39 = vmul.f32 0.5, %v3243_v37  ;;  %3800 = vmatpush.bf16.msra.mxu3 %v4722_v21  ;;  %v3435_v21 = vld [vmem:[%s7838_s7] sm:$0x3] }
 0x672   : > { %v3075_v58 = vpop.xlane.xlu1 %3074 }
 0x673   : > { %v3245_v35 = vsub.f32 1.5, %v3244_v39  ;;  %v3101_v42 = vmul.f32 %v7063_v9, %v3075_v58 }
 0x674   : > { %v5075_v32 = vpop.eup %5074 }
 0x675   : > { %v3246_v57 = vmul.f32 %v5073_v25, %v3245_v35  ;;  %v3252_v48 = vmul.f32 %v5075_v32, %v3190_v41  ;;  %v7320_v51 = vsub.f32 %v7129_v3, %v3101_v42  ;;  %v3150_v8 = vpop.xlane.xlu2 %3149  ;;  %vm3258_vm13 = vweird.f32 %v5075_v32  ;;  %v4721_v35 = vld [vmem:[%s7839_s8 + $0x10] sm:$0xff] }
 0x676   : > { %vm3259_vm15 = vmor %vm3257_vm14, %vm3258_vm13  ;;  %3801 = vmatpush.bf16.msra.mxu3 %v4721_v35  ;;  %v7422_v35 = vperm.slane %v3435_v21, 0 }
 0x677   : > { %v3253_v33 = vmul.f32 %v5075_v32, %v3252_v48  ;;  %v3133_v53 = vmul.f32 %v7320_v51, %v7320_v51  ;;  %v3250_v52 = vsel %vm3249_vm12, %v5073_v25, %v3246_v57  ;;  %v4732_v25 = vld [vmem:[%s7839_s8 + $0x68] sm:$0xff]  ;;  %v4730_v57 = vld [vmem:[%s7839_s8 + $0x58] sm:$0xff] }
 0x678   : > { %v3365_v56 = vmul.f32 %v3250_v52, %v7111_v40  ;;  %v4729_v52 = vld [vmem:[%s7839_s8 + $0x50] sm:$0xff] }
 0x679   : > { %v3254_v10 = vmul.f32 0.5, %v3253_v33  ;;  %3161 = vadd.xlane.f32.xlu0 %v3133_v53  ;;  %v4720_v33 = vld [vmem:[%s7839_s8 + $0x8] sm:$0xff] }
 0x67a   : > { %v3382_v36 = vmul.f32 %v7264_v29, %v3365_v56  ;;  %3802 = vmatpush.bf16.msra.mxu3 %v4720_v33 }
 0x67b   : > { %v3255_v59 = vsub.f32 1.5, %v3254_v10 }
 0x67c   : > { %v7335_v40 = vadd.f32 %v7278_v50, %v3382_v36 }
 0x67d   : > { %v3256_v49 = vmul.f32 %v5075_v32, %v3255_v59  ;;  %v3077_v16 = vpop.xlane.xlu2 %3076 }
 0x67e   : > { %v3102_v3 = vmul.f32 %v7063_v9, %v3077_v16  ;;  %v4719_v16 = vld [vmem:[%s7839_s8] sm:$0xff] }
 0x67f   : > { %v3260_v1 = vsel %vm3259_vm15, %v5075_v32, %v3256_v49  ;;  %3803 = vmatpush.bf16.msra.mxu3 %v4719_v16 }
 0x680   : > { %v3366_v13 = vmul.f32 %v3260_v1, %v7118_v46  ;;  %v7328_v4 = vsub.f32 %v7139_v62, %v3102_v3  ;;  %v3175_v62 = vmul.f32 %v3150_v8, %v7063_v9 }
 0x682   : > { %v3134_v14 = vmul.f32 %v7328_v4, %v7328_v4  ;;  %v3383_v30 = vmul.f32 %v7264_v29, %v3366_v13  ;;  %v3191_v26 = vadd.f32 1e-05, %v3175_v62  ;;  %v4728_v62 = vld [vmem:[%s7839_s8 + $0x48] sm:$0xff] }
 0x684   : > { %3163 = vadd.xlane.f32.xlu1 %v3134_v14  ;;  %v7338_v24 = vadd.f32 %v7278_v50, %v3383_v30  ;;  %5076 = vrsqrt.f32 %v3191_v26  ;;  %vm3267_vm1 = vweird.f32 %v3191_v26 }
 0x686   : > { %v3413_v46 = vpack.c.bf16 %v7338_v24, %v7335_v40 }
 0x688   : > { %3539 = vmatmul.bf16.gmra.mxu1 %v3413_v46  ;;  %3588 = vmatmul.bf16.gmra.mxu2 %v3413_v46 }
 0x68a   : > { %v5077_v60 = vpop.eup %5076 }
 0x68b   : > { %v3262_v47 = vmul.f32 %v5077_v60, %v3191_v26  ;;  %vm3268_vm0 = vweird.f32 %v5077_v60 }
 0x68c   : > { %vm3269_vm2 = vmor %vm3267_vm1, %vm3268_vm0 }
 0x68d   : > { %v3263_v44 = vmul.f32 %v5077_v60, %v3262_v47 }
 0x68f   : > { %v3264_v41 = vmul.f32 0.5, %v3263_v44 }
 0x691   : > { %v3265_v37 = vsub.f32 1.5, %v3264_v41 }
 0x692   : > { %v3079_v15 = vpop.xlane.xlu2 %3078 }
 0x693   : > { %v3103_v17 = vmul.f32 %v7063_v9, %v3079_v15  ;;  %v3266_v48 = vmul.f32 %v5077_v60, %v3265_v37 }
 0x695   : > { %v7345_v19 = vsub.f32 %v7192_v43, %v3103_v17  ;;  %v4734_v43 = vld [vmem:[%s7839_s8 + $0x78] sm:$0xff]  ;;  %v3270_v10 = vsel %vm3269_vm2, %v5077_v60, %v3266_v48 }
 0x696   : > { %3845 = vmatpush.bf16.msra.mxu0 %v4734_v43  ;;  %4738 = vmatpush.bf16.msra.mxu2 %v4734_v43  ;;  %v3367_v14 = vmul.f32 %v3270_v10, %v7132_v63  ;;  %v4727_v63 = vld [vmem:[%s7839_s8 + $0x40] sm:$0xff] }
 0x697   : > { %v3135_v0 = vmul.f32 %v7345_v19, %v7345_v19 }
 0x698   : > { %v3384_v60 = vmul.f32 %v7264_v29, %v3367_v14 }
 0x699   : > { %3165 = vadd.xlane.f32.xlu2 %v3135_v0 }
 0x69a   : > { %3846 = vmatpush.bf16.msra.mxu0 %v4733_v38  ;;  %4739 = vmatpush.bf16.msra.mxu2 %v4733_v38  ;;  %v7411_v38 = vadd.f32 %v7278_v50, %v3384_v60 }
 0x69e   : > { %3847 = vmatpush.bf16.msra.mxu0 %v4732_v25  ;;  %4740 = vmatpush.bf16.msra.mxu2 %v4732_v25 }
 0x6a2   : > { %3848 = vmatpush.bf16.msra.mxu0 %v4731_v5  ;;  %4741 = vmatpush.bf16.msra.mxu2 %v4731_v5 }
 0x6a5   : > { %v3152_v28 = vpop.xlane.xlu0 %3151 }
 0x6a6   : > { %v3176_v31 = vmul.f32 %v3152_v28, %v7063_v9  ;;  %3849 = vmatpush.bf16.msra.mxu0 %v4730_v57  ;;  %4742 = vmatpush.bf16.msra.mxu2 %v4730_v57 }
 0x6a8   : > { %v3192_v55 = vadd.f32 1e-05, %v3176_v31 }
 0x6aa   : > { %5078 = vrsqrt.f32 %v3192_v55  ;;  %3850 = vmatpush.bf16.msra.mxu0 %v4729_v52  ;;  %4743 = vmatpush.bf16.msra.mxu2 %v4729_v52  ;;  %vm3277_vm4 = vweird.f32 %v3192_v55 }
 0x6ad   : > { %v3154_v39 = vpop.xlane.xlu0 %3153 }
 0x6ae   : > { %v3177_v58 = vmul.f32 %v3154_v39, %v7063_v9  ;;  %3851 = vmatpush.bf16.msra.mxu0 %v4728_v62  ;;  %4744 = vmatpush.bf16.msra.mxu2 %v4728_v62 }
 0x6b0   : > { %v5079_v42 = vpop.eup %5078  ;;  %v3193_v32 = vadd.f32 1e-05, %v3177_v58 }
 0x6b1   : > { %v3272_v8 = vmul.f32 %v5079_v42, %v3192_v55  ;;  %vm3278_vm3 = vweird.f32 %v5079_v42 }
 0x6b2   : > { %5080 = vrsqrt.f32 %v3193_v32  ;;  %vm3279_vm5 = vmor %vm3277_vm4, %vm3278_vm3  ;;  %3852 = vmatpush.bf16.msra.mxu0 %v4727_v63  ;;  %4745 = vmatpush.bf16.msra.mxu2 %v4727_v63  ;;  %vm3287_vm7 = vweird.f32 %v3193_v32 }
 0x6b3   : > { %v3273_v53 = vmul.f32 %v5079_v42, %v3272_v8 }
 0x6b5   : > { %v3274_v59 = vmul.f32 0.5, %v3273_v53  ;;  %v3081_v56 = vpop.xlane.xlu0 %3080  ;;  %v3156_v49 = vpop.xlane.xlu1 %3155 }
 0x6b6   : > { %v3104_v3 = vmul.f32 %v7063_v9, %v3081_v56  ;;  %v3178_v1 = vmul.f32 %v3156_v49, %v7063_v9 }
 0x6b7   : > { %v3275_v13 = vsub.f32 1.5, %v3274_v59 }
 0x6b8   : > { %v5081_v36 = vpop.eup %5080  ;;  %v7397_v30 = vsub.f32 %v7271_v7, %v3104_v3  ;;  %v3194_v46 = vadd.f32 1e-05, %v3178_v1 }
 0x6b9   : > { %v3276_v15 = vmul.f32 %v5079_v42, %v3275_v13  ;;  %v3282_v17 = vmul.f32 %v5081_v36, %v3193_v32  ;;  %vm3288_vm6 = vweird.f32 %v5081_v36 }
 0x6ba   : > { %5082 = vrsqrt.f32 %v3194_v46  ;;  %v3136_v26 = vmul.f32 %v7397_v30, %v7397_v30  ;;  %vm3289_vm8 = vmor %vm3287_vm7, %vm3288_vm6  ;;  %vm3297_vm10 = vweird.f32 %v3194_v46 }
 0x6bb   : > { %v3280_v7 = vsel %vm3279_vm5, %v5079_v42, %v3276_v15  ;;  %v3283_v0 = vmul.f32 %v5081_v36, %v3282_v17 }
 0x6bc   : > { %v3368_v45 = vmul.f32 %v3280_v7, %v7247_v6  ;;  %3167 = vadd.xlane.f32.xlu0 %v3136_v26 }
 0x6bd   : > { %v3284_v20 = vmul.f32 0.5, %v3283_v0 }
 0x6be   : > { %v3385_v43 = vmul.f32 %v7264_v29, %v3368_v45  ;;  %v3158_v58 = vpop.xlane.xlu1 %3157 }
 0x6bf   : > { %v3285_v47 = vsub.f32 1.5, %v3284_v20  ;;  %v3179_v48 = vmul.f32 %v3158_v58, %v7063_v9 }
 0x6c0   : > { %v5083_v18 = vpop.eup %5082  ;;  %v7414_v44 = vadd.f32 %v7278_v50, %v3385_v43 }
 0x6c1   : > { %v3286_v28 = vmul.f32 %v5081_v36, %v3285_v47  ;;  %v3292_v31 = vmul.f32 %v5083_v18, %v3194_v46  ;;  %vm3298_vm9 = vweird.f32 %v5083_v18 }
 0x6c2   : > { %v3414_v6 = vpack.c.bf16 %v7414_v44, %v7411_v38  ;;  %vm3299_vm11 = vmor %vm3297_vm10, %vm3298_vm9 }
 0x6c3   : > { %v3293_v2 = vmul.f32 %v5083_v18, %v3292_v31  ;;  %v3290_v55 = vsel %vm3289_vm8, %v5081_v36, %v3286_v28 }
 0x6c4   : > { %3544 = vmatmul.bf16.gmra.mxu1 %v3414_v6  ;;  %3593 = vmatmul.bf16.gmra.mxu2 %v3414_v6  ;;  %v3369_v37 = vmul.f32 %v3290_v55, %v7254_v61  ;;  %v7429_v61 = vperm.slane %v3435_v21, 1 }
 0x6c5   : > { %v3294_v25 = vmul.f32 0.5, %v3293_v2 }
 0x6c6   : > { %v3386_v57 = vmul.f32 %v7264_v29, %v3369_v37 }
 0x6c7   : > { %v3295_v41 = vsub.f32 1.5, %v3294_v25  ;;  %v3530_v5 = vpop.f32.mrf.mxu1 }
 0x6c8   : > { %v3531_v33 = vadd.f32 %v3530_v5, %v7422_v35  ;;  %v7433_v59 = vadd.f32 %v7278_v50, %v3386_v57 }
 0x6c9   : > { %v3296_v39 = vmul.f32 %v5083_v18, %v3295_v41 }
 0x6ca   : > { %v3619_v49 = vmax.f32 %v3531_v33, 0.0 }
 0x6cb   : > { %v3300_v42 = vsel %vm3299_vm11, %v5083_v18, %v3296_v39 }
 0x6cc   : > { %v3370_v32 = vmul.f32 %v3300_v42, %v7268_v11  ;;  %v3195_v11 = vadd.f32 1e-05, %v3179_v48 }
 0x6cd   : > { %v3579_v8 = vpop.f32.mrf.mxu2 }
 0x6ce   : > { %v3387_v53 = vmul.f32 %v7264_v29, %v3370_v32  ;;  %v3580_v1 = vadd.f32 %v3579_v8, %v7429_v61  ;;  %5084 = vrsqrt.f32 %v3195_v11  ;;  %vm3307_vm13 = vweird.f32 %v3195_v11 }
 0x6cf   : > { %v3532_v52 = vpop.f32.mrf.mxu1 }
 0x6d0   : > { %v3533_v10 = vadd.f32 %v3532_v52, %v7422_v35  ;;  %v7436_v56 = vadd.f32 %v7278_v50, %v3387_v53  ;;  %v3620_v62 = vmax.f32 %v3580_v1, 0.0 }
 0x6d2   : > { %v3621_v16 = vmax.f32 %v3533_v10, 0.0  ;;  %v3415_v3 = vpack.c.bf16 %v7436_v56, %v7433_v59 }
 0x6d4   : > { %v3651_v13 = vpack.c.bf16 %v3621_v16, %v3619_v49  ;;  %3549 = vmatmul.bf16.gmra.mxu1 %v3415_v3  ;;  %3598 = vmatmul.bf16.gmra.mxu2 %v3415_v3  ;;  %v5085_v26 = vpop.eup %5084 }
 0x6d5   : > { %v3581_v36 = vpop.f32.mrf.mxu2  ;;  %v3302_v7 = vmul.f32 %v5085_v26, %v3195_v11  ;;  %vm3308_vm12 = vweird.f32 %v5085_v26 }
 0x6d6   : > { %v3582_v14 = vadd.f32 %v3581_v36, %v7429_v61  ;;  %3804 = vmatmul.bf16.vlgmr.msra.gmra.mxu3 %v3651_v13  ;;  %vm3309_vm14 = vmor %vm3307_vm13, %vm3308_vm12 }
 0x6d7   : > { %v3535_v46 = vpop.f32.mrf.mxu1  ;;  %v3303_v20 = vmul.f32 %v5085_v26, %v3302_v7 }
 0x6d8   : > { %v3622_v15 = vmax.f32 %v3582_v14, 0.0  ;;  %v3536_v0 = vadd.f32 %v3535_v46, %v7422_v35 }
 0x6d9   : > { %v3304_v25 = vmul.f32 0.5, %v3303_v20 }
 0x6da   : > { %v3652_v17 = vpack.c.bf16 %v3622_v15, %v3620_v62  ;;  %v3623_v43 = vmax.f32 %v3536_v0, 0.0 }
 0x6db   : > { %v3305_v37 = vsub.f32 1.5, %v3304_v25 }
 0x6dc   : > { %3853 = vmatmul.bf16.vlgmr.msra.gmra.mxu0 %v3652_v17 }
 0x6dd   : > { %v3584_v63 = vpop.f32.mrf.mxu2  ;;  %v3306_v57 = vmul.f32 %v5085_v26, %v3305_v37 }
 0x6de   : > { %v3585_v31 = vadd.f32 %v3584_v63, %v7429_v61 }
 0x6df   : > { %v3537_v45 = vpop.f32.mrf.mxu1  ;;  %v3310_v53 = vsel %vm3309_vm14, %v5085_v26, %v3306_v57 }
 0x6e0   : > { %v3538_v60 = vadd.f32 %v3537_v45, %v7422_v35  ;;  %v3624_v21 = vmax.f32 %v3585_v31, 0.0  ;;  %v3371_v49 = vmul.f32 %v3310_v53, %v7292_v12 }
 0x6e2   : > { %v3625_v47 = vmax.f32 %v3538_v60, 0.0  ;;  %v3388_v15 = vmul.f32 %v7264_v29, %v3371_v49 }
 0x6e3   : > { %v3160_v18 = vpop.xlane.xlu2 %3159 }
 0x6e4   : > { %v3180_v28 = vmul.f32 %v3160_v18, %v7063_v9  ;;  %v3653_v6 = vpack.c.bf16 %v3625_v47, %v3623_v43  ;;  %v7454_v12 = vadd.f32 %v7278_v50, %v3388_v15 }
 0x6e5   : > { %v3586_v55 = vpop.f32.mrf.mxu2 }
 0x6e6   : > { %v3196_v2 = vadd.f32 1e-05, %v3180_v28  ;;  %v3587_v41 = vadd.f32 %v3586_v55, %v7429_v61  ;;  %3809 = vmatmul.bf16.gmra.mxu3 %v3653_v6 }
 0x6e8   : > { %5086 = vrsqrt.f32 %v3196_v2  ;;  %v3626_v5 = vmax.f32 %v3587_v41, 0.0  ;;  %vm3317_vm0 = vweird.f32 %v3196_v2 }
 0x6ea   : > { %v3654_v39 = vpack.c.bf16 %v3626_v5, %v3624_v21 }
 0x6ec   : > { %v3162_v58 = vpop.xlane.xlu0 %3161  ;;  %3858 = vmatmul.bf16.gmra.mxu0 %v3654_v39 }
 0x6ed   : > { %v3181_v42 = vmul.f32 %v3162_v58, %v7063_v9 }
 0x6ee   : > { %v5087_v32 = vpop.eup %5086 }
 0x6ef   : > { %v3312_v48 = vmul.f32 %v5087_v32, %v3196_v2  ;;  %v3197_v8 = vadd.f32 1e-05, %v3181_v42  ;;  %vm3318_vm15 = vweird.f32 %v5087_v32 }
 0x6f0   : > { %vm3319_vm1 = vmor %vm3317_vm0, %vm3318_vm15 }
 0x6f1   : > { %v3313_v33 = vmul.f32 %v5087_v32, %v3312_v48  ;;  %5088 = vrsqrt.f32 %v3197_v8  ;;  %vm3327_vm3 = vweird.f32 %v3197_v8 }
 0x6f3   : > { %v3314_v52 = vmul.f32 0.5, %v3313_v33 }
 0x6f5   : > { %v3315_v10 = vsub.f32 1.5, %v3314_v52 }
 0x6f7   : > { %v5089_v16 = vpop.eup %5088  ;;  %v3316_v3 = vmul.f32 %v5087_v32, %v3315_v10  ;;  %v3164_v1 = vpop.xlane.xlu1 %3163 }
 0x6f8   : > { %v3322_v13 = vmul.f32 %v5089_v16, %v3197_v8  ;;  %v3182_v36 = vmul.f32 %v3164_v1, %v7063_v9  ;;  %vm3328_vm2 = vweird.f32 %v5089_v16 }
 0x6f9   : > { %v3320_v14 = vsel %vm3319_vm1, %v5087_v32, %v3316_v3  ;;  %vm3329_vm4 = vmor %vm3327_vm3, %vm3328_vm2 }
 0x6fa   : > { %v3372_v11 = vmul.f32 %v3320_v14, %v7314_v23  ;;  %v3323_v46 = vmul.f32 %v5089_v16, %v3322_v13  ;;  %v3198_v62 = vadd.f32 1e-05, %v3182_v36 }
 0x6fc   : > { %v3324_v17 = vmul.f32 0.5, %v3323_v46  ;;  %5090 = vrsqrt.f32 %v3198_v62  ;;  %v3389_v26 = vmul.f32 %v7264_v29, %v3372_v11  ;;  %vm3337_vm6 = vweird.f32 %v3198_v62 }
 0x6fe   : > { %v7457_v63 = vadd.f32 %v7278_v50, %v3389_v26  ;;  %v3325_v7 = vsub.f32 1.5, %v3324_v17 }
 0x700   : > { %v3416_v0 = vpack.c.bf16 %v7457_v63, %v7454_v12  ;;  %v3326_v23 = vmul.f32 %v5089_v16, %v3325_v7 }
 0x702   : > { %v5091_v45 = vpop.eup %5090  ;;  %3554 = vmatmul.bf16.gmra.mxu1 %v3416_v0  ;;  %3603 = vmatmul.bf16.gmra.mxu2 %v3416_v0  ;;  %v3330_v47 = vsel %vm3329_vm4, %v5089_v16, %v3326_v23 }
 0x703   : > { %v3332_v60 = vmul.f32 %v5091_v45, %v3198_v62  ;;  %vm3338_vm5 = vweird.f32 %v5091_v45  ;;  %v3373_v31 = vmul.f32 %v3330_v47, %v7320_v51 }
 0x704   : > { %vm3339_vm7 = vmor %vm3337_vm6, %vm3338_vm5 }
 0x705   : > { %v3333_v20 = vmul.f32 %v5091_v45, %v3332_v60  ;;  %v3540_v43 = vpop.f32.mrf.mxu1  ;;  %v3390_v37 = vmul.f32 %v7264_v29, %v3373_v31 }
 0x706   : > { %v3541_v55 = vadd.f32 %v3540_v43, %v7422_v35 }
 0x707   : > { %v3334_v18 = vmul.f32 0.5, %v3333_v20  ;;  %v7469_v57 = vadd.f32 %v7278_v50, %v3390_v37 }
 0x708   : > { %v3627_v39 = vmax.f32 %v3541_v55, 0.0 }
 0x709   : > { %v3335_v28 = vsub.f32 1.5, %v3334_v18 }
 0x70b   : > { %v3336_v6 = vmul.f32 %v5091_v45, %v3335_v28  ;;  %v3589_v2 = vpop.f32.mrf.mxu2 }
 0x70c   : > { %v3590_v51 = vadd.f32 %v3589_v2, %v7429_v61  ;;  %v3166_v10 = vpop.xlane.xlu2 %3165 }
 0x70d   : > { %v3340_v25 = vsel %vm3339_vm7, %v5091_v45, %v3336_v6  ;;  %v3542_v41 = vpop.f32.mrf.mxu1  ;;  %v3183_v16 = vmul.f32 %v3166_v10, %v7063_v9 }
 0x70e   : > { %v3374_v21 = vmul.f32 %v3340_v25, %v7328_v4  ;;  %v3543_v5 = vadd.f32 %v3542_v41, %v7422_v35  ;;  %v3628_v53 = vmax.f32 %v3590_v51, 0.0 }
 0x70f   : > { %v3199_v3 = vadd.f32 1e-05, %v3183_v16 }
 0x710   : > { %v3629_v58 = vmax.f32 %v3543_v5, 0.0  ;;  %v3391_v42 = vmul.f32 %v7264_v29, %v3374_v21 }
 0x711   : > { %5092 = vrsqrt.f32 %v3199_v3  ;;  %vm3347_vm9 = vweird.f32 %v3199_v3 }
 0x712   : > { %v3655_v32 = vpack.c.bf16 %v3629_v58, %v3627_v39  ;;  %v7472_v48 = vadd.f32 %v7278_v50, %v3391_v42 }
 0x713   : > { %v3591_v8 = vpop.f32.mrf.mxu2 }
 0x714   : > { %v3592_v4 = vadd.f32 %v3591_v8, %v7429_v61  ;;  %3814 = vmatmul.bf16.gmra.mxu3 %v3655_v32  ;;  %v3417_v33 = vpack.c.bf16 %v7472_v48, %v7469_v57 }
 0x716   : > { %v3630_v52 = vmax.f32 %v3592_v4, 0.0  ;;  %3559 = vmatmul.bf16.gmra.mxu1 %v3417_v33  ;;  %3608 = vmatmul.bf16.gmra.mxu2 %v3417_v33 }
 0x717   : > { %v5093_v1 = vpop.eup %5092 }
 0x718   : > { %v3656_v49 = vpack.c.bf16 %v3630_v52, %v3628_v53  ;;  %v3342_v13 = vmul.f32 %v5093_v1, %v3199_v3  ;;  %vm3348_vm8 = vweird.f32 %v5093_v1 }
 0x719   : > { %vm3349_vm10 = vmor %vm3347_vm9, %vm3348_vm8 }
 0x71a   : > { %3863 = vmatmul.bf16.gmra.mxu0 %v3656_v49  ;;  %v3343_v36 = vmul.f32 %v5093_v1, %v3342_v13 }
 0x71c   : > { %v3344_v62 = vmul.f32 0.5, %v3343_v36 }
 0x71e   : > { %v3345_v15 = vsub.f32 1.5, %v3344_v62 }
 0x720   : > { %v3346_v26 = vmul.f32 %v5093_v1, %v3345_v15 }
 0x722   : > { %v3350_v45 = vsel %vm3349_vm10, %v5093_v1, %v3346_v26 }
 0x723   : > { %v3375_v43 = vmul.f32 %v3350_v45, %v7345_v19 }
 0x725   : > { %v3392_v31 = vmul.f32 %v7264_v29, %v3375_v43 }
 0x727   : > { %v7486_v21 = vadd.f32 %v7278_v50, %v3392_v31 }
 0x72f   : > { %v3168_v14 = vpop.xlane.xlu0 %3167 }
 0x730   : > { %v3184_v11 = vmul.f32 %v3168_v14, %v7063_v9 }
 0x732   : > { %v3200_v46 = vadd.f32 1e-05, %v3184_v11 }
 0x734   : > { %5094 = vrsqrt.f32 %v3200_v46  ;;  %vm3357_vm12 = vweird.f32 %v3200_v46 }
 0x73a   : > { %v5095_v17 = vpop.eup %5094 }
 0x73b   : > { %v3352_v7 = vmul.f32 %v5095_v17, %v3200_v46  ;;  %vm3358_vm11 = vweird.f32 %v5095_v17 }
 0x73c   : > { %vm3359_vm13 = vmor %vm3357_vm12, %vm3358_vm11 }
 0x73d   : > { %v3353_v0 = vmul.f32 %v5095_v17, %v3352_v7 }
 0x73f   : > { %v3354_v23 = vmul.f32 0.5, %v3353_v0 }
 0x741   : > { %v3355_v60 = vsub.f32 1.5, %v3354_v23  ;;  %v3545_v20 = vpop.f32.mrf.mxu1 }
 0x742   : > { %v3546_v2 = vadd.f32 %v3545_v20, %v7422_v35 }
 0x743   : > { %v3356_v47 = vmul.f32 %v5095_v17, %v3355_v60 }
 0x744   : > { %v3631_v5 = vmax.f32 %v3546_v2, 0.0 }
 0x745   : > { %v3360_v18 = vsel %vm3359_vm13, %v5095_v17, %v3356_v47 }
 0x746   : > { %v3376_v28 = vmul.f32 %v3360_v18, %v7397_v30 }
 0x747   : > { %v3594_v6 = vpop.f32.mrf.mxu2 }
 0x748   : > { %v3393_v55 = vmul.f32 %v7264_v29, %v3376_v28  ;;  %v3595_v39 = vadd.f32 %v3594_v6, %v7429_v61 }
 0x749   : > { %v3547_v25 = vpop.f32.mrf.mxu1 }
 0x74a   : > { %v3548_v41 = vadd.f32 %v3547_v25, %v7422_v35  ;;  %v7489_v19 = vadd.f32 %v7278_v50, %v3393_v55  ;;  %v3632_v32 = vmax.f32 %v3595_v39, 0.0  ;;  %v7498_v50 = vld [vmem:[%s7840_s9 + $0x4] ss:$0 sm:$0xff] }
 0x74c   : > { %v3633_v37 = vmax.f32 %v3548_v41, 0.0  ;;  %v3418_v30 = vpack.c.bf16 %v7489_v19, %v7486_v21 }
 0x74e   : > { %v3657_v58 = vpack.c.bf16 %v3633_v37, %v3631_v5  ;;  %3564 = vmatmul.bf16.gmra.mxu1 %v3418_v30  ;;  %3613 = vmatmul.bf16.gmra.mxu2 %v3418_v30 }
 0x74f   : > { %v3596_v29 = vpop.f32.mrf.mxu2 }
 0x750   : > { %v3597_v42 = vadd.f32 %v3596_v29, %v7429_v61  ;;  %3819 = vmatmul.bf16.gmra.mxu3 %v3657_v58 }
 0x751   : > { %v3550_v51 = vpop.f32.mrf.mxu1 }
 0x752   : > { %v3634_v8 = vmax.f32 %v3597_v42, 0.0  ;;  %v3551_v53 = vadd.f32 %v3550_v51, %v7422_v35 }
 0x754   : > { %v3658_v4 = vpack.c.bf16 %v3634_v8, %v3632_v32  ;;  %v3635_v1 = vmax.f32 %v3551_v53, 0.0 }
 0x756   : > { %3868 = vmatmul.bf16.gmra.mxu0 %v3658_v4 }
 0x757   : > { %v3599_v33 = vpop.f32.mrf.mxu2 }
 0x758   : > { %v3600_v14 = vadd.f32 %v3599_v33, %v7429_v61 }
 0x759   : > { %v3552_v52 = vpop.f32.mrf.mxu1  ;;  %v3805_v10 = vpop.f32.mrf.mxu3 }
 0x75a   : > { %v3553_v49 = vadd.f32 %v3552_v52, %v7422_v35  ;;  %v3806_v16 = vadd.f32 %v7498_v50, %v3805_v10  ;;  %v3854_v3 = vpop.f32.mrf.mxu0  ;;  %v3636_v26 = vmax.f32 %v3600_v14, 0.0 }
 0x75c   : > { %v3637_v13 = vmax.f32 %v3553_v49, 0.0  ;;  %v3855_v36 = vadd.f32 %v3854_v3, %v3806_v16 }
 0x75e   : > { %v3659_v11 = vpack.c.bf16 %v3637_v13, %v3635_v1  ;;  %v7505_v46 = vadd.f32 %v3855_v36, %v7286_v27 }
 0x75f   : > { %v3601_v62 = vpop.f32.mrf.mxu2 }
 0x760   : > { %v3602_v15 = vadd.f32 %v3601_v62, %v7429_v61  ;;  %3910 = vadd.xlane.f32.xlu1 %v7505_v46  ;;  %3824 = vmatmul.bf16.gmra.mxu3 %v3659_v11 }
 0x761   : > { %v3807_v17 = vpop.f32.mrf.mxu3 }
 0x762   : > { %v3638_v7 = vmax.f32 %v3602_v15, 0.0  ;;  %v3808_v0 = vadd.f32 %v7498_v50, %v3807_v17  ;;  %v3856_v45 = vpop.f32.mrf.mxu0 }
 0x764   : > { %v3660_v23 = vpack.c.bf16 %v3638_v7, %v3636_v26  ;;  %v3857_v60 = vadd.f32 %v3856_v45, %v3808_v0 }
 0x766   : > { %v7511_v20 = vadd.f32 %v3857_v60, %v7289_v54  ;;  %3873 = vmatmul.bf16.gmra.mxu0 %v3660_v23 }
 0x768   : > { %3912 = vadd.xlane.f32.xlu2 %v7511_v20 }
 0x769   : > { %v3810_v27 = vpop.f32.mrf.mxu3 }
 0x76a   : > { %v3811_v43 = vadd.f32 %v7498_v50, %v3810_v27  ;;  %v3859_v47 = vpop.f32.mrf.mxu0 }
 0x76c   : > { %v3860_v18 = vadd.f32 %v3859_v47, %v3811_v43 }
 0x76e   : > { %v7516_v28 = vadd.f32 %v3860_v18, %v7303_v34 }
 0x770   : > { %3914 = vadd.xlane.f32.xlu0 %v7516_v28 }
 0x771   : > { %v3812_v31 = vpop.f32.mrf.mxu3 }
 0x772   : > { %v3813_v6 = vadd.f32 %v7498_v50, %v3812_v31  ;;  %v3861_v2 = vpop.f32.mrf.mxu0 }
 0x774   : > { %v3862_v55 = vadd.f32 %v3861_v2, %v3813_v6 }
 0x776   : > { %v7521_v54 = vadd.f32 %v3862_v55, %v7306_v22 }
 0x778   : > { %3916 = vadd.xlane.f32.xlu1 %v7521_v54 }
 0x77f   : > { %v3555_v25 = vpop.f32.mrf.mxu1 }
 0x780   : > { %v3556_v5 = vadd.f32 %v3555_v25, %v7422_v35 }
 0x782   : > { %v3639_v30 = vmax.f32 %v3556_v5, 0.0 }
 0x785   : > { %v3604_v41 = vpop.f32.mrf.mxu2 }
 0x786   : > { %v3605_v58 = vadd.f32 %v3604_v41, %v7429_v61 }
 0x787   : > { %v3557_v37 = vpop.f32.mrf.mxu1 }
 0x788   : > { %v3558_v34 = vadd.f32 %v3557_v37, %v7422_v35  ;;  %v3640_v22 = vmax.f32 %v3605_v58, 0.0 }
 0x78a   : > { %v3641_v39 = vmax.f32 %v3558_v34, 0.0 }
 0x78c   : > { %v3661_v29 = vpack.c.bf16 %v3641_v39, %v3639_v30 }
 0x78d   : > { %v3606_v42 = vpop.f32.mrf.mxu2 }
 0x78e   : > { %v3607_v51 = vadd.f32 %v3606_v42, %v7429_v61  ;;  %3829 = vmatmul.bf16.gmra.mxu3 %v3661_v29 }
 0x790   : > { %v3642_v32 = vmax.f32 %v3607_v51, 0.0 }
 0x792   : > { %v3662_v8 = vpack.c.bf16 %v3642_v32, %v3640_v22 }
 0x793   : > { %v3560_v4 = vpop.f32.mrf.mxu1 }
 0x794   : > { %3878 = vmatmul.bf16.gmra.mxu0 %v3662_v8  ;;  %v3561_v49 = vadd.f32 %v3560_v4, %v7422_v35 }
 0x796   : > { %v3643_v36 = vmax.f32 %v3561_v49, 0.0 }
 0x797   : > { %v3815_v33 = vpop.f32.mrf.mxu3  ;;  %v3864_v53 = vpop.f32.mrf.mxu0 }
 0x798   : > { %v3816_v52 = vadd.f32 %v7498_v50, %v3815_v33 }
 0x799   : > { %v3609_v10 = vpop.f32.mrf.mxu2 }
 0x79a   : > { %v3865_v16 = vadd.f32 %v3864_v53, %v3816_v52  ;;  %v3610_v62 = vadd.f32 %v3609_v10, %v7429_v61 }
 0x79b   : > { %v3562_v3 = vpop.f32.mrf.mxu1 }
 0x79c   : > { %v7531_v1 = vadd.f32 %v3865_v16, %v7335_v40  ;;  %v3563_v13 = vadd.f32 %v3562_v3, %v7422_v35  ;;  %v3644_v40 = vmax.f32 %v3610_v62, 0.0 }
 0x79e   : > { %v3645_v14 = vmax.f32 %v3563_v13, 0.0  ;;  %3918 = vadd.xlane.f32.xlu2 %v7531_v1 }
 0x79f   : > { %v3817_v11 = vpop.f32.mrf.mxu3  ;;  %v3866_v26 = vpop.f32.mrf.mxu0 }
 0x7a0   : > { %v3663_v15 = vpack.c.bf16 %v3645_v14, %v3643_v36  ;;  %v3818_v17 = vadd.f32 %v7498_v50, %v3817_v11 }
 0x7a1   : > { %v3611_v7 = vpop.f32.mrf.mxu2 }
 0x7a2   : > { %v3867_v0 = vadd.f32 %v3866_v26, %v3818_v17  ;;  %v3612_v45 = vadd.f32 %v3611_v7, %v7429_v61  ;;  %3834 = vmatmul.bf16.gmra.mxu3 %v3663_v15 }
 0x7a4   : > { %v7539_v23 = vadd.f32 %v3867_v0, %v7338_v24  ;;  %v3646_v60 = vmax.f32 %v3612_v45, 0.0 }
 0x7a6   : > { %v3664_v27 = vpack.c.bf16 %v3646_v60, %v3644_v40  ;;  %3920 = vadd.xlane.f32.xlu0 %v7539_v23 }
 0x7a8   : > { %3883 = vmatmul.bf16.gmra.mxu0 %v3664_v27 }
 0x7cb   : > { %v3565_v43 = vpop.f32.mrf.mxu1 }
 0x7cc   : > { %v3566_v18 = vadd.f32 %v3565_v43, %v7422_v35 }
 0x7ce   : > { %v3647_v41 = vmax.f32 %v3566_v18, 0.0 }
 0x7d1   : > { %v3614_v47 = vpop.f32.mrf.mxu2 }
 0x7d2   : > { %v3615_v37 = vadd.f32 %v3614_v47, %v7429_v61 }
 0x7d3   : > { %v3567_v31 = vpop.f32.mrf.mxu1  ;;  %v3820_v6 = vpop.f32.mrf.mxu3 }
 0x7d4   : > { %v3568_v2 = vadd.f32 %v3567_v31, %v7422_v35  ;;  %v3821_v55 = vadd.f32 %v7498_v50, %v3820_v6  ;;  %v3869_v25 = vpop.f32.mrf.mxu0  ;;  %v3648_v35 = vmax.f32 %v3615_v37, 0.0  ;;  %v3911_v43 = vpop.xlane.xlu1 %3910 }
 0x7d6   : > { %v3649_v5 = vmax.f32 %v3568_v2, 0.0  ;;  %v3870_v24 = vadd.f32 %v3869_v25, %v3821_v55 }
 0x7d8   : > { %v3665_v34 = vpack.c.bf16 %v3649_v5, %v3647_v41  ;;  %v7547_v30 = vadd.f32 %v3870_v24, %v7411_v38 }
 0x7d9   : > { %v3616_v39 = vpop.f32.mrf.mxu2 }
 0x7da   : > { %v3617_v58 = vadd.f32 %v3616_v39, %v7429_v61  ;;  %3922 = vadd.xlane.f32.xlu1 %v7547_v30  ;;  %3839 = vmatmul.bf16.gmra.mxu3 %v3665_v34 }
 0x7db   : > { %v3822_v29 = vpop.f32.mrf.mxu3  ;;  %v3913_v39 = vpop.xlane.xlu2 %3912 }
 0x7dc   : > { %v3650_v42 = vmax.f32 %v3617_v58, 0.0  ;;  %v3823_v51 = vadd.f32 %v7498_v50, %v3822_v29  ;;  %v3871_v22 = vpop.f32.mrf.mxu0 }
 0x7de   : > { %v3666_v32 = vpack.c.bf16 %v3650_v42, %v3648_v35  ;;  %v3872_v8 = vadd.f32 %v3871_v22, %v3823_v51  ;;  %v3943_v35 = vmul.f32 %v3913_v39, %v7063_v9 }
 0x7e0   : > { %v7553_v4 = vadd.f32 %v3872_v8, %v7414_v44  ;;  %3888 = vmatmul.bf16.vlgmr.msra.gmra.mxu2 %v3666_v32  ;;  %v7611_v32 = vsub.f32 %v7511_v20, %v3943_v35 }
 0x7e2   : > { %3924 = vadd.xlane.f32.xlu2 %v7553_v4  ;;  %v3975_v20 = vmul.f32 %v7611_v32, %v7611_v32 }
 0x7e3   : > { %v3825_v38 = vpop.f32.mrf.mxu3  ;;  %v3915_v8 = vpop.xlane.xlu0 %3914 }
 0x7e4   : > { %v3826_v61 = vadd.f32 %v7498_v50, %v3825_v38  ;;  %v3874_v33 = vpop.f32.mrf.mxu0 }
 0x7e6   : > { %v3875_v53 = vadd.f32 %v3874_v33, %v3826_v61 }
 0x7e8   : > { %v7558_v52 = vadd.f32 %v3875_v53, %v7433_v59 }
 0x7ea   : > { %3926 = vadd.xlane.f32.xlu0 %v7558_v52 }
 0x7eb   : > { %v3827_v10 = vpop.f32.mrf.mxu3 }
 0x7ec   : > { %v3828_v49 = vadd.f32 %v7498_v50, %v3827_v10  ;;  %v3876_v16 = vpop.f32.mrf.mxu0  ;;  %v3944_v10 = vmul.f32 %v3915_v8, %v7063_v9 }
 0x7ee   : > { %v3877_v3 = vadd.f32 %v3876_v16, %v3828_v49 }
 0x7f0   : > { %v3903_v44 = vadd.f32 %v3877_v3, %v7436_v56 }
 0x7f2   : > { %3928 = vadd.xlane.f32.xlu1 %v3903_v44 }
 0x811   : > { %v3830_v13 = vpop.f32.mrf.mxu3  ;;  %v3879_v14 = vpop.f32.mrf.mxu0 }
 0x812   : > { %v3831_v36 = vadd.f32 %v7498_v50, %v3830_v13  ;;  %v3919_v33 = vpop.xlane.xlu2 %3918 }
 0x813   : > { %v3946_v49 = vmul.f32 %v3919_v33, %v7063_v9 }
 0x814   : > { %v3880_v11 = vadd.f32 %v3879_v14, %v3831_v36 }
 0x815   : > { %v7628_v3 = vsub.f32 %v7531_v1, %v3946_v49 }
 0x816   : > { %v7565_v62 = vadd.f32 %v3880_v11, %v7454_v12 }
 0x818   : > { %3930 = vadd.xlane.f32.xlu2 %v7565_v62 }
 0x819   : > { %v3832_v59 = vpop.f32.mrf.mxu3  ;;  %v3881_v17 = vpop.f32.mrf.mxu0 }
 0x81a   : > { %v3833_v15 = vadd.f32 %v7498_v50, %v3832_v59 }
 0x81c   : > { %v3882_v26 = vadd.f32 %v3881_v17, %v3833_v15 }
 0x81e   : > { %v7570_v7 = vadd.f32 %v3882_v26, %v7457_v63  ;;  %v3942_v63 = vmul.f32 %v3911_v43, %v7063_v9 }
 0x820   : > { %3932 = vadd.xlane.f32.xlu0 %v7570_v7  ;;  %v7585_v6 = vsub.f32 %v7505_v46, %v3942_v63 }
 0x822   : > { %v3974_v55 = vmul.f32 %v7585_v6, %v7585_v6 }
 0x825   : > { %v3835_v56 = vpop.f32.mrf.mxu3  ;;  %v3884_v0 = vpop.f32.mrf.mxu0 }
 0x826   : > { %v3836_v45 = vadd.f32 %v7498_v50, %v3835_v56 }
 0x828   : > { %v3885_v40 = vadd.f32 %v3884_v0, %v3836_v45 }
 0x82a   : > { %v7575_v12 = vadd.f32 %v3885_v40, %v7469_v57  ;;  %v3917_v57 = vpop.xlane.xlu1 %3916 }
 0x82b   : > { %v3945_v2 = vmul.f32 %v3917_v57, %v7063_v9 }
 0x82c   : > { %3934 = vadd.xlane.f32.xlu1 %v7575_v12 }
 0x82d   : > { %v3837_v60 = vpop.f32.mrf.mxu3  ;;  %v3886_v47 = vpop.f32.mrf.mxu0  ;;  %v7591_v25 = vsub.f32 %v7521_v54, %v3945_v2 }
 0x82e   : > { %v3838_v27 = vadd.f32 %v7498_v50, %v3837_v60 }
 0x82f   : > { %v3977_v41 = vmul.f32 %v7591_v25, %v7591_v25 }
 0x830   : > { %v3887_v18 = vadd.f32 %v3886_v47, %v3838_v27 }
 0x832   : > { %v7581_v31 = vadd.f32 %v3887_v18, %v7472_v48 }
 0x834   : > { %3936 = vadd.xlane.f32.xlu2 %v7581_v31 }
 0x83c   : > { %3990 = vadd.xlane.f32.xlu2 %v3974_v55 }
 0x844   : > { %3996 = vadd.xlane.f32.xlu2 %v3977_v41 }
 0x84d   : > { %v3923_v48 = vpop.xlane.xlu1 %3922 }
 0x84e   : > { %v3948_v5 = vmul.f32 %v3923_v48, %v7063_v9 }
 0x850   : > { %v7597_v46 = vsub.f32 %v7547_v30, %v3948_v5 }
 0x852   : > { %v3980_v24 = vmul.f32 %v7597_v46, %v7597_v46 }
 0x854   : > { %4002 = vadd.xlane.f32.xlu2 %v3980_v24 }
 0x855   : > { %v3925_v13 = vpop.xlane.xlu2 %3924 }
 0x856   : > { %v3949_v14 = vmul.f32 %v3925_v13, %v7063_v9 }
 0x858   : > { %v7640_v1 = vsub.f32 %v7553_v4, %v3949_v14 }
 0x85a   : > { %v3981_v17 = vmul.f32 %v7640_v1, %v7640_v1 }
 0x85d   : > { %v3840_v37 = vpop.f32.mrf.mxu3 }
 0x85e   : > { %v3841_v34 = vadd.f32 %v7498_v50, %v3840_v37 }
 0x863   : > { %v3889_v54 = vpop.f32.mrf.mxu2 }
 0x864   : > { %v3890_v58 = vadd.f32 %v3889_v54, %v3841_v34 }
 0x865   : > { %v3929_v29 = vpop.xlane.xlu1 %3928  ;;  %v3842_v30 = vpop.f32.mrf.mxu3 }
 0x866   : > { %v7604_v42 = vadd.f32 %v3890_v58, %v7486_v21  ;;  %v3951_v51 = vmul.f32 %v3929_v29, %v7063_v9  ;;  %v3843_v38 = vadd.f32 %v7498_v50, %v3842_v30  ;;  %v7625_v50 = vsub.f32 %v7516_v28, %v3944_v10  ;;  %v7681_v30 = vld [vmem:[%s7840_s9 + $0x5] ss:$0 sm:$0xff] }
 0x868   : > { %v7607_v22 = vsub.f32 %v3903_v44, %v3951_v51  ;;  %3938 = vadd.xlane.f32.xlu0 %v7604_v42  ;;  %v3921_v44 = vpop.xlane.xlu0 %3920  ;;  %v3976_v11 = vmul.f32 %v7625_v50, %v7625_v50 }
 0x869   : > { %v3947_v36 = vmul.f32 %v3921_v44, %v7063_v9 }
 0x86a   : > { %v3983_v61 = vmul.f32 %v7607_v22, %v7607_v22 }
 0x86b   : > { %v3891_v53 = vpop.f32.mrf.mxu2  ;;  %v7637_v28 = vsub.f32 %v7539_v23, %v3947_v36 }
 0x86c   : > { %v3892_v21 = vadd.f32 %v3891_v53, %v3843_v38  ;;  %4008 = vadd.xlane.f32.xlu2 %v3983_v61  ;;  %v7686_v61 = vld [vmem:[%s7840_s9 + $0x6] ss:$0 sm:$0xff] }
 0x86d   : > { %v3979_v26 = vmul.f32 %v7637_v28, %v7637_v28 }
 0x86e   : > { %v7619_v16 = vadd.f32 %v3892_v21, %v7489_v19  ;;  %v3978_v19 = vmul.f32 %v7628_v3, %v7628_v3 }
 0x870   : > { %3992 = vadd.xlane.f32.xlu0 %v3975_v20  ;;  %3940 = vadd.xlane.f32.xlu1 %v7619_v16  ;;  %v3927_v59 = vpop.xlane.xlu0 %3926 }
 0x871   : > { %v3950_v15 = vmul.f32 %v3927_v59, %v7063_v9 }
 0x873   : > { %v7648_v56 = vsub.f32 %v7558_v52, %v3950_v15 }
 0x875   : > { %v3982_v23 = vmul.f32 %v7648_v56, %v7648_v56 }
 0x878   : > { %3998 = vadd.xlane.f32.xlu0 %v3978_v19  ;;  %3994 = vadd.xlane.f32.xlu1 %v3976_v11 }
 0x880   : > { %4004 = vadd.xlane.f32.xlu0 %v3981_v17  ;;  %4000 = vadd.xlane.f32.xlu1 %v3979_v26 }
 0x888   : > { %4006 = vadd.xlane.f32.xlu1 %v3982_v23 }
 0x88b   : > { %v3931_v4 = vpop.xlane.xlu2 %3930 }
 0x88c   : > { %v3952_v0 = vmul.f32 %v3931_v4, %v7063_v9 }
 0x88e   : > { %v7654_v45 = vsub.f32 %v7565_v62, %v3952_v0 }
 0x890   : > { %v3984_v40 = vmul.f32 %v7654_v45, %v7654_v45 }
 0x892   : > { %4010 = vadd.xlane.f32.xlu0 %v3984_v40 }
 0x893   : > { %v3933_v60 = vpop.xlane.xlu0 %3932 }
 0x894   : > { %v3953_v27 = vmul.f32 %v3933_v60, %v7063_v9 }
 0x896   : > { %v7660_v52 = vsub.f32 %v7570_v7, %v3953_v27 }
 0x898   : > { %v3985_v43 = vmul.f32 %v7660_v52, %v7660_v52 }
 0x89a   : > { %4012 = vadd.xlane.f32.xlu1 %v3985_v43 }
 0x89f   : > { %v3935_v47 = vpop.xlane.xlu1 %3934 }
 0x8a0   : > { %v3954_v18 = vmul.f32 %v3935_v47, %v7063_v9 }
 0x8a2   : > { %v7666_v62 = vsub.f32 %v7575_v12, %v3954_v18 }
 0x8a4   : > { %v3986_v63 = vmul.f32 %v7666_v62, %v7666_v62 }
 0x8a6   : > { %4014 = vadd.xlane.f32.xlu2 %v3986_v63 }
 0x8a7   : > { %v3937_v57 = vpop.xlane.xlu2 %3936 }
 0x8a8   : > { %v3955_v2 = vmul.f32 %v3937_v57, %v7063_v9 }
 0x8aa   : > { %v7672_v7 = vsub.f32 %v7581_v31, %v3955_v2 }
 0x8ac   : > { %v3987_v55 = vmul.f32 %v7672_v7, %v7672_v7 }
 0x8ae   : > { %4016 = vadd.xlane.f32.xlu0 %v3987_v55 }
 0x8af   : > { %v3991_v41 = vpop.xlane.xlu2 %3990 }
 0x8b0   : > { %v4022_v48 = vmul.f32 %v3991_v41, %v7063_v9 }
 0x8b2   : > { %v4038_v5 = vadd.f32 1e-05, %v4022_v48 }
 0x8b4   : > { %5096 = vrsqrt.f32 %v4038_v5  ;;  %vm4060_vm15 = vweird.f32 %v4038_v5 }
 0x8b7   : > { %v3997_v12 = vpop.xlane.xlu2 %3996 }
 0x8b8   : > { %v4025_v24 = vmul.f32 %v3997_v12, %v7063_v9 }
 0x8ba   : > { %v5097_v37 = vpop.eup %5096  ;;  %v4041_v34 = vadd.f32 1e-05, %v4025_v24 }
 0x8bb   : > { %v4055_v39 = vmul.f32 %v5097_v37, %v4038_v5  ;;  %vm4061_vm14 = vweird.f32 %v5097_v37 }
 0x8bc   : > { %5098 = vrsqrt.f32 %v4041_v34  ;;  %vm4062_vm0 = vmor %vm4060_vm15, %vm4061_vm14  ;;  %vm4090_vm2 = vweird.f32 %v4041_v34 }
 0x8bd   : > { %v4056_v54 = vmul.f32 %v5097_v37, %v4055_v39 }
 0x8bf   : > { %v4057_v58 = vmul.f32 0.5, %v4056_v54 }
 0x8c1   : > { %v4058_v31 = vsub.f32 1.5, %v4057_v58 }
 0x8c2   : > { %v5099_v29 = vpop.eup %5098 }
 0x8c3   : > { %v4059_v35 = vmul.f32 %v5097_v37, %v4058_v31  ;;  %v4085_v51 = vmul.f32 %v5099_v29, %v4041_v34  ;;  %vm4091_vm1 = vweird.f32 %v5099_v29 }
 0x8c4   : > { %vm4092_vm3 = vmor %vm4090_vm2, %vm4091_vm1 }
 0x8c5   : > { %v4063_v8 = vsel %vm4062_vm0, %v5097_v37, %v4059_v35  ;;  %v4086_v38 = vmul.f32 %v5099_v29, %v4085_v51 }
 0x8c6   : > { %v4214_v33 = vmul.f32 %v4063_v8, %v7585_v6 }
 0x8c7   : > { %v4087_v53 = vmul.f32 0.5, %v4086_v38  ;;  %v4003_v10 = vpop.xlane.xlu2 %4002 }
 0x8c8   : > { %v4231_v21 = vmul.f32 %v7681_v30, %v4214_v33  ;;  %v4028_v20 = vmul.f32 %v4003_v10, %v7063_v9 }
 0x8c9   : > { %v4088_v49 = vsub.f32 1.5, %v4087_v53 }
 0x8ca   : > { %v4248_v44 = vadd.f32 %v7686_v61, %v4231_v21  ;;  %v4044_v36 = vadd.f32 1e-05, %v4028_v20 }
 0x8cb   : > { %v4089_v13 = vmul.f32 %v5099_v29, %v4088_v49 }
 0x8cc   : > { %4264 = vst [vmem:[%s7693_s27] sm:$0xff] %v4248_v44  ;;  %5100 = vrsqrt.f32 %v4044_v36  ;;  %vm4120_vm5 = vweird.f32 %v4044_v36 }
 0x8cd   : > { %v4093_v6 = vsel %vm4092_vm3, %v5099_v29, %v4089_v13 }
 0x8ce   : > { %v4217_v14 = vmul.f32 %v4093_v6, %v7591_v25 }
 0x8d0   : > { %v4234_v19 = vmul.f32 %v7681_v30, %v4217_v14 }
 0x8d2   : > { %v4251_v11 = vadd.f32 %v7686_v61, %v4234_v19  ;;  %v5101_v59 = vpop.eup %5100 }
 0x8d3   : > { %v4115_v15 = vmul.f32 %v5101_v59, %v4044_v36  ;;  %vm4121_vm4 = vweird.f32 %v5101_v59 }
 0x8d4   : > { %4267 = vst [vmem:[%s7693_s27 + $0x18] sm:$0xff] %v4251_v11  ;;  %vm4122_vm6 = vmor %vm4120_vm5, %vm4121_vm4 }
 0x8d5   : > { %v4116_v17 = vmul.f32 %v5101_v59, %v4115_v15 }
 0x8d7   : > { %v4117_v26 = vmul.f32 0.5, %v4116_v17 }
 0x8d9   : > { %v4118_v23 = vsub.f32 1.5, %v4117_v26 }
 0x8db   : > { %v4119_v4 = vmul.f32 %v5101_v59, %v4118_v23  ;;  %v3939_v0 = vpop.xlane.xlu0 %3938 }
 0x8dc   : > { %v3956_v40 = vmul.f32 %v3939_v0, %v7063_v9 }
 0x8dd   : > { %v4123_v60 = vsel %vm4122_vm6, %v5101_v59, %v4119_v4 }
 0x8de   : > { %v4220_v25 = vmul.f32 %v4123_v60, %v7597_v46  ;;  %v7703_v27 = vsub.f32 %v7604_v42, %v3956_v40 }
 0x8df   : > { %v4009_v43 = vpop.xlane.xlu2 %4008 }
 0x8e0   : > { %v4237_v47 = vmul.f32 %v7681_v30, %v4220_v25  ;;  %v4031_v18 = vmul.f32 %v4009_v43, %v7063_v9  ;;  %v3988_v63 = vmul.f32 %v7703_v27, %v7703_v27 }
 0x8e2   : > { %v4254_v57 = vadd.f32 %v7686_v61, %v4237_v47  ;;  %v4047_v2 = vadd.f32 1e-05, %v4031_v18  ;;  %4018 = vadd.xlane.f32.xlu1 %v3988_v63 }
 0x8e3   : > { %v3993_v55 = vpop.xlane.xlu0 %3992  ;;  %v3941_v41 = vpop.xlane.xlu1 %3940 }
 0x8e4   : > { %4270 = vst [vmem:[%s7693_s27 + $0x30] sm:$0xff] %v4254_v57  ;;  %5102 = vrsqrt.f32 %v4047_v2  ;;  %v4023_v46 = vmul.f32 %v3993_v55, %v7063_v9  ;;  %v3957_v42 = vmul.f32 %v3941_v41, %v7063_v9  ;;  %vm4150_vm8 = vweird.f32 %v4047_v2 }
 0x8e6   : > { %v4039_v48 = vadd.f32 1e-05, %v4023_v46  ;;  %v7714_v5 = vsub.f32 %v7619_v16, %v3957_v42 }
 0x8e8   : > { %5104 = vrsqrt.f32 %v4039_v48  ;;  %v3989_v12 = vmul.f32 %v7714_v5, %v7714_v5  ;;  %vm4070_vm11 = vweird.f32 %v4039_v48 }
 0x8ea   : > { %v5103_v24 = vpop.eup %5102  ;;  %4020 = vadd.xlane.f32.xlu2 %v3989_v12 }
 0x8eb   : > { %v4145_v37 = vmul.f32 %v5103_v24, %v4047_v2  ;;  %v3999_v34 = vpop.xlane.xlu0 %3998  ;;  %v3995_v39 = vpop.xlane.xlu1 %3994  ;;  %vm4151_vm7 = vweird.f32 %v5103_v24 }
 0x8ec   : > { %v4026_v54 = vmul.f32 %v3999_v34, %v7063_v9  ;;  %v4024_v58 = vmul.f32 %v3995_v39, %v7063_v9  ;;  %vm4152_vm9 = vmor %vm4150_vm8, %vm4151_vm7 }
 0x8ed   : > { %v4146_v31 = vmul.f32 %v5103_v24, %v4145_v37 }
 0x8ee   : > { %v5105_v29 = vpop.eup %5104  ;;  %v4042_v35 = vadd.f32 1e-05, %v4026_v54  ;;  %v4040_v51 = vadd.f32 1e-05, %v4024_v58 }
 0x8ef   : > { %v4147_v8 = vmul.f32 0.5, %v4146_v31  ;;  %v4065_v16 = vmul.f32 %v5105_v29, %v4039_v48  ;;  %vm4071_vm10 = vweird.f32 %v5105_v29 }
 0x8f0   : > { %5106 = vrsqrt.f32 %v4042_v35  ;;  %vm4072_vm12 = vmor %vm4070_vm11, %vm4071_vm10  ;;  %vm4100_vm15 = vweird.f32 %v4042_v35  ;;  %vm4080_vm1 = vweird.f32 %v4040_v51 }
 0x8f1   : > { %v4148_v38 = vsub.f32 1.5, %v4147_v8  ;;  %v4066_v33 = vmul.f32 %v5105_v29, %v4065_v16  ;;  %5108 = vrsqrt.f32 %v4040_v51 }
 0x8f3   : > { %v4149_v53 = vmul.f32 %v5103_v24, %v4148_v38  ;;  %v4067_v21 = vmul.f32 0.5, %v4066_v33  ;;  %v4005_v10 = vpop.xlane.xlu0 %4004  ;;  %v4001_v49 = vpop.xlane.xlu1 %4000 }
 0x8f4   : > { %v4029_v20 = vmul.f32 %v4005_v10, %v7063_v9  ;;  %v4027_v44 = vmul.f32 %v4001_v49, %v7063_v9 }
 0x8f5   : > { %v4153_v13 = vsel %vm4152_vm9, %v5103_v24, %v4149_v53  ;;  %v4068_v36 = vsub.f32 1.5, %v4067_v21 }
 0x8f6   : > { %v5107_v6 = vpop.eup %5106  ;;  %v4223_v14 = vmul.f32 %v4153_v13, %v7607_v22  ;;  %v7723_v19 = vadd.f32 1e-05, %v4029_v20  ;;  %v7725_v11 = vadd.f32 1e-05, %v4027_v44 }
 0x8f7   : > { %v5109_v59 = vpop.eup %5108  ;;  %v4069_v15 = vmul.f32 %v5105_v29, %v4068_v36  ;;  %v4095_v17 = vmul.f32 %v5107_v6, %v4042_v35  ;;  %vm4101_vm13 = vweird.f32 %v5107_v6 }
 0x8f8   : > { %v4240_v26 = vmul.f32 %v7681_v30, %v4223_v14  ;;  %v4075_v23 = vmul.f32 %v5109_v59, %v4040_v51  ;;  %5110 = vrsqrt.f32 %v7723_v19  ;;  %vm4081_vm14 = vweird.f32 %v5109_v59  ;;  %vm4102_vm0 = vmor %vm4100_vm15, %vm4101_vm13 }
 0x8f9   : > { %v4073_v4 = vsel %vm4072_vm12, %v5105_v29, %v4069_v15  ;;  %v4096_v0 = vmul.f32 %v5107_v6, %v4095_v17  ;;  %5112 = vrsqrt.f32 %v7725_v11  ;;  %vm4082_vm2 = vmor %vm4080_vm1, %vm4081_vm14  ;;  %vm4130_vm5 = vweird.f32 %v7723_v19 }
 0x8fa   : > { %v4257_v22 = vadd.f32 %v7686_v61, %v4240_v26  ;;  %v4215_v40 = vmul.f32 %v4073_v4, %v7611_v32  ;;  %v4076_v60 = vmul.f32 %v5109_v59, %v4075_v23  ;;  %vm4110_vm7 = vweird.f32 %v7725_v11 }
 0x8fb   : > { %v4097_v25 = vmul.f32 0.5, %v4096_v0  ;;  %v4007_v43 = vpop.xlane.xlu1 %4006 }
 0x8fc   : > { %4273 = vst [vmem:[%s7693_s27 + $0x48] sm:$0xff] %v4257_v22  ;;  %v4232_v47 = vmul.f32 %v7681_v30, %v4215_v40  ;;  %v4077_v18 = vmul.f32 0.5, %v4076_v60  ;;  %v4030_v63 = vmul.f32 %v4007_v43, %v7063_v9 }
 0x8fd   : > { %v4098_v57 = vsub.f32 1.5, %v4097_v25 }
 0x8fe   : > { %v5111_v2 = vpop.eup %5110  ;;  %v4249_v55 = vadd.f32 %v7686_v61, %v4232_v47  ;;  %v4078_v41 = vsub.f32 1.5, %v4077_v18  ;;  %v4046_v46 = vadd.f32 1e-05, %v4030_v63 }
 0x8ff   : > { %v5113_v42 = vpop.eup %5112  ;;  %v4099_v32 = vmul.f32 %v5107_v6, %v4098_v57  ;;  %v4125_v48 = vmul.f32 %v5111_v2, %v7723_v19  ;;  %vm4131_vm3 = vweird.f32 %v5111_v2 }
 0x900   : > { %4265 = vst [vmem:[%s7693_s27 + $0x8] sm:$0xff] %v4249_v55  ;;  %v4079_v12 = vmul.f32 %v5109_v59, %v4078_v41  ;;  %v4105_v24 = vmul.f32 %v5113_v42, %v7725_v11  ;;  %5114 = vrsqrt.f32 %v4046_v46  ;;  %vm4111_vm4 = vweird.f32 %v5113_v42  ;;  %vm4132_vm6 = vmor %vm4130_vm5, %vm4131_vm3 }
 0x901   : > { %v4103_v37 = vsel %vm4102_vm0, %v5107_v6, %v4099_v32  ;;  %v4126_v34 = vmul.f32 %v5111_v2, %v4125_v48  ;;  %vm4112_vm8 = vmor %vm4110_vm7, %vm4111_vm4  ;;  %vm4140_vm10 = vweird.f32 %v4046_v46 }
 0x902   : > { %v4218_v39 = vmul.f32 %v4103_v37, %v7628_v3  ;;  %v4083_v54 = vsel %vm4082_vm2, %v5109_v59, %v4079_v12  ;;  %v4106_v58 = vmul.f32 %v5113_v42, %v4105_v24 }
 0x903   : > { %v4216_v31 = vmul.f32 %v4083_v54, %v7625_v50  ;;  %v4127_v29 = vmul.f32 0.5, %v4126_v34 }
 0x904   : > { %v4235_v35 = vmul.f32 %v7681_v30, %v4218_v39  ;;  %v4107_v8 = vmul.f32 0.5, %v4106_v58 }
 0x905   : > { %v4011_v16 = vpop.xlane.xlu0 %4010  ;;  %v4233_v51 = vmul.f32 %v7681_v30, %v4216_v31  ;;  %v4128_v38 = vsub.f32 1.5, %v4127_v29 }
 0x906   : > { %v4032_v33 = vmul.f32 %v4011_v16, %v7063_v9  ;;  %v5115_v53 = vpop.eup %5114  ;;  %v4252_v3 = vadd.f32 %v7686_v61, %v4235_v35  ;;  %v4108_v21 = vsub.f32 1.5, %v4107_v8 }
 0x907   : > { %v4250_v50 = vadd.f32 %v7686_v61, %v4233_v51  ;;  %v4129_v10 = vmul.f32 %v5111_v2, %v4128_v38  ;;  %v4135_v49 = vmul.f32 %v5115_v53, %v4046_v46  ;;  %vm4141_vm9 = vweird.f32 %v5115_v53 }
 0x908   : > { %4268 = vst [vmem:[%s7693_s27 + $0x20] sm:$0xff] %v4252_v3  ;;  %v4109_v20 = vmul.f32 %v5113_v42, %v4108_v21  ;;  %v4048_v44 = vadd.f32 1e-05, %v4032_v33  ;;  %vm4142_vm11 = vmor %vm4140_vm10, %vm4141_vm9 }
 0x909   : > { %4266 = vst [vmem:[%s7693_s27 + $0x10] sm:$0xff] %v4250_v50  ;;  %v4133_v13 = vsel %vm4132_vm6, %v5111_v2, %v4129_v10  ;;  %v4136_v36 = vmul.f32 %v5115_v53, %v4135_v49 }
 0x90a   : > { %v4221_v6 = vmul.f32 %v4133_v13, %v7640_v1  ;;  %v4113_v14 = vsel %vm4112_vm8, %v5113_v42, %v4109_v20  ;;  %5116 = vrsqrt.f32 %v4048_v44  ;;  %vm4160_vm13 = vweird.f32 %v4048_v44 }
 0x90b   : > { %v4219_v59 = vmul.f32 %v4113_v14, %v7637_v28  ;;  %v4137_v19 = vmul.f32 0.5, %v4136_v36 }
 0x90c   : > { %v4238_v15 = vmul.f32 %v7681_v30, %v4221_v6 }
 0x90d   : > { %v4013_v17 = vpop.xlane.xlu1 %4012  ;;  %v4236_v26 = vmul.f32 %v7681_v30, %v4219_v59  ;;  %v4138_v11 = vsub.f32 1.5, %v4137_v19 }
 0x90e   : > { %v4033_v23 = vmul.f32 %v4013_v17, %v7063_v9  ;;  %v4255_v4 = vadd.f32 %v7686_v61, %v4238_v15 }
 0x90f   : > { %v4253_v1 = vadd.f32 %v7686_v61, %v4236_v26  ;;  %v4139_v0 = vmul.f32 %v5115_v53, %v4138_v11 }
 0x910   : > { %v4049_v22 = vadd.f32 1e-05, %v4033_v23  ;;  %v5117_v28 = vpop.eup %5116  ;;  %4271 = vst [vmem:[%s7693_s27 + $0x38] sm:$0xff] %v4255_v4 }
 0x911   : > { %4269 = vst [vmem:[%s7693_s27 + $0x28] sm:$0xff] %v4253_v1  ;;  %v4143_v40 = vsel %vm4142_vm11, %v5115_v53, %v4139_v0  ;;  %v4155_v60 = vmul.f32 %v5117_v28, %v4048_v44  ;;  %vm4161_vm12 = vweird.f32 %v5117_v28 }
 0x912   : > { %5118 = vrsqrt.f32 %v4049_v22  ;;  %v4222_v25 = vmul.f32 %v4143_v40, %v7648_v56  ;;  %vm4162_vm14 = vmor %vm4160_vm13, %vm4161_vm12  ;;  %vm4170_vm0 = vweird.f32 %v4049_v22 }
 0x913   : > { %v4156_v43 = vmul.f32 %v5117_v28, %v4155_v60 }
 0x914   : > { %v4239_v47 = vmul.f32 %v7681_v30, %v4222_v25 }
 0x915   : > { %v4157_v18 = vmul.f32 0.5, %v4156_v43 }
 0x916   : > { %v4256_v63 = vadd.f32 %v7686_v61, %v4239_v47 }
 0x917   : > { %v4158_v2 = vsub.f32 1.5, %v4157_v18 }
 0x918   : > { %v5119_v57 = vpop.eup %5118  ;;  %4272 = vst [vmem:[%s7693_s27 + $0x40] sm:$0xff] %v4256_v63 }
 0x919   : > { %v4165_v55 = vmul.f32 %v5119_v57, %v4049_v22  ;;  %v4015_v41 = vpop.xlane.xlu2 %4014  ;;  %v4159_v46 = vmul.f32 %v5117_v28, %v4158_v2  ;;  %vm4171_vm15 = vweird.f32 %v5119_v57 }
 0x91a   : > { %v4034_v42 = vmul.f32 %v4015_v41, %v7063_v9  ;;  %vm4172_vm1 = vmor %vm4170_vm0, %vm4171_vm15 }
 0x91b   : > { %v4166_v32 = vmul.f32 %v5119_v57, %v4165_v55  ;;  %v4163_v56 = vsel %vm4162_vm14, %v5117_v28, %v4159_v46 }
 0x91c   : > { %v4050_v48 = vadd.f32 1e-05, %v4034_v42  ;;  %v4224_v12 = vmul.f32 %v4163_v56, %v7654_v45 }
 0x91d   : > { %v4167_v24 = vmul.f32 0.5, %v4166_v32 }
 0x91e   : > { %5120 = vrsqrt.f32 %v4050_v48  ;;  %v4241_v37 = vmul.f32 %v7681_v30, %v4224_v12  ;;  %vm4180_vm3 = vweird.f32 %v4050_v48 }
 0x91f   : > { %v4168_v34 = vsub.f32 1.5, %v4167_v24 }
 0x920   : > { %v4258_v39 = vadd.f32 %v7686_v61, %v4241_v37 }
 0x921   : > { %v4169_v54 = vmul.f32 %v5119_v57, %v4168_v34  ;;  %v4017_v58 = vpop.xlane.xlu0 %4016 }
 0x922   : > { %v4035_v31 = vmul.f32 %v4017_v58, %v7063_v9  ;;  %4274 = vst [vmem:[%s7693_s27 + $0x50] sm:$0xff] %v4258_v39 }
 0x923   : > { %v4173_v29 = vsel %vm4172_vm1, %v5119_v57, %v4169_v54 }
 0x924   : > { %v5121_v35 = vpop.eup %5120  ;;  %v4225_v45 = vmul.f32 %v4173_v29, %v7660_v52  ;;  %v4051_v8 = vadd.f32 1e-05, %v4035_v31 }
 0x925   : > { %v4175_v16 = vmul.f32 %v5121_v35, %v4050_v48  ;;  %vm4181_vm2 = vweird.f32 %v5121_v35 }
 0x926   : > { %v4242_v51 = vmul.f32 %v7681_v30, %v4225_v45  ;;  %5122 = vrsqrt.f32 %v4051_v8  ;;  %vm4182_vm4 = vmor %vm4180_vm3, %vm4181_vm2  ;;  %vm4190_vm6 = vweird.f32 %v4051_v8 }
 0x927   : > { %v4176_v38 = vmul.f32 %v5121_v35, %v4175_v16 }
 0x928   : > { %v4259_v33 = vadd.f32 %v7686_v61, %v4242_v51 }
 0x929   : > { %v4177_v53 = vmul.f32 0.5, %v4176_v38 }
 0x92a   : > { %4275 = vst [vmem:[%s7693_s27 + $0x58] sm:$0xff] %v4259_v33 }
 0x92b   : > { %v4178_v3 = vsub.f32 1.5, %v4177_v53 }
 0x92c   : > { %v5123_v21 = vpop.eup %5122 }
 0x92d   : > { %v4179_v50 = vmul.f32 %v5121_v35, %v4178_v3  ;;  %v4185_v10 = vmul.f32 %v5123_v21, %v4051_v8  ;;  %vm4191_vm5 = vweird.f32 %v5123_v21 }
 0x92e   : > { %vm4192_vm7 = vmor %vm4190_vm6, %vm4191_vm5 }
 0x92f   : > { %v4183_v49 = vsel %vm4182_vm4, %v5121_v35, %v4179_v50  ;;  %v4186_v52 = vmul.f32 %v5123_v21, %v4185_v10 }
 0x930   : > { %v4226_v20 = vmul.f32 %v4183_v49, %v7666_v62 }
 0x931   : > { %v4187_v44 = vmul.f32 0.5, %v4186_v52 }
 0x932   : > { %v4243_v13 = vmul.f32 %v7681_v30, %v4226_v20 }
 0x933   : > { %v4188_v36 = vsub.f32 1.5, %v4187_v44 }
 0x934   : > { %v4260_v6 = vadd.f32 %v7686_v61, %v4243_v13 }
 0x935   : > { %v4189_v14 = vmul.f32 %v5123_v21, %v4188_v36 }
 0x936   : > { %4276 = vst [vmem:[%s7693_s27 + $0x60] sm:$0xff] %v4260_v6 }
 0x937   : > { %v4193_v59 = vsel %vm4192_vm7, %v5123_v21, %v4189_v14 }
 0x938   : > { %v4227_v19 = vmul.f32 %v4193_v59, %v7672_v7 }
 0x93a   : > { %v4244_v15 = vmul.f32 %v7681_v30, %v4227_v19 }
 0x93c   : > { %v4261_v17 = vadd.f32 %v7686_v61, %v4244_v15 }
 0x93e   : > { %4277 = vst [vmem:[%s7693_s27 + $0x68] sm:$0xff] %v4261_v17 }
 0x955   : > { %v4019_v62 = vpop.xlane.xlu1 %4018 }
 0x956   : > { %v4036_v26 = vmul.f32 %v4019_v62, %v7063_v9 }
 0x958   : > { %v4052_v11 = vadd.f32 1e-05, %v4036_v26 }
 0x95a   : > { %5124 = vrsqrt.f32 %v4052_v11  ;;  %vm4200_vm9 = vweird.f32 %v4052_v11 }
 0x95d   : > { %v4021_v23 = vpop.xlane.xlu2 %4020 }
 0x95e   : > { %v4037_v4 = vmul.f32 %v4021_v23, %v7063_v9 }
 0x960   : > { %v5125_v1 = vpop.eup %5124  ;;  %v4053_v0 = vadd.f32 1e-05, %v4037_v4 }
 0x961   : > { %v4195_v22 = vmul.f32 %v5125_v1, %v4052_v11  ;;  %vm4201_vm8 = vweird.f32 %v5125_v1 }
 0x962   : > { %5126 = vrsqrt.f32 %v4053_v0  ;;  %vm4202_vm10 = vmor %vm4200_vm9, %vm4201_vm8  ;;  %vm4210_vm12 = vweird.f32 %v4053_v0 }
 0x963   : > { %v4196_v28 = vmul.f32 %v5125_v1, %v4195_v22 }
 0x965   : > { %v4197_v40 = vmul.f32 0.5, %v4196_v28 }
 0x967   : > { %v4198_v7 = vsub.f32 1.5, %v4197_v40 }
 0x968   : > { %v5127_v60 = vpop.eup %5126 }
 0x969   : > { %v4199_v25 = vmul.f32 %v5125_v1, %v4198_v7  ;;  %v4205_v43 = vmul.f32 %v5127_v60, %v4053_v0  ;;  %vm4211_vm11 = vweird.f32 %v5127_v60 }
 0x96a   : > { %vm4212_vm13 = vmor %vm4210_vm12, %vm4211_vm11 }
 0x96b   : > { %v4203_v47 = vsel %vm4202_vm10, %v5125_v1, %v4199_v25  ;;  %v4206_v18 = vmul.f32 %v5127_v60, %v4205_v43 }
 0x96c   : > { %v4228_v9 = vmul.f32 %v4203_v47, %v7703_v27 }
 0x96d   : > { %v4207_v63 = vmul.f32 0.5, %v4206_v18 }
 0x96e   : > { %v4245_v57 = vmul.f32 %v7681_v30, %v4228_v9 }
 0x96f   : > { %v4208_v2 = vsub.f32 1.5, %v4207_v63 }
 0x970   : > { %v4262_v55 = vadd.f32 %v7686_v61, %v4245_v57 }
 0x971   : > { %v4209_v41 = vmul.f32 %v5127_v60, %v4208_v2 }
 0x972   : > { %4278 = vst [vmem:[%s7693_s27 + $0x70] sm:$0xff] %v4262_v55 }
 0x973   : > { %v4213_v46 = vsel %vm4212_vm13, %v5127_v60, %v4209_v41 }
 0x974   : > { %v4229_v42 = vmul.f32 %v4213_v46, %v7714_v5 }
 0x976   : > { %v4246_v32 = vmul.f32 %v7681_v30, %v4229_v42 }
 0x978   : > { %v4263_v56 = vadd.f32 %v7686_v61, %v4246_v32 }
 0x97a   : > { %4279 = vst [vmem:[%s7693_s27 + $0x78] sm:$0xff] %v4263_v56 }
 0x97b   : > { %s7986_s25 = sadd.s32 4294967295, %s5165_s16   ;;  %s4303_s30 = sshll.u32 %s7693_s27, 4  ;;  %s4304_s30 = int_to_ptr.vmem [resolvable:$true] %s4303_s30 }
 0x97c   : > { %s4735_s29 = sshll.u32 %s7986_s25, 4  ;;  %s5168_s26 = smov 256  }
 0x97d   : > { %s4292_s12 = scalar_lea.hbm %s7841_s10, %s4735_s29  ;;  %4746 = sst [smem:[#allocation7]] (%p5268_p6), %s5168_s26 }
 0x97e   : > { %s4305_s18 = sshll.u32 %s4292_s12, 4  ;;  %s5169_s17 = smov 512   ;;  %s4306_s18 = int_to_ptr.hbm [resolvable:$true] %s4305_s18 }
 0x97f   : > { %4747 = sst [smem:[#allocation7 + $0x1]] (%p5268_p6), %s5169_s17  ;;  %s5170_s20 = smov 2  }
 0x980   : > { %4748 = sst [smem:[#allocation7 + $0x2]] (%p5268_p6), %s5170_s20  ;;  %s5171_s21 = smov 128  }
 0x981   : > { %4749 = sst [smem:[#allocation7 + $0x3]] (%p5268_p6), %s5171_s21  ;;  %s5172_s27 = smov 8  }
 0x982   : > { %4750 = sst [smem:[#allocation7 + $0x4]] (%p5268_p6), %s5171_s21  ;;  %s5173_s25 = smov [#allocation6]  }
 0x983   : > { %4751 = sst [smem:[#allocation7 + $0x5]] (%p5268_p6), %s5172_s27  ;;  %s5174_s29 = smov 0  }
 0x984   : > { %4752 = dma.general (%p5268_p6), %s4304_s30, 2048, %s4306_s18, %s4281_s28, %s5173_s25, [#allocation7], %s5174_s29, 0  }
 0x985 PF: > { %s4333_s0 = sand.u32 1, %s5153_s13   ;;  %p4755_p13 = pnand %p4389_p9, %p5272_p8 }
 0x986   : > { %s4334_s11 = scalar_lea.sflag [#allocation5], %s4333_s0 }
 0x987   : > { %p4756_p0 = pneg %p4755_p13 }
 0x989   : > { %5148 = dma.done.wait (%p4756_p0), %s4334_s11, 2048  }
 0x98a   : > { %5150 = vsyncadd (%p4756_p0), %s4334_s11, 4294965248  ;;  %p20_p1 = scmp.ge.s32.totalorder %s5253_s19, 4   ;;  %s7987_s13 = smov %s5157_s14 }
 0x98b   : > { %s7988_s14 = smov %s5161_s15  ;;  %s7989_s15 = smov %s5266_s22 }
 0x98c   : > { %s7990_s16 = smov %s5253_s19  ;;  %22 = sbr.rel (!%p20_p1) target bundleno = 5 (0x5), region = 143 }
 0x991   :  { %4340 = vsyncpa [#allocation5], 1 }
 0x992   :  { %4342 = vsyncpa [#allocation5 + $0x1], 1 }

</bundles_post_ra>
